<compile_context>
chip_gen: v6e
topology: v6e:2x2x1
jax: 0.10.0
libtpu: 0.0.40
codegen_flags: <defaults>
</compile_context>

<pallas_src>
import jax
import jax.numpy as jnp
from jax.experimental import pallas as pl
from jax.experimental.pallas import tpu as pltpu

# --- module constants (defaults of PillarFeatureNetOld2.__init__) ---
VX, VY, VZ = 0.2, 0.2, 4.0
PC_RANGE = (0.0, -40.0, -3.0, 70.4, 40.0, 1.0)
X_OFF = VX / 2.0 + PC_RANGE[0]
Y_OFF = VY / 2.0 + PC_RANGE[1]
Z_OFF = VZ / 2.0 + PC_RANGE[2]
BN_EPS = 1e-3


def pfn_kernel(feat_ref, nvox_ref, invnv_ref, center_ref,
               wmain_ref, wcl_ref, wce_ref, shift_ref, out_ref):
    """One tile of TN voxels; voxels are on the lane axis.

    feat_ref   : (P, C, TN)   point features, voxels on lanes
    nvox_ref   : (1, TN) i32  number of real points per voxel
    invnv_ref  : (1, TN) f32  1 / max(num_voxels, 1)  (0 for empty voxels)
    center_ref : (3, TN) f32  voxel grid-cell center (x, y, z)
    wmain_ref  : (C_OUT, C)   scale-folded combined per-point weight
    wcl_ref    : (C_OUT, C)   -scale * W_cluster (last column zero-padded)
    wce_ref    : (C_OUT, 3)   -scale * W_center
    shift_ref  : (C_OUT, 1)   BN shift
    out_ref    : (C_OUT, TN)  lane-dense output
    """
    P, C, TN = feat_ref.shape
    nvox = nvox_ref[...]                                    # (1, TN)
    wmain = wmain_ref[...]                                  # (C_OUT, C)
    neg_big = jnp.float32(-1e30)

    # Running max over *valid* points of the per-point part of the linear layer.
    # The per-voxel bias (+ BN shift) is constant across points, so it is added
    # after the reduction; ReLU commutes with max and is applied once at the end.
    out_ref[...] = jnp.full(out_ref.shape, neg_big, dtype=jnp.float32)
    sum_c = jnp.zeros((C, TN), dtype=jnp.float32)           # per-channel sum over points
    for p in range(P):                                      # static unroll; free slab slice
        fp = feat_ref[p].astype(jnp.float32)                # (C, TN)
        sum_c = sum_c + fp
        mm = jnp.dot(wmain, fp, preferred_element_type=jnp.float32)   # (C_OUT, TN) on MXU
        valid = nvox > p                                    # (1, TN)
        out_ref[...] = jnp.maximum(out_ref[...], jnp.where(valid, mm, neg_big))

    # Per-voxel bias: -(points_mean @ Wcl + center @ Wce) * bn_scale + bn_shift.
    pm = sum_c * invnv_ref[...]                             # (C, TN); extra rows killed by wcl pad
    bvs = (jnp.dot(wcl_ref[...], pm, preferred_element_type=jnp.float32)
           + jnp.dot(wce_ref[...], center_ref[...], preferred_element_type=jnp.float32)
           + shift_ref[...])                                # (C_OUT, TN)

    # Padded point slots are zeroed before the linear layer in the reference, so
    # after BN they contribute exactly bn_shift to the max (only if padding exists).
    pad_val = jnp.where(nvox < P, shift_ref[...], neg_big)  # (C_OUT, TN)
    out_ref[...] = jnp.maximum(jnp.maximum(out_ref[...] + bvs, pad_val), 0.0)


def _round_up(x, m):
    return (x + m - 1) // m * m


def pillar_feature_net(features, num_voxels, coords, weight, bn_scale, bn_shift,
                       *, tile_n=1024):
    """PillarFeatureNetOld2.forward (eval-mode BN).

    features  : (N, P, C)    per-point features (xyz + extras)
    num_voxels: (N,)         int number of valid points per voxel
    coords    : (N, 4)       int voxel coords [batch, z, y, x]
    weight    : (C_OUT, C+6) torch nn.Linear weight (out, in) of the single PFNLayer
    bn_scale  : (C_OUT,)     gamma / sqrt(running_var + eps)
    bn_shift  : (C_OUT,)     beta - running_mean * bn_scale
    returns   : (N, C_OUT)
    """
    f32 = jnp.float32
    N, P, C = features.shape
    C_out = weight.shape[0]
    assert C >= 3 and weight.shape[1] == C + 6
    assert tile_n % 128 == 0

    # Lane-dense tiling over the voxel axis: tiles are multiples of 128 lanes and
    # the voxel count is padded up (no divisibility requirement on N).
    tn = min(tile_n, _round_up(N, 128))
    n_pad = _round_up(N, tn)
    grid = (n_pad // tn,)
    pad = n_pad - N

    # --- data prep (cheap; in production supply features already as (P, C, N)) ---
    feats_t = jnp.pad(jnp.transpose(features.astype(f32), (1, 2, 0)),
                      ((0, 0), (0, 0), (0, pad)))                        # (P, C, n_pad)
    nv = jnp.pad(num_voxels.astype(jnp.int32).reshape(1, N), ((0, 0), (0, pad)))
    inv_nv = jnp.where(nv > 0, 1.0 / jnp.maximum(nv, 1).astype(f32), 0.0)  # guard empty voxels
    cf = coords.astype(f32)
    center = jnp.stack([cf[:, 3] * VX + X_OFF,
                        cf[:, 2] * VY + Y_OFF,
                        cf[:, 1] * VZ + Z_OFF], axis=0)                  # (3, N)
    center = jnp.pad(center, ((0, 0), (0, pad)))

    # --- fold augmentation + BatchNorm scale into the weights ---
    w = weight.astype(f32)                                  # (C_OUT, C+6), torch (out, in)
    scale = bn_scale.astype(f32).reshape(C_out, 1)
    shift = bn_shift.astype(f32).reshape(C_out, 1)
    wf, wcl, wce = w[:, :C], w[:, C:C + 3], w[:, C + 3:C + 6]
    wmain = (wf + jnp.pad(wcl + wce, ((0, 0), (0, C - 3)))) * scale      # (C_OUT, C)
    wcl_neg = jnp.pad(-wcl * scale, ((0, 0), (0, C - 3)))                # (C_OUT, C)
    wce_neg = -wce * scale                                               # (C_OUT, 3)

    out_t = pl.pallas_call(
        pfn_kernel,
        out_shape=jax.ShapeDtypeStruct((C_out, n_pad), f32),
        grid_spec=pltpu.PrefetchScalarGridSpec(
            num_scalar_prefetch=0,
            grid=grid,
            in_specs=[
                pl.BlockSpec((P, C, tn), lambda i: (0, 0, i)),    # features (lane-dense)
                pl.BlockSpec((1, tn), lambda i: (0, i)),          # num_voxels
                pl.BlockSpec((1, tn), lambda i: (0, i)),          # 1 / num_voxels
                pl.BlockSpec((3, tn), lambda i: (0, i)),          # voxel centers
                pl.BlockSpec((C_out, C), lambda i: (0, 0)),       # folded per-point weight
                pl.BlockSpec((C_out, C), lambda i: (0, 0)),       # cluster-mean weight
                pl.BlockSpec((C_out, 3), lambda i: (0, 0)),       # center weight
                pl.BlockSpec((C_out, 1), lambda i: (0, 0)),       # BN shift
            ],
            out_specs=pl.BlockSpec((C_out, tn), lambda i: (0, i)),
        ),
        compiler_params=pltpu.CompilerParams(dimension_semantics=("parallel",)),
    )(feats_t, nv, inv_nv, center, wmain, wcl_neg, wce_neg, shift)

    return out_t[:, :N].T                                   # (N, C_OUT)


def reference_jax(features, num_voxels, coords, weight, bn_scale, bn_shift):
    """Pure-JAX mirror of the PyTorch forward (eval-mode BN)."""
    f32 = jnp.float32
    feats = features.astype(f32)
    nv = num_voxels.astype(f32).reshape(-1, 1, 1)
    xyz = feats[:, :, :3]
    points_mean = xyz.sum(axis=1, keepdims=True) / nv
    f_cluster = xyz - points_mean
    cf = coords.astype(f32)
    f_center = jnp.stack(
        [feats[:, :, 0] - (cf[:, 3:4] * VX + X_OFF),
         feats[:, :, 1] - (cf[:, 2:3] * VY + Y_OFF),
         feats[:, :, 2] - (cf[:, 1:2] * VZ + Z_OFF)], axis=-1)
    aug = jnp.concatenate([feats, f_cluster, f_center], axis=-1)
    P = feats.shape[1]
    mask = (num_voxels[:, None] > jnp.arange(P, dtype=jnp.int32)[None, :]).astype(f32)
    aug = aug * mask[:, :, None]
    x = aug @ weight.astype(f32).T
    x = x * bn_scale.reshape(1, 1, -1) + bn_shift.reshape(1, 1, -1)
    x = jnp.maximum(x, 0.0)
    return jnp.max(x, axis=1)


if __name__ == "__main__":
    # Small shapes consistent with the module: N voxels, P max points/voxel,
    # 4 input point features -> (folded) 10 augmented channels -> 64 filters.
    N, P, C_IN, C_OUT = 16, 32, 4, 64
    C_AUG = C_IN + 6

    key = jax.random.PRNGKey(0)
    k_feat, k_nv, k_coord, k_w, k_g, k_b = jax.random.split(key, 6)

    features = jax.random.normal(k_feat, (N, P, C_IN), dtype=jnp.float32)
    num_voxels = jax.random.randint(k_nv, (N,), 1, P + 1, dtype=jnp.int32)
    coords = jax.random.randint(k_coord, (N, 4), 0, 20, dtype=jnp.int32)  # [b, z, y, x]

    # nn.Linear(10, 64, bias=False) weight (torch (out, in) layout) + BatchNorm1d(64).
    weight = jax.random.normal(k_w, (C_OUT, C_AUG), dtype=jnp.float32) * 0.1
    gamma = 1.0 + 0.1 * jax.random.normal(k_g, (C_OUT,), dtype=jnp.float32)
    beta = 0.1 * jax.random.normal(k_b, (C_OUT,), dtype=jnp.float32)
    running_mean = jnp.zeros((C_OUT,), dtype=jnp.float32)
    running_var = jnp.ones((C_OUT,), dtype=jnp.float32)
    bn_scale = gamma / jnp.sqrt(running_var + BN_EPS)
    bn_shift = beta - running_mean * bn_scale

    out = pillar_feature_net(features, num_voxels, coords, weight, bn_scale, bn_shift)
    out = jax.block_until_ready(out)

    ref = reference_jax(features, num_voxels, coords, weight, bn_scale, bn_shift)
    assert out.shape == (N, C_OUT)
    assert jnp.allclose(out, ref, rtol=2e-4, atol=2e-4), "mismatch vs JAX reference"

    print("KERNEL_OK")
</pallas_src>

<mosaic_0001>
module attributes {stable_mosaic.version = 11 : i64} {
  func.func @pfn_kernel(%arg0: i32, %arg1: memref<32x4x128xf32, #tpu.memory_space<vmem>>, %arg2: memref<1x128xi32, #tpu.memory_space<vmem>>, %arg3: memref<1x128xf32, #tpu.memory_space<vmem>>, %arg4: memref<3x128xf32, #tpu.memory_space<vmem>>, %arg5: memref<64x4xf32, #tpu.memory_space<vmem>>, %arg6: memref<64x4xf32, #tpu.memory_space<vmem>>, %arg7: memref<64x3xf32, #tpu.memory_space<vmem>>, %arg8: memref<64x1xf32, #tpu.memory_space<vmem>>, %arg9: memref<64x128xf32, #tpu.memory_space<vmem>>) attributes {dimension_semantics = [#tpu.dimension_semantics<parallel>], iteration_bounds = array<i64: 1>, scalar_prefetch = 0 : i64, scratch_operands = 0 : i64, tpu.core_type = #tpu.core_type<tc>, window_params = [{transform_indices = @transform_0, window_bounds = array<i64: 32, 4, 128>}, {transform_indices = @transform_1, window_bounds = array<i64: 1, 128>}, {transform_indices = @transform_2, window_bounds = array<i64: 1, 128>}, {transform_indices = @transform_3, window_bounds = array<i64: 3, 128>}, {pipeline_mode = #tpu.pipeline_mode<synchronous>, transform_indices = @transform_4, window_bounds = array<i64: 64, 4>}, {pipeline_mode = #tpu.pipeline_mode<synchronous>, transform_indices = @transform_5, window_bounds = array<i64: 64, 4>}, {pipeline_mode = #tpu.pipeline_mode<synchronous>, transform_indices = @transform_6, window_bounds = array<i64: 64, 3>}, {pipeline_mode = #tpu.pipeline_mode<synchronous>, transform_indices = @transform_7, window_bounds = array<i64: 64, 1>}, {transform_indices = @transform_8, window_bounds = array<i64: 64, 128>}]} {
    %c0 = arith.constant 0 : index
    %c0_0 = arith.constant 0 : index
    %0 = vector.load %arg2[%c0, %c0_0] : memref<1x128xi32, #tpu.memory_space<vmem>>, vector<1x128xi32>
    %c0_1 = arith.constant 0 : index
    %c0_2 = arith.constant 0 : index
    %1 = vector.load %arg5[%c0_1, %c0_2] : memref<64x4xf32, #tpu.memory_space<vmem>>, vector<64x4xf32>
    %cst = arith.constant -1.000000e+30 : f32
    %2 = vector.broadcast %cst : f32 to vector<64x128xf32>
    %c0_3 = arith.constant 0 : index
    %c0_4 = arith.constant 0 : index
    %3 = vector.load %arg9[%c0_3, %c0_4] : memref<64x128xf32, #tpu.memory_space<vmem>>, vector<64x128xf32>
    tpu.vector_store %arg9[%c0_3, %c0_4], %2 {strides = array<i32>} : memref<64x128xf32, #tpu.memory_space<vmem>>, vector<64x128xf32>,
    %cst_5 = arith.constant 0.000000e+00 : f32
    %4 = vector.broadcast %cst_5 : f32 to vector<4x128xf32>
    %c0_6 = arith.constant 0 : index
    %c0_7 = arith.constant 0 : index
    %c0_8 = arith.constant 0 : index
    %5 = vector.load %arg1[%c0_6, %c0_7, %c0_8] : memref<32x4x128xf32, #tpu.memory_space<vmem>>, vector<1x4x128xf32>
    %6 = vector.shape_cast %5 : vector<1x4x128xf32> to vector<4x128xf32>
    %7 = arith.addf %4, %6 : vector<4x128xf32>
    %cst_9 = arith.constant dense<0.000000e+00> : vector<64x128xf32>
    %8 = tpu.matmul %1, %6, %cst_9 {dimension_numbers = #tpu.dot_dimension_numbers<[1], [0], [0], [1], [0, 0, 1, 1], [], []>} : vector<64x4xf32>, vector<4x128xf32>, vector<64x128xf32> -> vector<64x128xf32>
    %c0_i32 = arith.constant 0 : i32
    %9 = vector.broadcast %c0_i32 : i32 to vector<1x128xi32>
    %10 = arith.cmpi sgt, %0, %9 : vector<1x128xi32>
    %c0_10 = arith.constant 0 : index
    %c0_11 = arith.constant 0 : index
    %11 = vector.load %arg9[%c0_10, %c0_11] : memref<64x128xf32, #tpu.memory_space<vmem>>, vector<64x128xf32>
    %cst_12 = arith.constant -1.000000e+30 : f32
    %12 = vector.shape_cast %10 : vector<1x128xi1> to vector<1x128xi1>
    %13 = vector.broadcast %12 : vector<1x128xi1> to vector<64x128xi1>
    %14 = vector.broadcast %cst_12 : f32 to vector<64x128xf32>
    %15 = arith.select %13, %8, %14 : vector<64x128xi1>, vector<64x128xf32>
    %16 = arith.maximumf %11, %15 : vector<64x128xf32>
    %c0_13 = arith.constant 0 : index
    %c0_14 = arith.constant 0 : index
    %17 = vector.load %arg9[%c0_13, %c0_14] : memref<64x128xf32, #tpu.memory_space<vmem>>, vector<64x128xf32>
    tpu.vector_store %arg9[%c0_13, %c0_14], %16 {strides = array<i32>} : memref<64x128xf32, #tpu.memory_space<vmem>>, vector<64x128xf32>,
    %c1 = arith.constant 1 : index
    %c0_15 = arith.constant 0 : index
    %c0_16 = arith.constant 0 : index
    %18 = vector.load %arg1[%c1, %c0_15, %c0_16] : memref<32x4x128xf32, #tpu.memory_space<vmem>>, vector<1x4x128xf32>
    %19 = vector.shape_cast %18 : vector<1x4x128xf32> to vector<4x128xf32>
    %20 = arith.addf %7, %19 : vector<4x128xf32>
    %cst_17 = arith.constant dense<0.000000e+00> : vector<64x128xf32>
    %21 = tpu.matmul %1, %19, %cst_17 {dimension_numbers = #tpu.dot_dimension_numbers<[1], [0], [0], [1], [0, 0, 1, 1], [], []>} : vector<64x4xf32>, vector<4x128xf32>, vector<64x128xf32> -> vector<64x128xf32>
    %c1_i32 = arith.constant 1 : i32
    %22 = vector.broadcast %c1_i32 : i32 to vector<1x128xi32>
    %23 = arith.cmpi sgt, %0, %22 : vector<1x128xi32>
    %c0_18 = arith.constant 0 : index
    %c0_19 = arith.constant 0 : index
    %24 = vector.load %arg9[%c0_18, %c0_19] : memref<64x128xf32, #tpu.memory_space<vmem>>, vector<64x128xf32>
    %cst_20 = arith.constant -1.000000e+30 : f32
    %25 = vector.shape_cast %23 : vector<1x128xi1> to vector<1x128xi1>
    %26 = vector.broadcast %25 : vector<1x128xi1> to vector<64x128xi1>
    %27 = vector.broadcast %cst_20 : f32 to vector<64x128xf32>
    %28 = arith.select %26, %21, %27 : vector<64x128xi1>, vector<64x128xf32>
    %29 = arith.maximumf %24, %28 : vector<64x128xf32>
    %c0_21 = arith.constant 0 : index
    %c0_22 = arith.constant 0 : index
    %30 = vector.load %arg9[%c0_21, %c0_22] : memref<64x128xf32, #tpu.memory_space<vmem>>, vector<64x128xf32>
    tpu.vector_store %arg9[%c0_21, %c0_22], %29 {strides = array<i32>} : memref<64x128xf32, #tpu.memory_space<vmem>>, vector<64x128xf32>,
    %c2 = arith.constant 2 : index
    %c0_23 = arith.constant 0 : index
    %c0_24 = arith.constant 0 : index
    %31 = vector.load %arg1[%c2, %c0_23, %c0_24] : memref<32x4x128xf32, #tpu.memory_space<vmem>>, vector<1x4x128xf32>
    %32 = vector.shape_cast %31 : vector<1x4x128xf32> to vector<4x128xf32>
    %33 = arith.addf %20, %32 : vector<4x128xf32>
    %cst_25 = arith.constant dense<0.000000e+00> : vector<64x128xf32>
    %34 = tpu.matmul %1, %32, %cst_25 {dimension_numbers = #tpu.dot_dimension_numbers<[1], [0], [0], [1], [0, 0, 1, 1], [], []>} : vector<64x4xf32>, vector<4x128xf32>, vector<64x128xf32> -> vector<64x128xf32>
    %c2_i32 = arith.constant 2 : i32
    %35 = vector.broadcast %c2_i32 : i32 to vector<1x128xi32>
    %36 = arith.cmpi sgt, %0, %35 : vector<1x128xi32>
    %c0_26 = arith.constant 0 : index
    %c0_27 = arith.constant 0 : index
    %37 = vector.load %arg9[%c0_26, %c0_27] : memref<64x128xf32, #tpu.memory_space<vmem>>, vector<64x128xf32>
    %cst_28 = arith.constant -1.000000e+30 : f32
    %38 = vector.shape_cast %36 : vector<1x128xi1> to vector<1x128xi1>
    %39 = vector.broadcast %38 : vector<1x128xi1> to vector<64x128xi1>
    %40 = vector.broadcast %cst_28 : f32 to vector<64x128xf32>
    %41 = arith.select %39, %34, %40 : vector<64x128xi1>, vector<64x128xf32>
    %42 = arith.maximumf %37, %41 : vector<64x128xf32>
    %c0_29 = arith.constant 0 : index
    %c0_30 = arith.constant 0 : index
    %43 = vector.load %arg9[%c0_29, %c0_30] : memref<64x128xf32, #tpu.memory_space<vmem>>, vector<64x128xf32>
    tpu.vector_store %arg9[%c0_29, %c0_30], %42 {strides = array<i32>} : memref<64x128xf32, #tpu.memory_space<vmem>>, vector<64x128xf32>,
    %c3 = arith.constant 3 : index
    %c0_31 = arith.constant 0 : index
    %c0_32 = arith.constant 0 : index
    %44 = vector.load %arg1[%c3, %c0_31, %c0_32] : memref<32x4x128xf32, #tpu.memory_space<vmem>>, vector<1x4x128xf32>
    %45 = vector.shape_cast %44 : vector<1x4x128xf32> to vector<4x128xf32>
    %46 = arith.addf %33, %45 : vector<4x128xf32>
    %cst_33 = arith.constant dense<0.000000e+00> : vector<64x128xf32>
    %47 = tpu.matmul %1, %45, %cst_33 {dimension_numbers = #tpu.dot_dimension_numbers<[1], [0], [0], [1], [0, 0, 1, 1], [], []>} : vector<64x4xf32>, vector<4x128xf32>, vector<64x128xf32> -> vector<64x128xf32>
    %c3_i32 = arith.constant 3 : i32
    %48 = vector.broadcast %c3_i32 : i32 to vector<1x128xi32>
    %49 = arith.cmpi sgt, %0, %48 : vector<1x128xi32>
    %c0_34 = arith.constant 0 : index
    %c0_35 = arith.constant 0 : index
    %50 = vector.load %arg9[%c0_34, %c0_35] : memref<64x128xf32, #tpu.memory_space<vmem>>, vector<64x128xf32>
    %cst_36 = arith.constant -1.000000e+30 : f32
    %51 = vector.shape_cast %49 : vector<1x128xi1> to vector<1x128xi1>
    %52 = vector.broadcast %51 : vector<1x128xi1> to vector<64x128xi1>
    %53 = vector.broadcast %cst_36 : f32 to vector<64x128xf32>
    %54 = arith.select %52, %47, %53 : vector<64x128xi1>, vector<64x128xf32>
    %55 = arith.maximumf %50, %54 : vector<64x128xf32>
    %c0_37 = arith.constant 0 : index
    %c0_38 = arith.constant 0 : index
    %56 = vector.load %arg9[%c0_37, %c0_38] : memref<64x128xf32, #tpu.memory_space<vmem>>, vector<64x128xf32>
    tpu.vector_store %arg9[%c0_37, %c0_38], %55 {strides = array<i32>} : memref<64x128xf32, #tpu.memory_space<vmem>>, vector<64x128xf32>,
    %c4 = arith.constant 4 : index
    %c0_39 = arith.constant 0 : index
    %c0_40 = arith.constant 0 : index
    %57 = vector.load %arg1[%c4, %c0_39, %c0_40] : memref<32x4x128xf32, #tpu.memory_space<vmem>>, vector<1x4x128xf32>
    %58 = vector.shape_cast %57 : vector<1x4x128xf32> to vector<4x128xf32>
    %59 = arith.addf %46, %58 : vector<4x128xf32>
    %cst_41 = arith.constant dense<0.000000e+00> : vector<64x128xf32>
    %60 = tpu.matmul %1, %58, %cst_41 {dimension_numbers = #tpu.dot_dimension_numbers<[1], [0], [0], [1], [0, 0, 1, 1], [], []>} : vector<64x4xf32>, vector<4x128xf32>, vector<64x128xf32> -> vector<64x128xf32>
    %c4_i32 = arith.constant 4 : i32
    %61 = vector.broadcast %c4_i32 : i32 to vector<1x128xi32>
    %62 = arith.cmpi sgt, %0, %61 : vector<1x128xi32>
    %c0_42 = arith.constant 0 : index
    %c0_43 = arith.constant 0 : index
    %63 = vector.load %arg9[%c0_42, %c0_43] : memref<64x128xf32, #tpu.memory_space<vmem>>, vector<64x128xf32>
    %cst_44 = arith.constant -1.000000e+30 : f32
    %64 = vector.shape_cast %62 : vector<1x128xi1> to vector<1x128xi1>
    %65 = vector.broadcast %64 : vector<1x128xi1> to vector<64x128xi1>
    %66 = vector.broadcast %cst_44 : f32 to vector<64x128xf32>
    %67 = arith.select %65, %60, %66 : vector<64x128xi1>, vector<64x128xf32>
    %68 = arith.maximumf %63, %67 : vector<64x128xf32>
    %c0_45 = arith.constant 0 : index
    %c0_46 = arith.constant 0 : index
    %69 = vector.load %arg9[%c0_45, %c0_46] : memref<64x128xf32, #tpu.memory_space<vmem>>, vector<64x128xf32>
    tpu.vector_store %arg9[%c0_45, %c0_46], %68 {strides = array<i32>} : memref<64x128xf32, #tpu.memory_space<vmem>>, vector<64x128xf32>,
    %c5 = arith.constant 5 : index
    %c0_47 = arith.constant 0 : index
    %c0_48 = arith.constant 0 : index
    %70 = vector.load %arg1[%c5, %c0_47, %c0_48] : memref<32x4x128xf32, #tpu.memory_space<vmem>>, vector<1x4x128xf32>
    %71 = vector.shape_cast %70 : vector<1x4x128xf32> to vector<4x128xf32>
    %72 = arith.addf %59, %71 : vector<4x128xf32>
    %cst_49 = arith.constant dense<0.000000e+00> : vector<64x128xf32>
    %73 = tpu.matmul %1, %71, %cst_49 {dimension_numbers = #tpu.dot_dimension_numbers<[1], [0], [0], [1], [0, 0, 1, 1], [], []>} : vector<64x4xf32>, vector<4x128xf32>, vector<64x128xf32> -> vector<64x128xf32>
    %c5_i32 = arith.constant 5 : i32
    %74 = vector.broadcast %c5_i32 : i32 to vector<1x128xi32>
    %75 = arith.cmpi sgt, %0, %74 : vector<1x128xi32>
    %c0_50 = arith.constant 0 : index
    %c0_51 = arith.constant 0 : index
    %76 = vector.load %arg9[%c0_50, %c0_51] : memref<64x128xf32, #tpu.memory_space<vmem>>, vector<64x128xf32>
    %cst_52 = arith.constant -1.000000e+30 : f32
    %77 = vector.shape_cast %75 : vector<1x128xi1> to vector<1x128xi1>
    %78 = vector.broadcast %77 : vector<1x128xi1> to vector<64x128xi1>
    %79 = vector.broadcast %cst_52 : f32 to vector<64x128xf32>
    %80 = arith.select %78, %73, %79 : vector<64x128xi1>, vector<64x128xf32>
    %81 = arith.maximumf %76, %80 : vector<64x128xf32>
    %c0_53 = arith.constant 0 : index
    %c0_54 = arith.constant 0 : index
    %82 = vector.load %arg9[%c0_53, %c0_54] : memref<64x128xf32, #tpu.memory_space<vmem>>, vector<64x128xf32>
    tpu.vector_store %arg9[%c0_53, %c0_54], %81 {strides = array<i32>} : memref<64x128xf32, #tpu.memory_space<vmem>>, vector<64x128xf32>,
    %c6 = arith.constant 6 : index
    %c0_55 = arith.constant 0 : index
    %c0_56 = arith.constant 0 : index
    %83 = vector.load %arg1[%c6, %c0_55, %c0_56] : memref<32x4x128xf32, #tpu.memory_space<vmem>>, vector<1x4x128xf32>
    %84 = vector.shape_cast %83 : vector<1x4x128xf32> to vector<4x128xf32>
    %85 = arith.addf %72, %84 : vector<4x128xf32>
    %cst_57 = arith.constant dense<0.000000e+00> : vector<64x128xf32>
    %86 = tpu.matmul %1, %84, %cst_57 {dimension_numbers = #tpu.dot_dimension_numbers<[1], [0], [0], [1], [0, 0, 1, 1], [], []>} : vector<64x4xf32>, vector<4x128xf32>, vector<64x128xf32> -> vector<64x128xf32>
    %c6_i32 = arith.constant 6 : i32
    %87 = vector.broadcast %c6_i32 : i32 to vector<1x128xi32>
    %88 = arith.cmpi sgt, %0, %87 : vector<1x128xi32>
    %c0_58 = arith.constant 0 : index
    %c0_59 = arith.constant 0 : index
    %89 = vector.load %arg9[%c0_58, %c0_59] : memref<64x128xf32, #tpu.memory_space<vmem>>, vector<64x128xf32>
    %cst_60 = arith.constant -1.000000e+30 : f32
    %90 = vector.shape_cast %88 : vector<1x128xi1> to vector<1x128xi1>
    %91 = vector.broadcast %90 : vector<1x128xi1> to vector<64x128xi1>
    %92 = vector.broadcast %cst_60 : f32 to vector<64x128xf32>
    %93 = arith.select %91, %86, %92 : vector<64x128xi1>, vector<64x128xf32>
    %94 = arith.maximumf %89, %93 : vector<64x128xf32>
    %c0_61 = arith.constant 0 : index
    %c0_62 = arith.constant 0 : index
    %95 = vector.load %arg9[%c0_61, %c0_62] : memref<64x128xf32, #tpu.memory_space<vmem>>, vector<64x128xf32>
    tpu.vector_store %arg9[%c0_61, %c0_62], %94 {strides = array<i32>} : memref<64x128xf32, #tpu.memory_space<vmem>>, vector<64x128xf32>,
    %c7 = arith.constant 7 : index
    %c0_63 = arith.constant 0 : index
    %c0_64 = arith.constant 0 : index
    %96 = vector.load %arg1[%c7, %c0_63, %c0_64] : memref<32x4x128xf32, #tpu.memory_space<vmem>>, vector<1x4x128xf32>
    %97 = vector.shape_cast %96 : vector<1x4x128xf32> to vector<4x128xf32>
    %98 = arith.addf %85, %97 : vector<4x128xf32>
    %cst_65 = arith.constant dense<0.000000e+00> : vector<64x128xf32>
    %99 = tpu.matmul %1, %97, %cst_65 {dimension_numbers = #tpu.dot_dimension_numbers<[1], [0], [0], [1], [0, 0, 1, 1], [], []>} : vector<64x4xf32>, vector<4x128xf32>, vector<64x128xf32> -> vector<64x128xf32>
    %c7_i32 = arith.constant 7 : i32
    %100 = vector.broadcast %c7_i32 : i32 to vector<1x128xi32>
    %101 = arith.cmpi sgt, %0, %100 : vector<1x128xi32>
    %c0_66 = arith.constant 0 : index
    %c0_67 = arith.constant 0 : index
    %102 = vector.load %arg9[%c0_66, %c0_67] : memref<64x128xf32, #tpu.memory_space<vmem>>, vector<64x128xf32>
    %cst_68 = arith.constant -1.000000e+30 : f32
    %103 = vector.shape_cast %101 : vector<1x128xi1> to vector<1x128xi1>
    %104 = vector.broadcast %103 : vector<1x128xi1> to vector<64x128xi1>
    %105 = vector.broadcast %cst_68 : f32 to vector<64x128xf32>
    %106 = arith.select %104, %99, %105 : vector<64x128xi1>, vector<64x128xf32>
    %107 = arith.maximumf %102, %106 : vector<64x128xf32>
    %c0_69 = arith.constant 0 : index
    %c0_70 = arith.constant 0 : index
    %108 = vector.load %arg9[%c0_69, %c0_70] : memref<64x128xf32, #tpu.memory_space<vmem>>, vector<64x128xf32>
    tpu.vector_store %arg9[%c0_69, %c0_70], %107 {strides = array<i32>} : memref<64x128xf32, #tpu.memory_space<vmem>>, vector<64x128xf32>,
    %c8 = arith.constant 8 : index
    %c0_71 = arith.constant 0 : index
    %c0_72 = arith.constant 0 : index
    %109 = vector.load %arg1[%c8, %c0_71, %c0_72] : memref<32x4x128xf32, #tpu.memory_space<vmem>>, vector<1x4x128xf32>
    %110 = vector.shape_cast %109 : vector<1x4x128xf32> to vector<4x128xf32>
    %111 = arith.addf %98, %110 : vector<4x128xf32>
    %cst_73 = arith.constant dense<0.000000e+00> : vector<64x128xf32>
    %112 = tpu.matmul %1, %110, %cst_73 {dimension_numbers = #tpu.dot_dimension_numbers<[1], [0], [0], [1], [0, 0, 1, 1], [], []>} : vector<64x4xf32>, vector<4x128xf32>, vector<64x128xf32> -> vector<64x128xf32>
    %c8_i32 = arith.constant 8 : i32
    %113 = vector.broadcast %c8_i32 : i32 to vector<1x128xi32>
    %114 = arith.cmpi sgt, %0, %113 : vector<1x128xi32>
    %c0_74 = arith.constant 0 : index
    %c0_75 = arith.constant 0 : index
    %115 = vector.load %arg9[%c0_74, %c0_75] : memref<64x128xf32, #tpu.memory_space<vmem>>, vector<64x128xf32>
    %cst_76 = arith.constant -1.000000e+30 : f32
    %116 = vector.shape_cast %114 : vector<1x128xi1> to vector<1x128xi1>
    %117 = vector.broadcast %116 : vector<1x128xi1> to vector<64x128xi1>
    %118 = vector.broadcast %cst_76 : f32 to vector<64x128xf32>
    %119 = arith.select %117, %112, %118 : vector<64x128xi1>, vector<64x128xf32>
    %120 = arith.maximumf %115, %119 : vector<64x128xf32>
    %c0_77 = arith.constant 0 : index
    %c0_78 = arith.constant 0 : index
    %121 = vector.load %arg9[%c0_77, %c0_78] : memref<64x128xf32, #tpu.memory_space<vmem>>, vector<64x128xf32>
    tpu.vector_store %arg9[%c0_77, %c0_78], %120 {strides = array<i32>} : memref<64x128xf32, #tpu.memory_space<vmem>>, vector<64x128xf32>,
    %c9 = arith.constant 9 : index
    %c0_79 = arith.constant 0 : index
    %c0_80 = arith.constant 0 : index
    %122 = vector.load %arg1[%c9, %c0_79, %c0_80] : memref<32x4x128xf32, #tpu.memory_space<vmem>>, vector<1x4x128xf32>
    %123 = vector.shape_cast %122 : vector<1x4x128xf32> to vector<4x128xf32>
    %124 = arith.addf %111, %123 : vector<4x128xf32>
    %cst_81 = arith.constant dense<0.000000e+00> : vector<64x128xf32>
    %125 = tpu.matmul %1, %123, %cst_81 {dimension_numbers = #tpu.dot_dimension_numbers<[1], [0], [0], [1], [0, 0, 1, 1], [], []>} : vector<64x4xf32>, vector<4x128xf32>, vector<64x128xf32> -> vector<64x128xf32>
    %c9_i32 = arith.constant 9 : i32
    %126 = vector.broadcast %c9_i32 : i32 to vector<1x128xi32>
    %127 = arith.cmpi sgt, %0, %126 : vector<1x128xi32>
    %c0_82 = arith.constant 0 : index
    %c0_83 = arith.constant 0 : index
    %128 = vector.load %arg9[%c0_82, %c0_83] : memref<64x128xf32, #tpu.memory_space<vmem>>, vector<64x128xf32>
    %cst_84 = arith.constant -1.000000e+30 : f32
    %129 = vector.shape_cast %127 : vector<1x128xi1> to vector<1x128xi1>
    %130 = vector.broadcast %129 : vector<1x128xi1> to vector<64x128xi1>
    %131 = vector.broadcast %cst_84 : f32 to vector<64x128xf32>
    %132 = arith.select %130, %125, %131 : vector<64x128xi1>, vector<64x128xf32>
    %133 = arith.maximumf %128, %132 : vector<64x128xf32>
    %c0_85 = arith.constant 0 : index
    %c0_86 = arith.constant 0 : index
    %134 = vector.load %arg9[%c0_85, %c0_86] : memref<64x128xf32, #tpu.memory_space<vmem>>, vector<64x128xf32>
    tpu.vector_store %arg9[%c0_85, %c0_86], %133 {strides = array<i32>} : memref<64x128xf32, #tpu.memory_space<vmem>>, vector<64x128xf32>,
    %c10 = arith.constant 10 : index
    %c0_87 = arith.constant 0 : index
    %c0_88 = arith.constant 0 : index
    %135 = vector.load %arg1[%c10, %c0_87, %c0_88] : memref<32x4x128xf32, #tpu.memory_space<vmem>>, vector<1x4x128xf32>
    %136 = vector.shape_cast %135 : vector<1x4x128xf32> to vector<4x128xf32>
    %137 = arith.addf %124, %136 : vector<4x128xf32>
    %cst_89 = arith.constant dense<0.000000e+00> : vector<64x128xf32>
    %138 = tpu.matmul %1, %136, %cst_89 {dimension_numbers = #tpu.dot_dimension_numbers<[1], [0], [0], [1], [0, 0, 1, 1], [], []>} : vector<64x4xf32>, vector<4x128xf32>, vector<64x128xf32> -> vector<64x128xf32>
    %c10_i32 = arith.constant 10 : i32
    %139 = vector.broadcast %c10_i32 : i32 to vector<1x128xi32>
    %140 = arith.cmpi sgt, %0, %139 : vector<1x128xi32>
    %c0_90 = arith.constant 0 : index
    %c0_91 = arith.constant 0 : index
    %141 = vector.load %arg9[%c0_90, %c0_91] : memref<64x128xf32, #tpu.memory_space<vmem>>, vector<64x128xf32>
    %cst_92 = arith.constant -1.000000e+30 : f32
    %142 = vector.shape_cast %140 : vector<1x128xi1> to vector<1x128xi1>
    %143 = vector.broadcast %142 : vector<1x128xi1> to vector<64x128xi1>
    %144 = vector.broadcast %cst_92 : f32 to vector<64x128xf32>
    %145 = arith.select %143, %138, %144 : vector<64x128xi1>, vector<64x128xf32>
    %146 = arith.maximumf %141, %145 : vector<64x128xf32>
    %c0_93 = arith.constant 0 : index
    %c0_94 = arith.constant 0 : index
    %147 = vector.load %arg9[%c0_93, %c0_94] : memref<64x128xf32, #tpu.memory_space<vmem>>, vector<64x128xf32>
    tpu.vector_store %arg9[%c0_93, %c0_94], %146 {strides = array<i32>} : memref<64x128xf32, #tpu.memory_space<vmem>>, vector<64x128xf32>,
    %c11 = arith.constant 11 : index
    %c0_95 = arith.constant 0 : index
    %c0_96 = arith.constant 0 : index
    %148 = vector.load %arg1[%c11, %c0_95, %c0_96] : memref<32x4x128xf32, #tpu.memory_space<vmem>>, vector<1x4x128xf32>
    %149 = vector.shape_cast %148 : vector<1x4x128xf32> to vector<4x128xf32>
    %150 = arith.addf %137, %149 : vector<4x128xf32>
    %cst_97 = arith.constant dense<0.000000e+00> : vector<64x128xf32>
    %151 = tpu.matmul %1, %149, %cst_97 {dimension_numbers = #tpu.dot_dimension_numbers<[1], [0], [0], [1], [0, 0, 1, 1], [], []>} : vector<64x4xf32>, vector<4x128xf32>, vector<64x128xf32> -> vector<64x128xf32>
    %c11_i32 = arith.constant 11 : i32
    %152 = vector.broadcast %c11_i32 : i32 to vector<1x128xi32>
    %153 = arith.cmpi sgt, %0, %152 : vector<1x128xi32>
    %c0_98 = arith.constant 0 : index
    %c0_99 = arith.constant 0 : index
    %154 = vector.load %arg9[%c0_98, %c0_99] : memref<64x128xf32, #tpu.memory_space<vmem>>, vector<64x128xf32>
    %cst_100 = arith.constant -1.000000e+30 : f32
    %155 = vector.shape_cast %153 : vector<1x128xi1> to vector<1x128xi1>
    %156 = vector.broadcast %155 : vector<1x128xi1> to vector<64x128xi1>
    %157 = vector.broadcast %cst_100 : f32 to vector<64x128xf32>
    %158 = arith.select %156, %151, %157 : vector<64x128xi1>, vector<64x128xf32>
    %159 = arith.maximumf %154, %158 : vector<64x128xf32>
    %c0_101 = arith.constant 0 : index
    %c0_102 = arith.constant 0 : index
    %160 = vector.load %arg9[%c0_101, %c0_102] : memref<64x128xf32, #tpu.memory_space<vmem>>, vector<64x128xf32>
    tpu.vector_store %arg9[%c0_101, %c0_102], %159 {strides = array<i32>} : memref<64x128xf32, #tpu.memory_space<vmem>>, vector<64x128xf32>,
    %c12 = arith.constant 12 : index
    %c0_103 = arith.constant 0 : index
    %c0_104 = arith.constant 0 : index
    %161 = vector.load %arg1[%c12, %c0_103, %c0_104] : memref<32x4x128xf32, #tpu.memory_space<vmem>>, vector<1x4x128xf32>
    %162 = vector.shape_cast %161 : vector<1x4x128xf32> to vector<4x128xf32>
    %163 = arith.addf %150, %162 : vector<4x128xf32>
    %cst_105 = arith.constant dense<0.000000e+00> : vector<64x128xf32>
    %164 = tpu.matmul %1, %162, %cst_105 {dimension_numbers = #tpu.dot_dimension_numbers<[1], [0], [0], [1], [0, 0, 1, 1], [], []>} : vector<64x4xf32>, vector<4x128xf32>, vector<64x128xf32> -> vector<64x128xf32>
    %c12_i32 = arith.constant 12 : i32
    %165 = vector.broadcast %c12_i32 : i32 to vector<1x128xi32>
    %166 = arith.cmpi sgt, %0, %165 : vector<1x128xi32>
    %c0_106 = arith.constant 0 : index
    %c0_107 = arith.constant 0 : index
    %167 = vector.load %arg9[%c0_106, %c0_107] : memref<64x128xf32, #tpu.memory_space<vmem>>, vector<64x128xf32>
    %cst_108 = arith.constant -1.000000e+30 : f32
    %168 = vector.shape_cast %166 : vector<1x128xi1> to vector<1x128xi1>
    %169 = vector.broadcast %168 : vector<1x128xi1> to vector<64x128xi1>
    %170 = vector.broadcast %cst_108 : f32 to vector<64x128xf32>
    %171 = arith.select %169, %164, %170 : vector<64x128xi1>, vector<64x128xf32>
    %172 = arith.maximumf %167, %171 : vector<64x128xf32>
    %c0_109 = arith.constant 0 : index
    %c0_110 = arith.constant 0 : index
    %173 = vector.load %arg9[%c0_109, %c0_110] : memref<64x128xf32, #tpu.memory_space<vmem>>, vector<64x128xf32>
    tpu.vector_store %arg9[%c0_109, %c0_110], %172 {strides = array<i32>} : memref<64x128xf32, #tpu.memory_space<vmem>>, vector<64x128xf32>,
    %c13 = arith.constant 13 : index
    %c0_111 = arith.constant 0 : index
    %c0_112 = arith.constant 0 : index
    %174 = vector.load %arg1[%c13, %c0_111, %c0_112] : memref<32x4x128xf32, #tpu.memory_space<vmem>>, vector<1x4x128xf32>
    %175 = vector.shape_cast %174 : vector<1x4x128xf32> to vector<4x128xf32>
    %176 = arith.addf %163, %175 : vector<4x128xf32>
    %cst_113 = arith.constant dense<0.000000e+00> : vector<64x128xf32>
    %177 = tpu.matmul %1, %175, %cst_113 {dimension_numbers = #tpu.dot_dimension_numbers<[1], [0], [0], [1], [0, 0, 1, 1], [], []>} : vector<64x4xf32>, vector<4x128xf32>, vector<64x128xf32> -> vector<64x128xf32>
    %c13_i32 = arith.constant 13 : i32
    %178 = vector.broadcast %c13_i32 : i32 to vector<1x128xi32>
    %179 = arith.cmpi sgt, %0, %178 : vector<1x128xi32>
    %c0_114 = arith.constant 0 : index
    %c0_115 = arith.constant 0 : index
    %180 = vector.load %arg9[%c0_114, %c0_115] : memref<64x128xf32, #tpu.memory_space<vmem>>, vector<64x128xf32>
    %cst_116 = arith.constant -1.000000e+30 : f32
    %181 = vector.shape_cast %179 : vector<1x128xi1> to vector<1x128xi1>
    %182 = vector.broadcast %181 : vector<1x128xi1> to vector<64x128xi1>
    %183 = vector.broadcast %cst_116 : f32 to vector<64x128xf32>
    %184 = arith.select %182, %177, %183 : vector<64x128xi1>, vector<64x128xf32>
    %185 = arith.maximumf %180, %184 : vector<64x128xf32>
    %c0_117 = arith.constant 0 : index
    %c0_118 = arith.constant 0 : index
    %186 = vector.load %arg9[%c0_117, %c0_118] : memref<64x128xf32, #tpu.memory_space<vmem>>, vector<64x128xf32>
    tpu.vector_store %arg9[%c0_117, %c0_118], %185 {strides = array<i32>} : memref<64x128xf32, #tpu.memory_space<vmem>>, vector<64x128xf32>,
    %c14 = arith.constant 14 : index
    %c0_119 = arith.constant 0 : index
    %c0_120 = arith.constant 0 : index
    %187 = vector.load %arg1[%c14, %c0_119, %c0_120] : memref<32x4x128xf32, #tpu.memory_space<vmem>>, vector<1x4x128xf32>
    %188 = vector.shape_cast %187 : vector<1x4x128xf32> to vector<4x128xf32>
    %189 = arith.addf %176, %188 : vector<4x128xf32>
    %cst_121 = arith.constant dense<0.000000e+00> : vector<64x128xf32>
    %190 = tpu.matmul %1, %188, %cst_121 {dimension_numbers = #tpu.dot_dimension_numbers<[1], [0], [0], [1], [0, 0, 1, 1], [], []>} : vector<64x4xf32>, vector<4x128xf32>, vector<64x128xf32> -> vector<64x128xf32>
    %c14_i32 = arith.constant 14 : i32
    %191 = vector.broadcast %c14_i32 : i32 to vector<1x128xi32>
    %192 = arith.cmpi sgt, %0, %191 : vector<1x128xi32>
    %c0_122 = arith.constant 0 : index
    %c0_123 = arith.constant 0 : index
    %193 = vector.load %arg9[%c0_122, %c0_123] : memref<64x128xf32, #tpu.memory_space<vmem>>, vector<64x128xf32>
    %cst_124 = arith.constant -1.000000e+30 : f32
    %194 = vector.shape_cast %192 : vector<1x128xi1> to vector<1x128xi1>
    %195 = vector.broadcast %194 : vector<1x128xi1> to vector<64x128xi1>
    %196 = vector.broadcast %cst_124 : f32 to vector<64x128xf32>
    %197 = arith.select %195, %190, %196 : vector<64x128xi1>, vector<64x128xf32>
    %198 = arith.maximumf %193, %197 : vector<64x128xf32>
    %c0_125 = arith.constant 0 : index
    %c0_126 = arith.constant 0 : index
    %199 = vector.load %arg9[%c0_125, %c0_126] : memref<64x128xf32, #tpu.memory_space<vmem>>, vector<64x128xf32>
    tpu.vector_store %arg9[%c0_125, %c0_126], %198 {strides = array<i32>} : memref<64x128xf32, #tpu.memory_space<vmem>>, vector<64x128xf32>,
    %c15 = arith.constant 15 : index
    %c0_127 = arith.constant 0 : index
    %c0_128 = arith.constant 0 : index
    %200 = vector.load %arg1[%c15, %c0_127, %c0_128] : memref<32x4x128xf32, #tpu.memory_space<vmem>>, vector<1x4x128xf32>
    %201 = vector.shape_cast %200 : vector<1x4x128xf32> to vector<4x128xf32>
    %202 = arith.addf %189, %201 : vector<4x128xf32>
    %cst_129 = arith.constant dense<0.000000e+00> : vector<64x128xf32>
    %203 = tpu.matmul %1, %201, %cst_129 {dimension_numbers = #tpu.dot_dimension_numbers<[1], [0], [0], [1], [0, 0, 1, 1], [], []>} : vector<64x4xf32>, vector<4x128xf32>, vector<64x128xf32> -> vector<64x128xf32>
    %c15_i32 = arith.constant 15 : i32
    %204 = vector.broadcast %c15_i32 : i32 to vector<1x128xi32>
    %205 = arith.cmpi sgt, %0, %204 : vector<1x128xi32>
    %c0_130 = arith.constant 0 : index
    %c0_131 = arith.constant 0 : index
    %206 = vector.load %arg9[%c0_130, %c0_131] : memref<64x128xf32, #tpu.memory_space<vmem>>, vector<64x128xf32>
    %cst_132 = arith.constant -1.000000e+30 : f32
    %207 = vector.shape_cast %205 : vector<1x128xi1> to vector<1x128xi1>
    %208 = vector.broadcast %207 : vector<1x128xi1> to vector<64x128xi1>
    %209 = vector.broadcast %cst_132 : f32 to vector<64x128xf32>
    %210 = arith.select %208, %203, %209 : vector<64x128xi1>, vector<64x128xf32>
    %211 = arith.maximumf %206, %210 : vector<64x128xf32>
    %c0_133 = arith.constant 0 : index
    %c0_134 = arith.constant 0 : index
    %212 = vector.load %arg9[%c0_133, %c0_134] : memref<64x128xf32, #tpu.memory_space<vmem>>, vector<64x128xf32>
    tpu.vector_store %arg9[%c0_133, %c0_134], %211 {strides = array<i32>} : memref<64x128xf32, #tpu.memory_space<vmem>>, vector<64x128xf32>,
    %c16 = arith.constant 16 : index
    %c0_135 = arith.constant 0 : index
    %c0_136 = arith.constant 0 : index
    %213 = vector.load %arg1[%c16, %c0_135, %c0_136] : memref<32x4x128xf32, #tpu.memory_space<vmem>>, vector<1x4x128xf32>
    %214 = vector.shape_cast %213 : vector<1x4x128xf32> to vector<4x128xf32>
    %215 = arith.addf %202, %214 : vector<4x128xf32>
    %cst_137 = arith.constant dense<0.000000e+00> : vector<64x128xf32>
    %216 = tpu.matmul %1, %214, %cst_137 {dimension_numbers = #tpu.dot_dimension_numbers<[1], [0], [0], [1], [0, 0, 1, 1], [], []>} : vector<64x4xf32>, vector<4x128xf32>, vector<64x128xf32> -> vector<64x128xf32>
    %c16_i32 = arith.constant 16 : i32
    %217 = vector.broadcast %c16_i32 : i32 to vector<1x128xi32>
    %218 = arith.cmpi sgt, %0, %217 : vector<1x128xi32>
    %c0_138 = arith.constant 0 : index
    %c0_139 = arith.constant 0 : index
    %219 = vector.load %arg9[%c0_138, %c0_139] : memref<64x128xf32, #tpu.memory_space<vmem>>, vector<64x128xf32>
    %cst_140 = arith.constant -1.000000e+30 : f32
    %220 = vector.shape_cast %218 : vector<1x128xi1> to vector<1x128xi1>
    %221 = vector.broadcast %220 : vector<1x128xi1> to vector<64x128xi1>
    %222 = vector.broadcast %cst_140 : f32 to vector<64x128xf32>
    %223 = arith.select %221, %216, %222 : vector<64x128xi1>, vector<64x128xf32>
    %224 = arith.maximumf %219, %223 : vector<64x128xf32>
    %c0_141 = arith.constant 0 : index
    %c0_142 = arith.constant 0 : index
    %225 = vector.load %arg9[%c0_141, %c0_142] : memref<64x128xf32, #tpu.memory_space<vmem>>, vector<64x128xf32>
    tpu.vector_store %arg9[%c0_141, %c0_142], %224 {strides = array<i32>} : memref<64x128xf32, #tpu.memory_space<vmem>>, vector<64x128xf32>,
    %c17 = arith.constant 17 : index
    %c0_143 = arith.constant 0 : index
    %c0_144 = arith.constant 0 : index
    %226 = vector.load %arg1[%c17, %c0_143, %c0_144] : memref<32x4x128xf32, #tpu.memory_space<vmem>>, vector<1x4x128xf32>
    %227 = vector.shape_cast %226 : vector<1x4x128xf32> to vector<4x128xf32>
    %228 = arith.addf %215, %227 : vector<4x128xf32>
    %cst_145 = arith.constant dense<0.000000e+00> : vector<64x128xf32>
    %229 = tpu.matmul %1, %227, %cst_145 {dimension_numbers = #tpu.dot_dimension_numbers<[1], [0], [0], [1], [0, 0, 1, 1], [], []>} : vector<64x4xf32>, vector<4x128xf32>, vector<64x128xf32> -> vector<64x128xf32>
    %c17_i32 = arith.constant 17 : i32
    %230 = vector.broadcast %c17_i32 : i32 to vector<1x128xi32>
    %231 = arith.cmpi sgt, %0, %230 : vector<1x128xi32>
    %c0_146 = arith.constant 0 : index
    %c0_147 = arith.constant 0 : index
    %232 = vector.load %arg9[%c0_146, %c0_147] : memref<64x128xf32, #tpu.memory_space<vmem>>, vector<64x128xf32>
    %cst_148 = arith.constant -1.000000e+30 : f32
    %233 = vector.shape_cast %231 : vector<1x128xi1> to vector<1x128xi1>
    %234 = vector.broadcast %233 : vector<1x128xi1> to vector<64x128xi1>
    %235 = vector.broadcast %cst_148 : f32 to vector<64x128xf32>
    %236 = arith.select %234, %229, %235 : vector<64x128xi1>, vector<64x128xf32>
    %237 = arith.maximumf %232, %236 : vector<64x128xf32>
    %c0_149 = arith.constant 0 : index
    %c0_150 = arith.constant 0 : index
    %238 = vector.load %arg9[%c0_149, %c0_150] : memref<64x128xf32, #tpu.memory_space<vmem>>, vector<64x128xf32>
    tpu.vector_store %arg9[%c0_149, %c0_150], %237 {strides = array<i32>} : memref<64x128xf32, #tpu.memory_space<vmem>>, vector<64x128xf32>,
    %c18 = arith.constant 18 : index
    %c0_151 = arith.constant 0 : index
    %c0_152 = arith.constant 0 : index
    %239 = vector.load %arg1[%c18, %c0_151, %c0_152] : memref<32x4x128xf32, #tpu.memory_space<vmem>>, vector<1x4x128xf32>
    %240 = vector.shape_cast %239 : vector<1x4x128xf32> to vector<4x128xf32>
    %241 = arith.addf %228, %240 : vector<4x128xf32>
    %cst_153 = arith.constant dense<0.000000e+00> : vector<64x128xf32>
    %242 = tpu.matmul %1, %240, %cst_153 {dimension_numbers = #tpu.dot_dimension_numbers<[1], [0], [0], [1], [0, 0, 1, 1], [], []>} : vector<64x4xf32>, vector<4x128xf32>, vector<64x128xf32> -> vector<64x128xf32>
    %c18_i32 = arith.constant 18 : i32
    %243 = vector.broadcast %c18_i32 : i32 to vector<1x128xi32>
    %244 = arith.cmpi sgt, %0, %243 : vector<1x128xi32>
    %c0_154 = arith.constant 0 : index
    %c0_155 = arith.constant 0 : index
    %245 = vector.load %arg9[%c0_154, %c0_155] : memref<64x128xf32, #tpu.memory_space<vmem>>, vector<64x128xf32>
    %cst_156 = arith.constant -1.000000e+30 : f32
    %246 = vector.shape_cast %244 : vector<1x128xi1> to vector<1x128xi1>
    %247 = vector.broadcast %246 : vector<1x128xi1> to vector<64x128xi1>
    %248 = vector.broadcast %cst_156 : f32 to vector<64x128xf32>
    %249 = arith.select %247, %242, %248 : vector<64x128xi1>, vector<64x128xf32>
    %250 = arith.maximumf %245, %249 : vector<64x128xf32>
    %c0_157 = arith.constant 0 : index
    %c0_158 = arith.constant 0 : index
    %251 = vector.load %arg9[%c0_157, %c0_158] : memref<64x128xf32, #tpu.memory_space<vmem>>, vector<64x128xf32>
    tpu.vector_store %arg9[%c0_157, %c0_158], %250 {strides = array<i32>} : memref<64x128xf32, #tpu.memory_space<vmem>>, vector<64x128xf32>,
    %c19 = arith.constant 19 : index
    %c0_159 = arith.constant 0 : index
    %c0_160 = arith.constant 0 : index
    %252 = vector.load %arg1[%c19, %c0_159, %c0_160] : memref<32x4x128xf32, #tpu.memory_space<vmem>>, vector<1x4x128xf32>
    %253 = vector.shape_cast %252 : vector<1x4x128xf32> to vector<4x128xf32>
    %254 = arith.addf %241, %253 : vector<4x128xf32>
    %cst_161 = arith.constant dense<0.000000e+00> : vector<64x128xf32>
    %255 = tpu.matmul %1, %253, %cst_161 {dimension_numbers = #tpu.dot_dimension_numbers<[1], [0], [0], [1], [0, 0, 1, 1], [], []>} : vector<64x4xf32>, vector<4x128xf32>, vector<64x128xf32> -> vector<64x128xf32>
    %c19_i32 = arith.constant 19 : i32
    %256 = vector.broadcast %c19_i32 : i32 to vector<1x128xi32>
    %257 = arith.cmpi sgt, %0, %256 : vector<1x128xi32>
    %c0_162 = arith.constant 0 : index
    %c0_163 = arith.constant 0 : index
    %258 = vector.load %arg9[%c0_162, %c0_163] : memref<64x128xf32, #tpu.memory_space<vmem>>, vector<64x128xf32>
    %cst_164 = arith.constant -1.000000e+30 : f32
    %259 = vector.shape_cast %257 : vector<1x128xi1> to vector<1x128xi1>
    %260 = vector.broadcast %259 : vector<1x128xi1> to vector<64x128xi1>
    %261 = vector.broadcast %cst_164 : f32 to vector<64x128xf32>
    %262 = arith.select %260, %255, %261 : vector<64x128xi1>, vector<64x128xf32>
    %263 = arith.maximumf %258, %262 : vector<64x128xf32>
    %c0_165 = arith.constant 0 : index
    %c0_166 = arith.constant 0 : index
    %264 = vector.load %arg9[%c0_165, %c0_166] : memref<64x128xf32, #tpu.memory_space<vmem>>, vector<64x128xf32>
    tpu.vector_store %arg9[%c0_165, %c0_166], %263 {strides = array<i32>} : memref<64x128xf32, #tpu.memory_space<vmem>>, vector<64x128xf32>,
    %c20 = arith.constant 20 : index
    %c0_167 = arith.constant 0 : index
    %c0_168 = arith.constant 0 : index
    %265 = vector.load %arg1[%c20, %c0_167, %c0_168] : memref<32x4x128xf32, #tpu.memory_space<vmem>>, vector<1x4x128xf32>
    %266 = vector.shape_cast %265 : vector<1x4x128xf32> to vector<4x128xf32>
    %267 = arith.addf %254, %266 : vector<4x128xf32>
    %cst_169 = arith.constant dense<0.000000e+00> : vector<64x128xf32>
    %268 = tpu.matmul %1, %266, %cst_169 {dimension_numbers = #tpu.dot_dimension_numbers<[1], [0], [0], [1], [0, 0, 1, 1], [], []>} : vector<64x4xf32>, vector<4x128xf32>, vector<64x128xf32> -> vector<64x128xf32>
    %c20_i32 = arith.constant 20 : i32
    %269 = vector.broadcast %c20_i32 : i32 to vector<1x128xi32>
    %270 = arith.cmpi sgt, %0, %269 : vector<1x128xi32>
    %c0_170 = arith.constant 0 : index
    %c0_171 = arith.constant 0 : index
    %271 = vector.load %arg9[%c0_170, %c0_171] : memref<64x128xf32, #tpu.memory_space<vmem>>, vector<64x128xf32>
    %cst_172 = arith.constant -1.000000e+30 : f32
    %272 = vector.shape_cast %270 : vector<1x128xi1> to vector<1x128xi1>
    %273 = vector.broadcast %272 : vector<1x128xi1> to vector<64x128xi1>
    %274 = vector.broadcast %cst_172 : f32 to vector<64x128xf32>
    %275 = arith.select %273, %268, %274 : vector<64x128xi1>, vector<64x128xf32>
    %276 = arith.maximumf %271, %275 : vector<64x128xf32>
    %c0_173 = arith.constant 0 : index
    %c0_174 = arith.constant 0 : index
    %277 = vector.load %arg9[%c0_173, %c0_174] : memref<64x128xf32, #tpu.memory_space<vmem>>, vector<64x128xf32>
    tpu.vector_store %arg9[%c0_173, %c0_174], %276 {strides = array<i32>} : memref<64x128xf32, #tpu.memory_space<vmem>>, vector<64x128xf32>,
    %c21 = arith.constant 21 : index
    %c0_175 = arith.constant 0 : index
    %c0_176 = arith.constant 0 : index
    %278 = vector.load %arg1[%c21, %c0_175, %c0_176] : memref<32x4x128xf32, #tpu.memory_space<vmem>>, vector<1x4x128xf32>
    %279 = vector.shape_cast %278 : vector<1x4x128xf32> to vector<4x128xf32>
    %280 = arith.addf %267, %279 : vector<4x128xf32>
    %cst_177 = arith.constant dense<0.000000e+00> : vector<64x128xf32>
    %281 = tpu.matmul %1, %279, %cst_177 {dimension_numbers = #tpu.dot_dimension_numbers<[1], [0], [0], [1], [0, 0, 1, 1], [], []>} : vector<64x4xf32>, vector<4x128xf32>, vector<64x128xf32> -> vector<64x128xf32>
    %c21_i32 = arith.constant 21 : i32
    %282 = vector.broadcast %c21_i32 : i32 to vector<1x128xi32>
    %283 = arith.cmpi sgt, %0, %282 : vector<1x128xi32>
    %c0_178 = arith.constant 0 : index
    %c0_179 = arith.constant 0 : index
    %284 = vector.load %arg9[%c0_178, %c0_179] : memref<64x128xf32, #tpu.memory_space<vmem>>, vector<64x128xf32>
    %cst_180 = arith.constant -1.000000e+30 : f32
    %285 = vector.shape_cast %283 : vector<1x128xi1> to vector<1x128xi1>
    %286 = vector.broadcast %285 : vector<1x128xi1> to vector<64x128xi1>
    %287 = vector.broadcast %cst_180 : f32 to vector<64x128xf32>
    %288 = arith.select %286, %281, %287 : vector<64x128xi1>, vector<64x128xf32>
    %289 = arith.maximumf %284, %288 : vector<64x128xf32>
    %c0_181 = arith.constant 0 : index
    %c0_182 = arith.constant 0 : index
    %290 = vector.load %arg9[%c0_181, %c0_182] : memref<64x128xf32, #tpu.memory_space<vmem>>, vector<64x128xf32>
    tpu.vector_store %arg9[%c0_181, %c0_182], %289 {strides = array<i32>} : memref<64x128xf32, #tpu.memory_space<vmem>>, vector<64x128xf32>,
    %c22 = arith.constant 22 : index
    %c0_183 = arith.constant 0 : index
    %c0_184 = arith.constant 0 : index
    %291 = vector.load %arg1[%c22, %c0_183, %c0_184] : memref<32x4x128xf32, #tpu.memory_space<vmem>>, vector<1x4x128xf32>
    %292 = vector.shape_cast %291 : vector<1x4x128xf32> to vector<4x128xf32>
    %293 = arith.addf %280, %292 : vector<4x128xf32>
    %cst_185 = arith.constant dense<0.000000e+00> : vector<64x128xf32>
    %294 = tpu.matmul %1, %292, %cst_185 {dimension_numbers = #tpu.dot_dimension_numbers<[1], [0], [0], [1], [0, 0, 1, 1], [], []>} : vector<64x4xf32>, vector<4x128xf32>, vector<64x128xf32> -> vector<64x128xf32>
    %c22_i32 = arith.constant 22 : i32
    %295 = vector.broadcast %c22_i32 : i32 to vector<1x128xi32>
    %296 = arith.cmpi sgt, %0, %295 : vector<1x128xi32>
    %c0_186 = arith.constant 0 : index
    %c0_187 = arith.constant 0 : index
    %297 = vector.load %arg9[%c0_186, %c0_187] : memref<64x128xf32, #tpu.memory_space<vmem>>, vector<64x128xf32>
    %cst_188 = arith.constant -1.000000e+30 : f32
    %298 = vector.shape_cast %296 : vector<1x128xi1> to vector<1x128xi1>
    %299 = vector.broadcast %298 : vector<1x128xi1> to vector<64x128xi1>
    %300 = vector.broadcast %cst_188 : f32 to vector<64x128xf32>
    %301 = arith.select %299, %294, %300 : vector<64x128xi1>, vector<64x128xf32>
    %302 = arith.maximumf %297, %301 : vector<64x128xf32>
    %c0_189 = arith.constant 0 : index
    %c0_190 = arith.constant 0 : index
    %303 = vector.load %arg9[%c0_189, %c0_190] : memref<64x128xf32, #tpu.memory_space<vmem>>, vector<64x128xf32>
    tpu.vector_store %arg9[%c0_189, %c0_190], %302 {strides = array<i32>} : memref<64x128xf32, #tpu.memory_space<vmem>>, vector<64x128xf32>,
    %c23 = arith.constant 23 : index
    %c0_191 = arith.constant 0 : index
    %c0_192 = arith.constant 0 : index
    %304 = vector.load %arg1[%c23, %c0_191, %c0_192] : memref<32x4x128xf32, #tpu.memory_space<vmem>>, vector<1x4x128xf32>
    %305 = vector.shape_cast %304 : vector<1x4x128xf32> to vector<4x128xf32>
    %306 = arith.addf %293, %305 : vector<4x128xf32>
    %cst_193 = arith.constant dense<0.000000e+00> : vector<64x128xf32>
    %307 = tpu.matmul %1, %305, %cst_193 {dimension_numbers = #tpu.dot_dimension_numbers<[1], [0], [0], [1], [0, 0, 1, 1], [], []>} : vector<64x4xf32>, vector<4x128xf32>, vector<64x128xf32> -> vector<64x128xf32>
    %c23_i32 = arith.constant 23 : i32
    %308 = vector.broadcast %c23_i32 : i32 to vector<1x128xi32>
    %309 = arith.cmpi sgt, %0, %308 : vector<1x128xi32>
    %c0_194 = arith.constant 0 : index
    %c0_195 = arith.constant 0 : index
    %310 = vector.load %arg9[%c0_194, %c0_195] : memref<64x128xf32, #tpu.memory_space<vmem>>, vector<64x128xf32>
    %cst_196 = arith.constant -1.000000e+30 : f32
    %311 = vector.shape_cast %309 : vector<1x128xi1> to vector<1x128xi1>
    %312 = vector.broadcast %311 : vector<1x128xi1> to vector<64x128xi1>
    %313 = vector.broadcast %cst_196 : f32 to vector<64x128xf32>
    %314 = arith.select %312, %307, %313 : vector<64x128xi1>, vector<64x128xf32>
    %315 = arith.maximumf %310, %314 : vector<64x128xf32>
    %c0_197 = arith.constant 0 : index
    %c0_198 = arith.constant 0 : index
    %316 = vector.load %arg9[%c0_197, %c0_198] : memref<64x128xf32, #tpu.memory_space<vmem>>, vector<64x128xf32>
    tpu.vector_store %arg9[%c0_197, %c0_198], %315 {strides = array<i32>} : memref<64x128xf32, #tpu.memory_space<vmem>>, vector<64x128xf32>,
    %c24 = arith.constant 24 : index
    %c0_199 = arith.constant 0 : index
    %c0_200 = arith.constant 0 : index
    %317 = vector.load %arg1[%c24, %c0_199, %c0_200] : memref<32x4x128xf32, #tpu.memory_space<vmem>>, vector<1x4x128xf32>
    %318 = vector.shape_cast %317 : vector<1x4x128xf32> to vector<4x128xf32>
    %319 = arith.addf %306, %318 : vector<4x128xf32>
    %cst_201 = arith.constant dense<0.000000e+00> : vector<64x128xf32>
    %320 = tpu.matmul %1, %318, %cst_201 {dimension_numbers = #tpu.dot_dimension_numbers<[1], [0], [0], [1], [0, 0, 1, 1], [], []>} : vector<64x4xf32>, vector<4x128xf32>, vector<64x128xf32> -> vector<64x128xf32>
    %c24_i32 = arith.constant 24 : i32
    %321 = vector.broadcast %c24_i32 : i32 to vector<1x128xi32>
    %322 = arith.cmpi sgt, %0, %321 : vector<1x128xi32>
    %c0_202 = arith.constant 0 : index
    %c0_203 = arith.constant 0 : index
    %323 = vector.load %arg9[%c0_202, %c0_203] : memref<64x128xf32, #tpu.memory_space<vmem>>, vector<64x128xf32>
    %cst_204 = arith.constant -1.000000e+30 : f32
    %324 = vector.shape_cast %322 : vector<1x128xi1> to vector<1x128xi1>
    %325 = vector.broadcast %324 : vector<1x128xi1> to vector<64x128xi1>
    %326 = vector.broadcast %cst_204 : f32 to vector<64x128xf32>
    %327 = arith.select %325, %320, %326 : vector<64x128xi1>, vector<64x128xf32>
    %328 = arith.maximumf %323, %327 : vector<64x128xf32>
    %c0_205 = arith.constant 0 : index
    %c0_206 = arith.constant 0 : index
    %329 = vector.load %arg9[%c0_205, %c0_206] : memref<64x128xf32, #tpu.memory_space<vmem>>, vector<64x128xf32>
    tpu.vector_store %arg9[%c0_205, %c0_206], %328 {strides = array<i32>} : memref<64x128xf32, #tpu.memory_space<vmem>>, vector<64x128xf32>,
    %c25 = arith.constant 25 : index
    %c0_207 = arith.constant 0 : index
    %c0_208 = arith.constant 0 : index
    %330 = vector.load %arg1[%c25, %c0_207, %c0_208] : memref<32x4x128xf32, #tpu.memory_space<vmem>>, vector<1x4x128xf32>
    %331 = vector.shape_cast %330 : vector<1x4x128xf32> to vector<4x128xf32>
    %332 = arith.addf %319, %331 : vector<4x128xf32>
    %cst_209 = arith.constant dense<0.000000e+00> : vector<64x128xf32>
    %333 = tpu.matmul %1, %331, %cst_209 {dimension_numbers = #tpu.dot_dimension_numbers<[1], [0], [0], [1], [0, 0, 1, 1], [], []>} : vector<64x4xf32>, vector<4x128xf32>, vector<64x128xf32> -> vector<64x128xf32>
    %c25_i32 = arith.constant 25 : i32
    %334 = vector.broadcast %c25_i32 : i32 to vector<1x128xi32>
    %335 = arith.cmpi sgt, %0, %334 : vector<1x128xi32>
    %c0_210 = arith.constant 0 : index
    %c0_211 = arith.constant 0 : index
    %336 = vector.load %arg9[%c0_210, %c0_211] : memref<64x128xf32, #tpu.memory_space<vmem>>, vector<64x128xf32>
    %cst_212 = arith.constant -1.000000e+30 : f32
    %337 = vector.shape_cast %335 : vector<1x128xi1> to vector<1x128xi1>
    %338 = vector.broadcast %337 : vector<1x128xi1> to vector<64x128xi1>
    %339 = vector.broadcast %cst_212 : f32 to vector<64x128xf32>
    %340 = arith.select %338, %333, %339 : vector<64x128xi1>, vector<64x128xf32>
    %341 = arith.maximumf %336, %340 : vector<64x128xf32>
    %c0_213 = arith.constant 0 : index
    %c0_214 = arith.constant 0 : index
    %342 = vector.load %arg9[%c0_213, %c0_214] : memref<64x128xf32, #tpu.memory_space<vmem>>, vector<64x128xf32>
    tpu.vector_store %arg9[%c0_213, %c0_214], %341 {strides = array<i32>} : memref<64x128xf32, #tpu.memory_space<vmem>>, vector<64x128xf32>,
    %c26 = arith.constant 26 : index
    %c0_215 = arith.constant 0 : index
    %c0_216 = arith.constant 0 : index
    %343 = vector.load %arg1[%c26, %c0_215, %c0_216] : memref<32x4x128xf32, #tpu.memory_space<vmem>>, vector<1x4x128xf32>
    %344 = vector.shape_cast %343 : vector<1x4x128xf32> to vector<4x128xf32>
    %345 = arith.addf %332, %344 : vector<4x128xf32>
    %cst_217 = arith.constant dense<0.000000e+00> : vector<64x128xf32>
    %346 = tpu.matmul %1, %344, %cst_217 {dimension_numbers = #tpu.dot_dimension_numbers<[1], [0], [0], [1], [0, 0, 1, 1], [], []>} : vector<64x4xf32>, vector<4x128xf32>, vector<64x128xf32> -> vector<64x128xf32>
    %c26_i32 = arith.constant 26 : i32
    %347 = vector.broadcast %c26_i32 : i32 to vector<1x128xi32>
    %348 = arith.cmpi sgt, %0, %347 : vector<1x128xi32>
    %c0_218 = arith.constant 0 : index
    %c0_219 = arith.constant 0 : index
    %349 = vector.load %arg9[%c0_218, %c0_219] : memref<64x128xf32, #tpu.memory_space<vmem>>, vector<64x128xf32>
    %cst_220 = arith.constant -1.000000e+30 : f32
    %350 = vector.shape_cast %348 : vector<1x128xi1> to vector<1x128xi1>
    %351 = vector.broadcast %350 : vector<1x128xi1> to vector<64x128xi1>
    %352 = vector.broadcast %cst_220 : f32 to vector<64x128xf32>
    %353 = arith.select %351, %346, %352 : vector<64x128xi1>, vector<64x128xf32>
    %354 = arith.maximumf %349, %353 : vector<64x128xf32>
    %c0_221 = arith.constant 0 : index
    %c0_222 = arith.constant 0 : index
    %355 = vector.load %arg9[%c0_221, %c0_222] : memref<64x128xf32, #tpu.memory_space<vmem>>, vector<64x128xf32>
    tpu.vector_store %arg9[%c0_221, %c0_222], %354 {strides = array<i32>} : memref<64x128xf32, #tpu.memory_space<vmem>>, vector<64x128xf32>,
    %c27 = arith.constant 27 : index
    %c0_223 = arith.constant 0 : index
    %c0_224 = arith.constant 0 : index
    %356 = vector.load %arg1[%c27, %c0_223, %c0_224] : memref<32x4x128xf32, #tpu.memory_space<vmem>>, vector<1x4x128xf32>
    %357 = vector.shape_cast %356 : vector<1x4x128xf32> to vector<4x128xf32>
    %358 = arith.addf %345, %357 : vector<4x128xf32>
    %cst_225 = arith.constant dense<0.000000e+00> : vector<64x128xf32>
    %359 = tpu.matmul %1, %357, %cst_225 {dimension_numbers = #tpu.dot_dimension_numbers<[1], [0], [0], [1], [0, 0, 1, 1], [], []>} : vector<64x4xf32>, vector<4x128xf32>, vector<64x128xf32> -> vector<64x128xf32>
    %c27_i32 = arith.constant 27 : i32
    %360 = vector.broadcast %c27_i32 : i32 to vector<1x128xi32>
    %361 = arith.cmpi sgt, %0, %360 : vector<1x128xi32>
    %c0_226 = arith.constant 0 : index
    %c0_227 = arith.constant 0 : index
    %362 = vector.load %arg9[%c0_226, %c0_227] : memref<64x128xf32, #tpu.memory_space<vmem>>, vector<64x128xf32>
    %cst_228 = arith.constant -1.000000e+30 : f32
    %363 = vector.shape_cast %361 : vector<1x128xi1> to vector<1x128xi1>
    %364 = vector.broadcast %363 : vector<1x128xi1> to vector<64x128xi1>
    %365 = vector.broadcast %cst_228 : f32 to vector<64x128xf32>
    %366 = arith.select %364, %359, %365 : vector<64x128xi1>, vector<64x128xf32>
    %367 = arith.maximumf %362, %366 : vector<64x128xf32>
    %c0_229 = arith.constant 0 : index
    %c0_230 = arith.constant 0 : index
    %368 = vector.load %arg9[%c0_229, %c0_230] : memref<64x128xf32, #tpu.memory_space<vmem>>, vector<64x128xf32>
    tpu.vector_store %arg9[%c0_229, %c0_230], %367 {strides = array<i32>} : memref<64x128xf32, #tpu.memory_space<vmem>>, vector<64x128xf32>,
    %c28 = arith.constant 28 : index
    %c0_231 = arith.constant 0 : index
    %c0_232 = arith.constant 0 : index
    %369 = vector.load %arg1[%c28, %c0_231, %c0_232] : memref<32x4x128xf32, #tpu.memory_space<vmem>>, vector<1x4x128xf32>
    %370 = vector.shape_cast %369 : vector<1x4x128xf32> to vector<4x128xf32>
    %371 = arith.addf %358, %370 : vector<4x128xf32>
    %cst_233 = arith.constant dense<0.000000e+00> : vector<64x128xf32>
    %372 = tpu.matmul %1, %370, %cst_233 {dimension_numbers = #tpu.dot_dimension_numbers<[1], [0], [0], [1], [0, 0, 1, 1], [], []>} : vector<64x4xf32>, vector<4x128xf32>, vector<64x128xf32> -> vector<64x128xf32>
    %c28_i32 = arith.constant 28 : i32
    %373 = vector.broadcast %c28_i32 : i32 to vector<1x128xi32>
    %374 = arith.cmpi sgt, %0, %373 : vector<1x128xi32>
    %c0_234 = arith.constant 0 : index
    %c0_235 = arith.constant 0 : index
    %375 = vector.load %arg9[%c0_234, %c0_235] : memref<64x128xf32, #tpu.memory_space<vmem>>, vector<64x128xf32>
    %cst_236 = arith.constant -1.000000e+30 : f32
    %376 = vector.shape_cast %374 : vector<1x128xi1> to vector<1x128xi1>
    %377 = vector.broadcast %376 : vector<1x128xi1> to vector<64x128xi1>
    %378 = vector.broadcast %cst_236 : f32 to vector<64x128xf32>
    %379 = arith.select %377, %372, %378 : vector<64x128xi1>, vector<64x128xf32>
    %380 = arith.maximumf %375, %379 : vector<64x128xf32>
    %c0_237 = arith.constant 0 : index
    %c0_238 = arith.constant 0 : index
    %381 = vector.load %arg9[%c0_237, %c0_238] : memref<64x128xf32, #tpu.memory_space<vmem>>, vector<64x128xf32>
    tpu.vector_store %arg9[%c0_237, %c0_238], %380 {strides = array<i32>} : memref<64x128xf32, #tpu.memory_space<vmem>>, vector<64x128xf32>,
    %c29 = arith.constant 29 : index
    %c0_239 = arith.constant 0 : index
    %c0_240 = arith.constant 0 : index
    %382 = vector.load %arg1[%c29, %c0_239, %c0_240] : memref<32x4x128xf32, #tpu.memory_space<vmem>>, vector<1x4x128xf32>
    %383 = vector.shape_cast %382 : vector<1x4x128xf32> to vector<4x128xf32>
    %384 = arith.addf %371, %383 : vector<4x128xf32>
    %cst_241 = arith.constant dense<0.000000e+00> : vector<64x128xf32>
    %385 = tpu.matmul %1, %383, %cst_241 {dimension_numbers = #tpu.dot_dimension_numbers<[1], [0], [0], [1], [0, 0, 1, 1], [], []>} : vector<64x4xf32>, vector<4x128xf32>, vector<64x128xf32> -> vector<64x128xf32>
    %c29_i32 = arith.constant 29 : i32
    %386 = vector.broadcast %c29_i32 : i32 to vector<1x128xi32>
    %387 = arith.cmpi sgt, %0, %386 : vector<1x128xi32>
    %c0_242 = arith.constant 0 : index
    %c0_243 = arith.constant 0 : index
    %388 = vector.load %arg9[%c0_242, %c0_243] : memref<64x128xf32, #tpu.memory_space<vmem>>, vector<64x128xf32>
    %cst_244 = arith.constant -1.000000e+30 : f32
    %389 = vector.shape_cast %387 : vector<1x128xi1> to vector<1x128xi1>
    %390 = vector.broadcast %389 : vector<1x128xi1> to vector<64x128xi1>
    %391 = vector.broadcast %cst_244 : f32 to vector<64x128xf32>
    %392 = arith.select %390, %385, %391 : vector<64x128xi1>, vector<64x128xf32>
    %393 = arith.maximumf %388, %392 : vector<64x128xf32>
    %c0_245 = arith.constant 0 : index
    %c0_246 = arith.constant 0 : index
    %394 = vector.load %arg9[%c0_245, %c0_246] : memref<64x128xf32, #tpu.memory_space<vmem>>, vector<64x128xf32>
    tpu.vector_store %arg9[%c0_245, %c0_246], %393 {strides = array<i32>} : memref<64x128xf32, #tpu.memory_space<vmem>>, vector<64x128xf32>,
    %c30 = arith.constant 30 : index
    %c0_247 = arith.constant 0 : index
    %c0_248 = arith.constant 0 : index
    %395 = vector.load %arg1[%c30, %c0_247, %c0_248] : memref<32x4x128xf32, #tpu.memory_space<vmem>>, vector<1x4x128xf32>
    %396 = vector.shape_cast %395 : vector<1x4x128xf32> to vector<4x128xf32>
    %397 = arith.addf %384, %396 : vector<4x128xf32>
    %cst_249 = arith.constant dense<0.000000e+00> : vector<64x128xf32>
    %398 = tpu.matmul %1, %396, %cst_249 {dimension_numbers = #tpu.dot_dimension_numbers<[1], [0], [0], [1], [0, 0, 1, 1], [], []>} : vector<64x4xf32>, vector<4x128xf32>, vector<64x128xf32> -> vector<64x128xf32>
    %c30_i32 = arith.constant 30 : i32
    %399 = vector.broadcast %c30_i32 : i32 to vector<1x128xi32>
    %400 = arith.cmpi sgt, %0, %399 : vector<1x128xi32>
    %c0_250 = arith.constant 0 : index
    %c0_251 = arith.constant 0 : index
    %401 = vector.load %arg9[%c0_250, %c0_251] : memref<64x128xf32, #tpu.memory_space<vmem>>, vector<64x128xf32>
    %cst_252 = arith.constant -1.000000e+30 : f32
    %402 = vector.shape_cast %400 : vector<1x128xi1> to vector<1x128xi1>
    %403 = vector.broadcast %402 : vector<1x128xi1> to vector<64x128xi1>
    %404 = vector.broadcast %cst_252 : f32 to vector<64x128xf32>
    %405 = arith.select %403, %398, %404 : vector<64x128xi1>, vector<64x128xf32>
    %406 = arith.maximumf %401, %405 : vector<64x128xf32>
    %c0_253 = arith.constant 0 : index
    %c0_254 = arith.constant 0 : index
    %407 = vector.load %arg9[%c0_253, %c0_254] : memref<64x128xf32, #tpu.memory_space<vmem>>, vector<64x128xf32>
    tpu.vector_store %arg9[%c0_253, %c0_254], %406 {strides = array<i32>} : memref<64x128xf32, #tpu.memory_space<vmem>>, vector<64x128xf32>,
    %c31 = arith.constant 31 : index
    %c0_255 = arith.constant 0 : index
    %c0_256 = arith.constant 0 : index
    %408 = vector.load %arg1[%c31, %c0_255, %c0_256] : memref<32x4x128xf32, #tpu.memory_space<vmem>>, vector<1x4x128xf32>
    %409 = vector.shape_cast %408 : vector<1x4x128xf32> to vector<4x128xf32>
    %410 = arith.addf %397, %409 : vector<4x128xf32>
    %cst_257 = arith.constant dense<0.000000e+00> : vector<64x128xf32>
    %411 = tpu.matmul %1, %409, %cst_257 {dimension_numbers = #tpu.dot_dimension_numbers<[1], [0], [0], [1], [0, 0, 1, 1], [], []>} : vector<64x4xf32>, vector<4x128xf32>, vector<64x128xf32> -> vector<64x128xf32>
    %c31_i32 = arith.constant 31 : i32
    %412 = vector.broadcast %c31_i32 : i32 to vector<1x128xi32>
    %413 = arith.cmpi sgt, %0, %412 : vector<1x128xi32>
    %c0_258 = arith.constant 0 : index
    %c0_259 = arith.constant 0 : index
    %414 = vector.load %arg9[%c0_258, %c0_259] : memref<64x128xf32, #tpu.memory_space<vmem>>, vector<64x128xf32>
    %cst_260 = arith.constant -1.000000e+30 : f32
    %415 = vector.shape_cast %413 : vector<1x128xi1> to vector<1x128xi1>
    %416 = vector.broadcast %415 : vector<1x128xi1> to vector<64x128xi1>
    %417 = vector.broadcast %cst_260 : f32 to vector<64x128xf32>
    %418 = arith.select %416, %411, %417 : vector<64x128xi1>, vector<64x128xf32>
    %419 = arith.maximumf %414, %418 : vector<64x128xf32>
    %c0_261 = arith.constant 0 : index
    %c0_262 = arith.constant 0 : index
    %420 = vector.load %arg9[%c0_261, %c0_262] : memref<64x128xf32, #tpu.memory_space<vmem>>, vector<64x128xf32>
    tpu.vector_store %arg9[%c0_261, %c0_262], %419 {strides = array<i32>} : memref<64x128xf32, #tpu.memory_space<vmem>>, vector<64x128xf32>,
    %c0_263 = arith.constant 0 : index
    %c0_264 = arith.constant 0 : index
    %421 = vector.load %arg3[%c0_263, %c0_264] : memref<1x128xf32, #tpu.memory_space<vmem>>, vector<1x128xf32>
    %422 = vector.broadcast %421 : vector<1x128xf32> to vector<4x128xf32>
    %423 = arith.mulf %410, %422 : vector<4x128xf32>
    %c0_265 = arith.constant 0 : index
    %c0_266 = arith.constant 0 : index
    %424 = vector.load %arg6[%c0_265, %c0_266] : memref<64x4xf32, #tpu.memory_space<vmem>>, vector<64x4xf32>
    %cst_267 = arith.constant dense<0.000000e+00> : vector<64x128xf32>
    %425 = tpu.matmul %424, %423, %cst_267 {dimension_numbers = #tpu.dot_dimension_numbers<[1], [0], [0], [1], [0, 0, 1, 1], [], []>} : vector<64x4xf32>, vector<4x128xf32>, vector<64x128xf32> -> vector<64x128xf32>
    %c0_268 = arith.constant 0 : index
    %c0_269 = arith.constant 0 : index
    %426 = vector.load %arg7[%c0_268, %c0_269] : memref<64x3xf32, #tpu.memory_space<vmem>>, vector<64x3xf32>
    %c0_270 = arith.constant 0 : index
    %c0_271 = arith.constant 0 : index
    %427 = vector.load %arg4[%c0_270, %c0_271] : memref<3x128xf32, #tpu.memory_space<vmem>>, vector<3x128xf32>
    %cst_272 = arith.constant dense<0.000000e+00> : vector<64x128xf32>
    %428 = tpu.matmul %426, %427, %cst_272 {dimension_numbers = #tpu.dot_dimension_numbers<[1], [0], [0], [1], [0, 0, 1, 1], [], []>} : vector<64x3xf32>, vector<3x128xf32>, vector<64x128xf32> -> vector<64x128xf32>
    %429 = arith.addf %425, %428 : vector<64x128xf32>
    %c0_273 = arith.constant 0 : index
    %c0_274 = arith.constant 0 : index
    %430 = vector.load %arg8[%c0_273, %c0_274] : memref<64x1xf32, #tpu.memory_space<vmem>>, vector<64x1xf32>
    %431 = vector.broadcast %430 : vector<64x1xf32> to vector<64x128xf32>
    %432 = arith.addf %429, %431 : vector<64x128xf32>
    %c32_i32 = arith.constant 32 : i32
    %433 = vector.broadcast %c32_i32 : i32 to vector<1x128xi32>
    %434 = arith.cmpi slt, %0, %433 : vector<1x128xi32>
    %c0_275 = arith.constant 0 : index
    %c0_276 = arith.constant 0 : index
    %435 = vector.load %arg8[%c0_275, %c0_276] : memref<64x1xf32, #tpu.memory_space<vmem>>, vector<64x1xf32>
    %cst_277 = arith.constant -1.000000e+30 : f32
    %436 = vector.shape_cast %434 : vector<1x128xi1> to vector<1x128xi1>
    %437 = vector.broadcast %436 : vector<1x128xi1> to vector<64x128xi1>
    %438 = vector.shape_cast %435 : vector<64x1xf32> to vector<64x1xf32>
    %439 = vector.broadcast %438 : vector<64x1xf32> to vector<64x128xf32>
    %440 = vector.broadcast %cst_277 : f32 to vector<64x128xf32>
    %441 = arith.select %437, %439, %440 : vector<64x128xi1>, vector<64x128xf32>
    %c0_278 = arith.constant 0 : index
    %c0_279 = arith.constant 0 : index
    %442 = vector.load %arg9[%c0_278, %c0_279] : memref<64x128xf32, #tpu.memory_space<vmem>>, vector<64x128xf32>
    %443 = arith.addf %442, %432 : vector<64x128xf32>
    %444 = arith.maximumf %443, %441 : vector<64x128xf32>
    %cst_280 = arith.constant 0.000000e+00 : f32
    %445 = vector.broadcast %cst_280 : f32 to vector<64x128xf32>
    %446 = arith.maximumf %444, %445 : vector<64x128xf32>
    %c0_281 = arith.constant 0 : index
    %c0_282 = arith.constant 0 : index
    %447 = vector.load %arg9[%c0_281, %c0_282] : memref<64x128xf32, #tpu.memory_space<vmem>>, vector<64x128xf32>
    tpu.vector_store %arg9[%c0_281, %c0_282], %446 {strides = array<i32>} : memref<64x128xf32, #tpu.memory_space<vmem>>, vector<64x128xf32>,
    return
  }
  func.func @transform_0(%arg0: i32) -> (i32, i32, i32) {
    %c0_i32 = arith.constant 0 : i32
    %c0_i32_0 = arith.constant 0 : i32
    %c0_i32_1 = arith.constant 0 : i32
    return %c0_i32, %c0_i32_0, %arg0 : i32, i32, i32
  }
  func.func @transform_1(%arg0: i32) -> (i32, i32) {
    %c0_i32 = arith.constant 0 : i32
    %c0_i32_0 = arith.constant 0 : i32
    return %c0_i32, %arg0 : i32, i32
  }
  func.func @transform_2(%arg0: i32) -> (i32, i32) {
    %c0_i32 = arith.constant 0 : i32
    %c0_i32_0 = arith.constant 0 : i32
    return %c0_i32, %arg0 : i32, i32
  }
  func.func @transform_3(%arg0: i32) -> (i32, i32) {
    %c0_i32 = arith.constant 0 : i32
    %c0_i32_0 = arith.constant 0 : i32
    return %c0_i32, %arg0 : i32, i32
  }
  func.func @transform_4(%arg0: i32) -> (i32, i32) {
    %c0_i32 = arith.constant 0 : i32
    %c0_i32_0 = arith.constant 0 : i32
    %c0_i32_1 = arith.constant 0 : i32
    return %c0_i32, %c0_i32_0 : i32, i32
  }
  func.func @transform_5(%arg0: i32) -> (i32, i32) {
    %c0_i32 = arith.constant 0 : i32
    %c0_i32_0 = arith.constant 0 : i32
    %c0_i32_1 = arith.constant 0 : i32
    return %c0_i32, %c0_i32_0 : i32, i32
  }
  func.func @transform_6(%arg0: i32) -> (i32, i32) {
    %c0_i32 = arith.constant 0 : i32
    %c0_i32_0 = arith.constant 0 : i32
    %c0_i32_1 = arith.constant 0 : i32
    return %c0_i32, %c0_i32_0 : i32, i32
  }
  func.func @transform_7(%arg0: i32) -> (i32, i32) {
    %c0_i32 = arith.constant 0 : i32
    %c0_i32_0 = arith.constant 0 : i32
    %c0_i32_1 = arith.constant 0 : i32
    return %c0_i32, %c0_i32_0 : i32, i32
  }
  func.func @transform_8(%arg0: i32) -> (i32, i32) {
    %c0_i32 = arith.constant 0 : i32
    %c0_i32_0 = arith.constant 0 : i32
    return %c0_i32, %arg0 : i32, i32
  }
}

</mosaic_0001>

<bundles_post_ra>
// kernel: tpu_custom_call.1
= control target key start
LH: loop header
LB: loop body
LE: loop exit
PB: predicated region body
PF: predicated region fallthrough
CT: control target
= control target key end

     0   :  { %vm74_vm0 = vcmask 1043456   ;;  %vm49_vm1 = vcmask 31744   ;;  %s8544_s0 = inlined_call_operand.vmem [shape: f32[32,4,128], index: 0, kind: input, shape index: {}]   ;;  %s8545_s1 = inlined_call_operand.vmem [shape: s32[1,128], index: 1, kind: input, shape index: {}]   ;;  %s8546_s2 = inlined_call_operand.vmem [shape: f32[1,128], index: 2, kind: input, shape index: {}]   ;;  %s8547_s3 = inlined_call_operand.vmem [shape: f32[3,128], index: 3, kind: input, shape index: {}]   ;;  %s8548_s4 = inlined_call_operand.vmem [shape: f32[64,4], index: 4, kind: input, shape index: {}]   ;;  %s8549_s5 = inlined_call_operand.vmem [shape: f32[64,4], index: 5, kind: input, shape index: {}]   ;;  %s8550_s6 = inlined_call_operand.vmem [shape: f32[64,3], index: 6, kind: input, shape index: {}]   ;;  %s8551_s7 = inlined_call_operand.vmem [shape: f32[64,1], index: 7, kind: input, shape index: {}]   ;;  %s8552_s8 = inlined_call_operand.hbm [shape: f32[64,128], index: 8, kind: output, shape index: {}]  }
   0x1   :  { %v47_v0 = vld [vmem:[%s8544_s0] sm:$0xf]  ;;  %v6508_v2 = vld [vmem:[%s8548_s4 + $0x8] sm:$0xff]  ;;  %v6516_v3 = vld [vmem:[%s8548_s4 + $0x10] sm:$0xff] }
   0x2   :  { %v6503_v1 = vld [vmem:[%s8548_s4] sm:$0xff]  ;;  %5934 = vmatprep.subr.msk.mxu0 %vm74_vm0, %v47_v0  ;;  %v5309_v4 = vld [vmem:[%s8544_s0 + $0x8] sm:$0xf]  ;;  %v6535_v7 = vld [vmem:[%s8548_s4 + $0x18] sm:$0xff] }
   0x3   :  { %5936 = vmatprep.mubr.msk.f32.mxu0 %vm49_vm1, %v6503_v1  ;;  %5935 = vmatpush3.msk.msra.mxu0 %vm74_vm0, %v47_v0  ;;  %v5299_v5 = vld [vmem:[%s8544_s0 + $0x4] sm:$0xf]  ;;  %v5329_v8 = vld [vmem:[%s8544_s0 + $0x10] sm:$0xf]  ;;  %v5319_v11 = vld [vmem:[%s8544_s0 + $0xc] sm:$0xf] }
   0x4   :  { %5950 = vmatprep.mubr.msk.f32.mxu1 %vm49_vm1, %v6503_v1  ;;  %5937 = vmatmul.mubr.msk.f32.vlgmr.msra.gmra.mxu0 %vm49_vm1, %v6508_v2  ;;  %v224_v6 = vadd.f32 %v5299_v5, %v47_v0  ;;  %v6545_v10 = vld [vmem:[%s8548_s4 + $0x20] sm:$0xff]  ;;  %v6561_v13 = vld [vmem:[%s8548_s4 + $0x28] sm:$0xff]  ;;  %v6568_v14 = vld [vmem:[%s8548_s4 + $0x30] sm:$0xff] }
   0x5   :  { %5962 = vmatprep.subr.msk.mxu0 %vm74_vm0, %v5309_v4  ;;  %5939 = vmatprep.mubr.msk.f32.mxu0 %vm49_vm1, %v6516_v3 }
   0x6   :  { %5963 = vmatpush3.msk.msra.mxu0 %vm74_vm0, %v5309_v4  ;;  %5948 = vmatprep.subr.msk.mxu1 %vm74_vm0, %v5299_v5  ;;  %v374_v9 = vadd.f32 %v5309_v4, %v224_v6 }
   0x7   :  { %5990 = vmatprep.subr.msk.mxu0 %vm74_vm0, %v5329_v8  ;;  %5949 = vmatpush3.msk.msra.mxu1 %vm74_vm0, %v5299_v5 }
   0x8   :  { %5940 = vmatmul.mubr.msk.f32.gmra.mxu0 %vm49_vm1, %v6535_v7  ;;  %5951 = vmatmul.mubr.msk.f32.vlgmr.msra.gmra.mxu1 %vm49_vm1, %v6508_v2  ;;  %v524_v12 = vadd.f32 %v5319_v11, %v374_v9 }
   0x9   :  { %5942 = vmatprep.mubr.msk.f32.mxu0 %vm49_vm1, %v6545_v10  ;;  %5953 = vmatprep.mubr.msk.f32.mxu1 %vm49_vm1, %v6516_v3 }
   0xa   :  { %5976 = vmatprep.subr.msk.mxu1 %vm74_vm0, %v5319_v11  ;;  %v674_v15 = vadd.f32 %v5329_v8, %v524_v12 }
   0xb   :  { %13 = vsyncpa [#allocation3], 0  ;;  %5977 = vmatpush3.msk.msra.mxu1 %vm74_vm0, %v5319_v11  ;;  %v5339_v16 = vld [vmem:[%s8544_s0 + $0x14] sm:$0xf]  ;;  %v6584_v18 = vld [vmem:[%s8548_s4 + $0x38] sm:$0xff]  ;;  %v6448_v35 = vmov 0   ;;  %v193_v53 = vlaneseq }
   0xc   :  { %5943 = vmatmul.mubr.msk.f32.gmra.mxu0 %vm49_vm1, %v6561_v13  ;;  %5954 = vmatmul.mubr.msk.f32.gmra.mxu1 %vm49_vm1, %v6535_v7  ;;  %v824_v17 = vadd.f32 %v5339_v16, %v674_v15  ;;  %v5349_v19 = vld [vmem:[%s8544_s0 + $0x18] sm:$0xf]  ;;  %v5359_v21 = vld [vmem:[%s8544_s0 + $0x1c] sm:$0xf]  ;;  %v5369_v23 = vld [vmem:[%s8544_s0 + $0x20] sm:$0xf] }
   0xd   :  { %5945 = vmatprep.mubr.msk.f32.mxu0 %vm49_vm1, %v6568_v14  ;;  %5956 = vmatprep.mubr.msk.f32.mxu1 %vm49_vm1, %v6545_v10  ;;  %v5379_v25 = vld [vmem:[%s8544_s0 + $0x24] sm:$0xf]  ;;  %v6619_v27 = vld [vmem:[%s8544_s0 + $0x28] sm:$0xf]  ;;  %v6628_v29 = vld [vmem:[%s8544_s0 + $0x2c] sm:$0xf] }
   0xe   :  { %6004 = vmatprep.subr.msk.mxu1 %vm74_vm0, %v5339_v16  ;;  %v974_v20 = vadd.f32 %v5349_v19, %v824_v17  ;;  %v6642_v31 = vld [vmem:[%s8544_s0 + $0x30] sm:$0xf]  ;;  %v6650_v33 = vld [vmem:[%s8544_s0 + $0x34] sm:$0xf]  ;;  %6416 = vset.pattern.permute.xlu1 %v6448_v35  ;;  %v6790_v36 = vld [vmem:[%s8544_s0 + $0x38] sm:$0xf] }
   0xf   :  { %6415 = vset.pattern.permute.xlu0 %v6448_v35  ;;  %v6811_v37 = vld [vmem:[%s8544_s0 + $0x3c] sm:$0xf]  ;;  %v6840_v38 = vld [vmem:[%s8544_s0 + $0x40] sm:$0xf]  ;;  %v6861_v39 = vld [vmem:[%s8544_s0 + $0x44] sm:$0xf] }
  0x10   :  { %5946 = vmatmul.mubr.msk.f32.gmra.mxu0 %vm49_vm1, %v6584_v18  ;;  %5957 = vmatmul.mubr.msk.f32.gmra.mxu1 %vm49_vm1, %v6561_v13  ;;  %v1124_v22 = vadd.f32 %v5359_v21, %v974_v20  ;;  %v6890_v40 = vld [vmem:[%s8544_s0 + $0x48] sm:$0xf]  ;;  %v6911_v41 = vld [vmem:[%s8544_s0 + $0x4c] sm:$0xf]  ;;  %v6940_v42 = vld [vmem:[%s8544_s0 + $0x50] sm:$0xf] }
  0x11   :  { %5964 = vmatprep.mubr.msk.f32.mxu0 %vm49_vm1, %v6503_v1  ;;  %5959 = vmatprep.mubr.msk.f32.mxu1 %vm49_vm1, %v6568_v14  ;;  %v6961_v43 = vld [vmem:[%s8544_s0 + $0x54] sm:$0xf]  ;;  %v6990_v44 = vld [vmem:[%s8544_s0 + $0x58] sm:$0xf]  ;;  %v7011_v45 = vld [vmem:[%s8544_s0 + $0x5c] sm:$0xf] }
  0x12   :  { %v1274_v24 = vadd.f32 %v5369_v23, %v1124_v22  ;;  %v7043_v48 = vld [vmem:[%s8544_s0 + $0x60] sm:$0xf]  ;;  %v7065_v50 = vld [vmem:[%s8544_s0 + $0x64] sm:$0xf]  ;;  %v7101_v55 = vld [vmem:[%s8544_s0 + $0x68] sm:$0xf] }
  0x13   :  { %v7106_v56 = vld [vmem:[%s8545_s1] sm:$0x1]  ;;  %v194_v57 = vshrl.u32 %v193_v53, 7  ;;  %v7125_v59 = vld [vmem:[%s8544_s0 + $0x6c] sm:$0xf]  ;;  %v5165_v12 = vld [vmem:[%s8551_s7 + $0x10] sm:$0xff] }
  0x14   :  { %5965 = vmatmul.mubr.msk.f32.vlgmr.msra.gmra.mxu0 %vm49_vm1, %v6508_v2  ;;  %5960 = vmatmul.mubr.msk.f32.gmra.mxu1 %vm49_vm1, %v6584_v18  ;;  %v1424_v26 = vadd.f32 %v5379_v25, %v1274_v24  ;;  %vm183_vm2 = vcmp.gt.s32.totalorder %v7106_v56, 0  ;;  %vm333_vm3 = vcmp.gt.s32.totalorder %v7106_v56, 1  ;;  %v7172_v11 = vld [vmem:[%s8544_s0 + $0x70] sm:$0xf]  ;;  %v5163_v15 = vld [vmem:[%s8551_s7] sm:$0xff]  ;;  %vm483_vm6 = vcmp.gt.s32.totalorder %v7106_v56, 2 }
  0x15   :  { %5967 = vmatprep.mubr.msk.f32.mxu0 %vm49_vm1, %v6516_v3  ;;  %5991 = vmatpush3.msk.msra.mxu0 %vm74_vm0, %v5329_v8  ;;  %v7131_v60 = vsub.s32 0, %v194_v57  ;;  %v192_v61 = vsel %vm183_vm2, 1, %v6448_v35  ;;  %v342_v0 = vsel %vm333_vm3, 1, %v6448_v35  ;;  %vm633_vm7 = vcmp.gt.s32.totalorder %v7106_v56, 3  ;;  %v7306_v5 = vld [vmem:[%s8544_s0 + $0x78] sm:$0xf] }
  0x16   :  { %5978 = vmatprep.mubr.msk.f32.mxu1 %vm49_vm1, %v6503_v1  ;;  %6018 = vmatprep.subr.msk.mxu0 %vm74_vm0, %v5349_v19  ;;  %v1574_v28 = vadd.f32 %v6619_v27, %v1424_v26  ;;  %v7205_v26 = vld [vmem:[%s8544_s0 + $0x74] sm:$0xf]  ;;  %v642_v57 = vsel %vm633_vm7, 1, %v6448_v35  ;;  %vm783_vm10 = vcmp.gt.s32.totalorder %v7106_v56, 4  ;;  %vm933_vm11 = vcmp.gt.s32.totalorder %v7106_v56, 5 }
  0x17   :  { %v196_v63 = vrot.slane %v192_v61, %v7131_v60  ;;  %v346_v6 = vrot.slane %v342_v0, %v7131_v60  ;;  %5183 = vperm.xlu1 %6416, %v5165_v12   ;;  %5173 = vperm.xlu0 %6415, %v5163_v15   ;;  %vm4922_vm13 = vcmask 1042432   ;;  %vm1083_vm15 = vcmp.gt.s32.totalorder %v7106_v56, 6 }
  0x18   :  { %5968 = vmatmul.mubr.msk.f32.gmra.mxu0 %vm49_vm1, %v6535_v7  ;;  %5979 = vmatmul.mubr.msk.f32.vlgmr.msra.gmra.mxu1 %vm49_vm1, %v6508_v2  ;;  %v1724_v30 = vadd.f32 %v6628_v29, %v1574_v28  ;;  %v5164_v28 = vld [vmem:[%s8551_s7 + $0x8] sm:$0xff]  ;;  %vm1233_vm2 = vcmp.gt.s32.totalorder %v7106_v56, 7 }
  0x19   :  { %5970 = vmatprep.mubr.msk.f32.mxu0 %vm49_vm1, %v6545_v10  ;;  %5981 = vmatprep.mubr.msk.f32.mxu1 %vm49_vm1, %v6516_v3  ;;  %vm7159_vm4 = vcmp.eq.s32.totalorder %v196_v63, 1  ;;  %vm7186_vm5 = vcmp.eq.s32.totalorder %v346_v6, 1 }
  0x1a   :  { %6005 = vmatpush3.msk.msra.mxu1 %vm74_vm0, %v5339_v16  ;;  %v1874_v32 = vadd.f32 %v6642_v31, %v1724_v30 }
  0x1b   :  { %6032 = vmatprep.subr.msk.mxu1 %vm74_vm0, %v5359_v21  ;;  %5178 = vperm.xlu0 %6415, %v5164_v28  }
  0x1c   :  { %5971 = vmatmul.mubr.msk.f32.gmra.mxu0 %vm49_vm1, %v6561_v13  ;;  %5982 = vmatmul.mubr.msk.f32.gmra.mxu1 %vm49_vm1, %v6535_v7  ;;  %v6657_v34 = vadd.f32 %v6650_v33, %v1874_v32 }
  0x1d   :  { %5973 = vmatprep.mubr.msk.f32.mxu0 %vm49_vm1, %v6568_v14  ;;  %5984 = vmatprep.mubr.msk.f32.mxu1 %vm49_vm1, %v6545_v10 }
  0x1e   :  { %v2174_v46 = vadd.f32 %v6790_v36, %v6657_v34 }
  0x20   :  { %5974 = vmatmul.mubr.msk.f32.gmra.mxu0 %vm49_vm1, %v6584_v18  ;;  %5985 = vmatmul.mubr.msk.f32.gmra.mxu1 %vm49_vm1, %v6561_v13  ;;  %v2324_v47 = vadd.f32 %v6811_v37, %v2174_v46 }
  0x21   :  { %5992 = vmatprep.mubr.msk.f32.mxu0 %vm49_vm1, %v6503_v1  ;;  %5987 = vmatprep.mubr.msk.f32.mxu1 %vm49_vm1, %v6568_v14 }
  0x22   :  { %v2474_v49 = vadd.f32 %v6840_v38, %v2324_v47 }
  0x24   :  { %5993 = vmatmul.mubr.msk.f32.vlgmr.msra.gmra.mxu0 %vm49_vm1, %v6508_v2  ;;  %5988 = vmatmul.mubr.msk.f32.gmra.mxu1 %vm49_vm1, %v6584_v18  ;;  %v2624_v51 = vadd.f32 %v6861_v39, %v2474_v49 }
  0x25   :  { %5995 = vmatprep.mubr.msk.f32.mxu0 %vm49_vm1, %v6516_v3  ;;  %6019 = vmatpush3.msk.msra.mxu0 %vm74_vm0, %v5349_v19 }
  0x26   :  { %6006 = vmatprep.mubr.msk.f32.mxu1 %vm49_vm1, %v6503_v1  ;;  %6046 = vmatprep.subr.msk.mxu0 %vm74_vm0, %v5369_v23  ;;  %v2774_v52 = vadd.f32 %v6890_v40, %v2624_v51 }
  0x28   :  { %5996 = vmatmul.mubr.msk.f32.gmra.mxu0 %vm49_vm1, %v6535_v7  ;;  %6007 = vmatmul.mubr.msk.f32.vlgmr.msra.gmra.mxu1 %vm49_vm1, %v6508_v2  ;;  %v2924_v54 = vadd.f32 %v6911_v41, %v2774_v52 }
  0x29   :  { %5998 = vmatprep.mubr.msk.f32.mxu0 %vm49_vm1, %v6545_v10  ;;  %6009 = vmatprep.mubr.msk.f32.mxu1 %vm49_vm1, %v6516_v3 }
  0x2a   :  { %6033 = vmatpush3.msk.msra.mxu1 %vm74_vm0, %v5359_v21  ;;  %v3074_v58 = vadd.f32 %v6940_v42, %v2924_v54 }
  0x2b   :  { %6060 = vmatprep.subr.msk.mxu1 %vm74_vm0, %v5379_v25 }
  0x2c   :  { %5999 = vmatmul.mubr.msk.f32.gmra.mxu0 %vm49_vm1, %v6561_v13  ;;  %6010 = vmatmul.mubr.msk.f32.gmra.mxu1 %vm49_vm1, %v6535_v7  ;;  %v3224_v62 = vadd.f32 %v6961_v43, %v3074_v58 }
  0x2d   :  { %6001 = vmatprep.mubr.msk.f32.mxu0 %vm49_vm1, %v6568_v14  ;;  %6012 = vmatprep.mubr.msk.f32.mxu1 %vm49_vm1, %v6545_v10 }
  0x2e   :  { %v3374_v4 = vadd.f32 %v6990_v44, %v3224_v62 }
  0x30   :  { %6002 = vmatmul.mubr.msk.f32.gmra.mxu0 %vm49_vm1, %v6584_v18  ;;  %6013 = vmatmul.mubr.msk.f32.gmra.mxu1 %vm49_vm1, %v6561_v13  ;;  %v3524_v8 = vadd.f32 %v7011_v45, %v3374_v4  ;;  %v5170_v4 = vld [vmem:[%s8551_s7 + $0x38] sm:$0xff] }
  0x31   :  { %6020 = vmatprep.mubr.msk.f32.mxu0 %vm49_vm1, %v6503_v1  ;;  %6015 = vmatprep.mubr.msk.f32.mxu1 %vm49_vm1, %v6568_v14 }
  0x32   :  { %v3674_v22 = vadd.f32 %v7043_v48, %v3524_v8 }
  0x34   :  { %6021 = vmatmul.mubr.msk.f32.vlgmr.msra.gmra.mxu0 %vm49_vm1, %v6508_v2  ;;  %6016 = vmatmul.mubr.msk.f32.gmra.mxu1 %vm49_vm1, %v6584_v18 }
  0x35   :  { %6023 = vmatprep.mubr.msk.f32.mxu0 %vm49_vm1, %v6516_v3  ;;  %6047 = vmatpush3.msk.msra.mxu0 %vm74_vm0, %v5369_v23 }
  0x36   :  { %6034 = vmatprep.mubr.msk.f32.mxu1 %vm49_vm1, %v6503_v1  ;;  %6074 = vmatprep.subr.msk.mxu0 %vm74_vm0, %v6619_v27 }
  0x38   :  { %6024 = vmatmul.mubr.msk.f32.gmra.mxu0 %vm49_vm1, %v6535_v7  ;;  %6035 = vmatmul.mubr.msk.f32.vlgmr.msra.gmra.mxu1 %vm49_vm1, %v6508_v2 }
  0x39   :  { %6026 = vmatprep.mubr.msk.f32.mxu0 %vm49_vm1, %v6545_v10  ;;  %6037 = vmatprep.mubr.msk.f32.mxu1 %vm49_vm1, %v6516_v3 }
  0x3a   :  { %6061 = vmatpush3.msk.msra.mxu1 %vm74_vm0, %v5379_v25 }
  0x3b   :  { %6088 = vmatprep.subr.msk.mxu1 %vm74_vm0, %v6628_v29 }
  0x3c   :  { %6027 = vmatmul.mubr.msk.f32.gmra.mxu0 %vm49_vm1, %v6561_v13  ;;  %6038 = vmatmul.mubr.msk.f32.gmra.mxu1 %vm49_vm1, %v6535_v7 }
  0x3d   :  { %6029 = vmatprep.mubr.msk.f32.mxu0 %vm49_vm1, %v6568_v14  ;;  %6040 = vmatprep.mubr.msk.f32.mxu1 %vm49_vm1, %v6545_v10 }
  0x40   :  { %6030 = vmatmul.mubr.msk.f32.gmra.mxu0 %vm49_vm1, %v6584_v18  ;;  %6041 = vmatmul.mubr.msk.f32.gmra.mxu1 %vm49_vm1, %v6561_v13 }
  0x41   :  { %6048 = vmatprep.mubr.msk.f32.mxu0 %vm49_vm1, %v6503_v1  ;;  %6043 = vmatprep.mubr.msk.f32.mxu1 %vm49_vm1, %v6568_v14 }
  0x44   :  { %6049 = vmatmul.mubr.msk.f32.vlgmr.msra.gmra.mxu0 %vm49_vm1, %v6508_v2  ;;  %6044 = vmatmul.mubr.msk.f32.gmra.mxu1 %vm49_vm1, %v6584_v18 }
  0x45   :  { %6051 = vmatprep.mubr.msk.f32.mxu0 %vm49_vm1, %v6516_v3  ;;  %6075 = vmatpush3.msk.msra.mxu0 %vm74_vm0, %v6619_v27  ;;  %v5166_v27 = vld [vmem:[%s8551_s7 + $0x18] sm:$0xff] }
  0x46   :  { %6062 = vmatprep.mubr.msk.f32.mxu1 %vm49_vm1, %v6503_v1  ;;  %6102 = vmatprep.subr.msk.mxu0 %vm74_vm0, %v6642_v31 }
  0x47   :  { %5188 = vperm.xlu1 %6416, %v5166_v27  }
  0x48   :  { %6052 = vmatmul.mubr.msk.f32.gmra.mxu0 %vm49_vm1, %v6535_v7  ;;  %6063 = vmatmul.mubr.msk.f32.vlgmr.msra.gmra.mxu1 %vm49_vm1, %v6508_v2 }
  0x49   :  { %6054 = vmatprep.mubr.msk.f32.mxu0 %vm49_vm1, %v6545_v10  ;;  %6065 = vmatprep.mubr.msk.f32.mxu1 %vm49_vm1, %v6516_v3 }
  0x4a   :  { %6089 = vmatpush3.msk.msra.mxu1 %vm74_vm0, %v6628_v29 }
  0x4b   :  { %6116 = vmatprep.subr.msk.mxu1 %vm74_vm0, %v6650_v33 }
  0x4c   :  { %6055 = vmatmul.mubr.msk.f32.gmra.mxu0 %vm49_vm1, %v6561_v13  ;;  %6066 = vmatmul.mubr.msk.f32.gmra.mxu1 %vm49_vm1, %v6535_v7 }
  0x4d   :  { %6057 = vmatprep.mubr.msk.f32.mxu0 %vm49_vm1, %v6568_v14  ;;  %6068 = vmatprep.mubr.msk.f32.mxu1 %vm49_vm1, %v6545_v10 }
  0x50   :  { %6058 = vmatmul.mubr.msk.f32.gmra.mxu0 %vm49_vm1, %v6584_v18  ;;  %6069 = vmatmul.mubr.msk.f32.gmra.mxu1 %vm49_vm1, %v6561_v13 }
  0x51   :  { %6076 = vmatprep.mubr.msk.f32.mxu0 %vm49_vm1, %v6503_v1  ;;  %6071 = vmatprep.mubr.msk.f32.mxu1 %vm49_vm1, %v6568_v14 }
  0x54   :  { %6077 = vmatmul.mubr.msk.f32.vlgmr.msra.gmra.mxu0 %vm49_vm1, %v6508_v2  ;;  %6072 = vmatmul.mubr.msk.f32.gmra.mxu1 %vm49_vm1, %v6584_v18 }
  0x55   :  { %6079 = vmatprep.mubr.msk.f32.mxu0 %vm49_vm1, %v6516_v3  ;;  %6103 = vmatpush3.msk.msra.mxu0 %vm74_vm0, %v6642_v31 }
  0x56   :  { %6090 = vmatprep.mubr.msk.f32.mxu1 %vm49_vm1, %v6503_v1  ;;  %6130 = vmatprep.subr.msk.mxu0 %vm74_vm0, %v6790_v36 }
  0x58   :  { %6080 = vmatmul.mubr.msk.f32.gmra.mxu0 %vm49_vm1, %v6535_v7  ;;  %6091 = vmatmul.mubr.msk.f32.vlgmr.msra.gmra.mxu1 %vm49_vm1, %v6508_v2 }
  0x59   :  { %6082 = vmatprep.mubr.msk.f32.mxu0 %vm49_vm1, %v6545_v10  ;;  %6093 = vmatprep.mubr.msk.f32.mxu1 %vm49_vm1, %v6516_v3 }
  0x5a   :  { %6117 = vmatpush3.msk.msra.mxu1 %vm74_vm0, %v6650_v33 }
  0x5b   :  { %6144 = vmatprep.subr.msk.mxu1 %vm74_vm0, %v6811_v37 }
  0x5c   :  { %6083 = vmatmul.mubr.msk.f32.gmra.mxu0 %vm49_vm1, %v6561_v13  ;;  %6094 = vmatmul.mubr.msk.f32.gmra.mxu1 %vm49_vm1, %v6535_v7 }
  0x5d   :  { %6085 = vmatprep.mubr.msk.f32.mxu0 %vm49_vm1, %v6568_v14  ;;  %6096 = vmatprep.mubr.msk.f32.mxu1 %vm49_vm1, %v6545_v10 }
  0x60   :  { %6086 = vmatmul.mubr.msk.f32.gmra.mxu0 %vm49_vm1, %v6584_v18  ;;  %6097 = vmatmul.mubr.msk.f32.gmra.mxu1 %vm49_vm1, %v6561_v13 }
  0x61   :  { %6104 = vmatprep.mubr.msk.f32.mxu0 %vm49_vm1, %v6503_v1  ;;  %6099 = vmatprep.mubr.msk.f32.mxu1 %vm49_vm1, %v6568_v14 }
  0x64   :  { %6105 = vmatmul.mubr.msk.f32.vlgmr.msra.gmra.mxu0 %vm49_vm1, %v6508_v2  ;;  %6100 = vmatmul.mubr.msk.f32.gmra.mxu1 %vm49_vm1, %v6584_v18 }
  0x65   :  { %6107 = vmatprep.mubr.msk.f32.mxu0 %vm49_vm1, %v6516_v3  ;;  %6131 = vmatpush3.msk.msra.mxu0 %vm74_vm0, %v6790_v36 }
  0x66   :  { %6118 = vmatprep.mubr.msk.f32.mxu1 %vm49_vm1, %v6503_v1  ;;  %6158 = vmatprep.subr.msk.mxu0 %vm74_vm0, %v6840_v38 }
  0x68   :  { %6108 = vmatmul.mubr.msk.f32.gmra.mxu0 %vm49_vm1, %v6535_v7  ;;  %6119 = vmatmul.mubr.msk.f32.vlgmr.msra.gmra.mxu1 %vm49_vm1, %v6508_v2 }
  0x69   :  { %6110 = vmatprep.mubr.msk.f32.mxu0 %vm49_vm1, %v6545_v10  ;;  %6121 = vmatprep.mubr.msk.f32.mxu1 %vm49_vm1, %v6516_v3 }
  0x6a   :  { %6145 = vmatpush3.msk.msra.mxu1 %vm74_vm0, %v6811_v37 }
  0x6b   :  { %6172 = vmatprep.subr.msk.mxu1 %vm74_vm0, %v6861_v39 }
  0x6c   :  { %6111 = vmatmul.mubr.msk.f32.gmra.mxu0 %vm49_vm1, %v6561_v13  ;;  %6122 = vmatmul.mubr.msk.f32.gmra.mxu1 %vm49_vm1, %v6535_v7 }
  0x6d   :  { %6113 = vmatprep.mubr.msk.f32.mxu0 %vm49_vm1, %v6568_v14  ;;  %6124 = vmatprep.mubr.msk.f32.mxu1 %vm49_vm1, %v6545_v10 }
  0x70   :  { %6114 = vmatmul.mubr.msk.f32.gmra.mxu0 %vm49_vm1, %v6584_v18  ;;  %6125 = vmatmul.mubr.msk.f32.gmra.mxu1 %vm49_vm1, %v6561_v13 }
  0x71   :  { %6132 = vmatprep.mubr.msk.f32.mxu0 %vm49_vm1, %v6503_v1  ;;  %6127 = vmatprep.mubr.msk.f32.mxu1 %vm49_vm1, %v6568_v14 }
  0x74   :  { %6133 = vmatmul.mubr.msk.f32.vlgmr.msra.gmra.mxu0 %vm49_vm1, %v6508_v2  ;;  %6128 = vmatmul.mubr.msk.f32.gmra.mxu1 %vm49_vm1, %v6584_v18 }
  0x75   :  { %6135 = vmatprep.mubr.msk.f32.mxu0 %vm49_vm1, %v6516_v3  ;;  %6159 = vmatpush3.msk.msra.mxu0 %vm74_vm0, %v6840_v38  ;;  %v492_v38 = vsel %vm483_vm6, 1, %v6448_v35  ;;  %vm1533_vm6 = vcmp.gt.s32.totalorder %v7106_v56, 9 }
  0x76   :  { %6146 = vmatprep.mubr.msk.f32.mxu1 %vm49_vm1, %v6503_v1  ;;  %6186 = vmatprep.subr.msk.mxu0 %vm74_vm0, %v6890_v40  ;;  %v496_v52 = vrot.slane %v492_v38, %v7131_v60 }
  0x78   :  { %6136 = vmatmul.mubr.msk.f32.gmra.mxu0 %vm49_vm1, %v6535_v7  ;;  %6147 = vmatmul.mubr.msk.f32.vlgmr.msra.gmra.mxu1 %vm49_vm1, %v6508_v2  ;;  %vm7289_vm8 = vcmp.eq.s32.totalorder %v496_v52, 1 }
  0x79   :  { %6138 = vmatprep.mubr.msk.f32.mxu0 %vm49_vm1, %v6545_v10  ;;  %6149 = vmatprep.mubr.msk.f32.mxu1 %vm49_vm1, %v6516_v3 }
  0x7a   :  { %6173 = vmatpush3.msk.msra.mxu1 %vm74_vm0, %v6861_v39  ;;  %v3824_v39 = vadd.f32 %v7065_v50, %v3674_v22 }
  0x7b   :  { %6200 = vmatprep.subr.msk.mxu1 %vm74_vm0, %v6911_v41 }
  0x7c   :  { %6139 = vmatmul.mubr.msk.f32.gmra.mxu0 %vm49_vm1, %v6561_v13  ;;  %6150 = vmatmul.mubr.msk.f32.gmra.mxu1 %vm49_vm1, %v6535_v7  ;;  %v3974_v58 = vadd.f32 %v7101_v55, %v3824_v39 }
  0x7d   :  { %6141 = vmatprep.mubr.msk.f32.mxu0 %vm49_vm1, %v6568_v14  ;;  %6152 = vmatprep.mubr.msk.f32.mxu1 %vm49_vm1, %v6545_v10 }
  0x80   :  { %6142 = vmatmul.mubr.msk.f32.gmra.mxu0 %vm49_vm1, %v6584_v18  ;;  %6153 = vmatmul.mubr.msk.f32.gmra.mxu1 %vm49_vm1, %v6561_v13 }
  0x81   :  { %6160 = vmatprep.mubr.msk.f32.mxu0 %vm49_vm1, %v6503_v1  ;;  %6155 = vmatprep.mubr.msk.f32.mxu1 %vm49_vm1, %v6568_v14 }
  0x84   :  { %6161 = vmatmul.mubr.msk.f32.vlgmr.msra.gmra.mxu0 %vm49_vm1, %v6508_v2  ;;  %6156 = vmatmul.mubr.msk.f32.gmra.mxu1 %vm49_vm1, %v6584_v18 }
  0x85   :  { %6163 = vmatprep.mubr.msk.f32.mxu0 %vm49_vm1, %v6516_v3  ;;  %6187 = vmatpush3.msk.msra.mxu0 %vm74_vm0, %v6890_v40 }
  0x86   :  { %6174 = vmatprep.mubr.msk.f32.mxu1 %vm49_vm1, %v6503_v1  ;;  %6214 = vmatprep.subr.msk.mxu0 %vm74_vm0, %v6940_v42 }
  0x88   :  { %6164 = vmatmul.mubr.msk.f32.gmra.mxu0 %vm49_vm1, %v6535_v7  ;;  %6175 = vmatmul.mubr.msk.f32.vlgmr.msra.gmra.mxu1 %vm49_vm1, %v6508_v2 }
  0x89   :  { %6166 = vmatprep.mubr.msk.f32.mxu0 %vm49_vm1, %v6545_v10  ;;  %6177 = vmatprep.mubr.msk.f32.mxu1 %vm49_vm1, %v6516_v3 }
  0x8a   :  { %6201 = vmatpush3.msk.msra.mxu1 %vm74_vm0, %v6911_v41 }
  0x8b   :  { %6228 = vmatprep.subr.msk.mxu1 %vm74_vm0, %v6961_v43 }
  0x8c   :  { %6167 = vmatmul.mubr.msk.f32.gmra.mxu0 %vm49_vm1, %v6561_v13  ;;  %6178 = vmatmul.mubr.msk.f32.gmra.mxu1 %vm49_vm1, %v6535_v7 }
  0x8d   :  { %6169 = vmatprep.mubr.msk.f32.mxu0 %vm49_vm1, %v6568_v14  ;;  %6180 = vmatprep.mubr.msk.f32.mxu1 %vm49_vm1, %v6545_v10 }
  0x90   :  { %6170 = vmatmul.mubr.msk.f32.gmra.mxu0 %vm49_vm1, %v6584_v18  ;;  %6181 = vmatmul.mubr.msk.f32.gmra.mxu1 %vm49_vm1, %v6561_v13 }
  0x91   :  { %6188 = vmatprep.mubr.msk.f32.mxu0 %vm49_vm1, %v6503_v1  ;;  %6183 = vmatprep.mubr.msk.f32.mxu1 %vm49_vm1, %v6568_v14 }
  0x94   :  { %6189 = vmatmul.mubr.msk.f32.vlgmr.msra.gmra.mxu0 %vm49_vm1, %v6508_v2  ;;  %6184 = vmatmul.mubr.msk.f32.gmra.mxu1 %vm49_vm1, %v6584_v18 }
  0x95   :  { %6191 = vmatprep.mubr.msk.f32.mxu0 %vm49_vm1, %v6516_v3  ;;  %6215 = vmatpush3.msk.msra.mxu0 %vm74_vm0, %v6940_v42 }
  0x96   :  { %6202 = vmatprep.mubr.msk.f32.mxu1 %vm49_vm1, %v6503_v1  ;;  %6242 = vmatprep.subr.msk.mxu0 %vm74_vm0, %v6990_v44 }
  0x98   :  { %6192 = vmatmul.mubr.msk.f32.gmra.mxu0 %vm49_vm1, %v6535_v7  ;;  %6203 = vmatmul.mubr.msk.f32.vlgmr.msra.gmra.mxu1 %vm49_vm1, %v6508_v2 }
  0x99   :  { %6194 = vmatprep.mubr.msk.f32.mxu0 %vm49_vm1, %v6545_v10  ;;  %6205 = vmatprep.mubr.msk.f32.mxu1 %vm49_vm1, %v6516_v3 }
  0x9a   :  { %6229 = vmatpush3.msk.msra.mxu1 %vm74_vm0, %v6961_v43 }
  0x9b   :  { %6256 = vmatprep.subr.msk.mxu1 %vm74_vm0, %v7011_v45 }
  0x9c   :  { %6195 = vmatmul.mubr.msk.f32.gmra.mxu0 %vm49_vm1, %v6561_v13  ;;  %6206 = vmatmul.mubr.msk.f32.gmra.mxu1 %vm49_vm1, %v6535_v7 }
  0x9d   :  { %6197 = vmatprep.mubr.msk.f32.mxu0 %vm49_vm1, %v6568_v14  ;;  %6208 = vmatprep.mubr.msk.f32.mxu1 %vm49_vm1, %v6545_v10 }
  0xa0   :  { %6198 = vmatmul.mubr.msk.f32.gmra.mxu0 %vm49_vm1, %v6584_v18  ;;  %6209 = vmatmul.mubr.msk.f32.gmra.mxu1 %vm49_vm1, %v6561_v13 }
  0xa1   :  { %6216 = vmatprep.mubr.msk.f32.mxu0 %vm49_vm1, %v6503_v1  ;;  %6211 = vmatprep.mubr.msk.f32.mxu1 %vm49_vm1, %v6568_v14 }
  0xa4   :  { %6217 = vmatmul.mubr.msk.f32.vlgmr.msra.gmra.mxu0 %vm49_vm1, %v6508_v2  ;;  %6212 = vmatmul.mubr.msk.f32.gmra.mxu1 %vm49_vm1, %v6584_v18 }
  0xa5   :  { %6219 = vmatprep.mubr.msk.f32.mxu0 %vm49_vm1, %v6516_v3  ;;  %6243 = vmatpush3.msk.msra.mxu0 %vm74_vm0, %v6990_v44  ;;  %v5168_v44 = vld [vmem:[%s8551_s7 + $0x28] sm:$0xff] }
  0xa6   :  { %6230 = vmatprep.mubr.msk.f32.mxu1 %vm49_vm1, %v6503_v1  ;;  %6270 = vmatprep.subr.msk.mxu0 %vm74_vm0, %v7043_v48 }
  0xa7   :  { %5198 = vperm.xlu1 %6416, %v5168_v44  }
  0xa8   :  { %6220 = vmatmul.mubr.msk.f32.gmra.mxu0 %vm49_vm1, %v6535_v7  ;;  %6231 = vmatmul.mubr.msk.f32.vlgmr.msra.gmra.mxu1 %vm49_vm1, %v6508_v2 }
  0xa9   :  { %6222 = vmatprep.mubr.msk.f32.mxu0 %vm49_vm1, %v6545_v10  ;;  %6233 = vmatprep.mubr.msk.f32.mxu1 %vm49_vm1, %v6516_v3 }
  0xaa   :  { %6257 = vmatpush3.msk.msra.mxu1 %vm74_vm0, %v7011_v45  ;;  %v5167_v45 = vld [vmem:[%s8551_s7 + $0x20] sm:$0xff] }
  0xab   :  { %6284 = vmatprep.subr.msk.mxu1 %vm74_vm0, %v7065_v50  ;;  %5193 = vperm.xlu0 %6415, %v5167_v45  }
  0xac   :  { %6223 = vmatmul.mubr.msk.f32.gmra.mxu0 %vm49_vm1, %v6561_v13  ;;  %6234 = vmatmul.mubr.msk.f32.gmra.mxu1 %vm49_vm1, %v6535_v7 }
  0xad   :  { %6225 = vmatprep.mubr.msk.f32.mxu0 %vm49_vm1, %v6568_v14  ;;  %6236 = vmatprep.mubr.msk.f32.mxu1 %vm49_vm1, %v6545_v10 }
  0xae   :  { %5208 = vperm.xlu1 %6416, %v5170_v4  }
  0xb0   :  { %6226 = vmatmul.mubr.msk.f32.gmra.mxu0 %vm49_vm1, %v6584_v18  ;;  %6237 = vmatmul.mubr.msk.f32.gmra.mxu1 %vm49_vm1, %v6561_v13 }
  0xb1   :  { %6244 = vmatprep.mubr.msk.f32.mxu0 %vm49_vm1, %v6503_v1  ;;  %6239 = vmatprep.mubr.msk.f32.mxu1 %vm49_vm1, %v6568_v14 }
  0xb4   :  { %6245 = vmatmul.mubr.msk.f32.vlgmr.msra.gmra.mxu0 %vm49_vm1, %v6508_v2  ;;  %6240 = vmatmul.mubr.msk.f32.gmra.mxu1 %vm49_vm1, %v6584_v18 }
  0xb5   :  { %6247 = vmatprep.mubr.msk.f32.mxu0 %vm49_vm1, %v6516_v3  ;;  %6258 = vmatprep.mubr.msk.f32.mxu1 %vm49_vm1, %v6503_v1 }
  0xb6   :  { %6271 = vmatpush3.msk.msra.mxu0 %vm74_vm0, %v7043_v48 }
  0xb7   :  { %6298 = vmatprep.subr.msk.mxu0 %vm74_vm0, %v7101_v55 }
  0xb8   :  { %6248 = vmatmul.mubr.msk.f32.gmra.mxu0 %vm49_vm1, %v6535_v7  ;;  %6259 = vmatmul.mubr.msk.f32.vlgmr.msra.gmra.mxu1 %vm49_vm1, %v6508_v2 }
  0xb9   :  { %6250 = vmatprep.mubr.msk.f32.mxu0 %vm49_vm1, %v6545_v10  ;;  %6261 = vmatprep.mubr.msk.f32.mxu1 %vm49_vm1, %v6516_v3 }
  0xba   :  { %6285 = vmatpush3.msk.msra.mxu1 %vm74_vm0, %v7065_v50 }
  0xbb   :  { %6312 = vmatprep.subr.msk.mxu1 %vm74_vm0, %v7125_v59 }
  0xbc   :  { %6251 = vmatmul.mubr.msk.f32.gmra.mxu0 %vm49_vm1, %v6561_v13  ;;  %6262 = vmatmul.mubr.msk.f32.gmra.mxu1 %vm49_vm1, %v6535_v7 }
  0xbd   :  { %6253 = vmatprep.mubr.msk.f32.mxu0 %vm49_vm1, %v6568_v14  ;;  %6264 = vmatprep.mubr.msk.f32.mxu1 %vm49_vm1, %v6545_v10 }
  0xc0   :  { %6254 = vmatmul.mubr.msk.f32.gmra.mxu0 %vm49_vm1, %v6584_v18  ;;  %6265 = vmatmul.mubr.msk.f32.gmra.mxu1 %vm49_vm1, %v6561_v13 }
  0xc1   :  { %6267 = vmatprep.mubr.msk.f32.mxu1 %vm49_vm1, %v6568_v14  ;;  %6272 = vmatprep.mubr.msk.f32.mxu0 %vm49_vm1, %v6503_v1 }
  0xc4   :  { %v5938_v9 = vpop.f32.mrf.mxu0  ;;  %6268 = vmatmul.mubr.msk.f32.gmra.mxu1 %vm49_vm1, %v6584_v18  ;;  %6273 = vmatmul.mubr.msk.f32.vlgmr.msra.gmra.mxu0 %vm49_vm1, %v6508_v2 }
  0xc5   :  { %v199_v16 = vsel %vm7159_vm4, %v5938_v9, -1e+30  ;;  %6286 = vmatprep.mubr.msk.f32.mxu1 %vm49_vm1, %v6503_v1  ;;  %6275 = vmatprep.mubr.msk.f32.mxu0 %vm49_vm1, %v6516_v3 }
  0xc6   :  { %v207_v17 = vmax.f32 %v199_v16, -1e+30  ;;  %v144_v19 = vpop.f32.mrf.mxu0  ;;  %6299 = vmatpush3.msk.msra.mxu0 %vm74_vm0, %v7101_v55  ;;  %v5169_v55 = vld [vmem:[%s8551_s7 + $0x30] sm:$0xff] }
  0xc7   :  { %v198_v21 = vsel %vm7159_vm4, %v144_v19, -1e+30  ;;  %6326 = vmatprep.subr.msk.mxu0 %vm74_vm0, %v7172_v11  ;;  %v646_v19 = vrot.slane %v642_v57, %v7131_v60  ;;  %5203 = vperm.xlu0 %6415, %v5169_v55  }
  0xc8   :  { %v206_v23 = vmax.f32 %v198_v21, -1e+30  ;;  %v5941_v24 = vpop.f32.mrf.mxu0  ;;  %v5952_v25 = vpop.f32.mrf.mxu1  ;;  %6287 = vmatmul.mubr.msk.f32.vlgmr.msra.gmra.mxu1 %vm49_vm1, %v6508_v2  ;;  %6276 = vmatmul.mubr.msk.f32.gmra.mxu0 %vm49_vm1, %v6535_v7 }
  0xc9   :  { %v201_v29 = vsel %vm7159_vm4, %v5941_v24, -1e+30  ;;  %v349_v30 = vsel %vm7186_vm5, %v5952_v25, -1e+30  ;;  %6289 = vmatprep.mubr.msk.f32.mxu1 %vm49_vm1, %v6516_v3  ;;  %6278 = vmatprep.mubr.msk.f32.mxu0 %vm49_vm1, %v6545_v10  ;;  %vm7317_vm9 = vcmp.eq.s32.totalorder %v646_v19, 1 }
  0xca   :  { %v209_v31 = vmax.f32 %v201_v29, -1e+30  ;;  %v154_v32 = vpop.f32.mrf.mxu0  ;;  %v7221_v33 = vmax.f32 %v207_v17, %v349_v30  ;;  %v294_v34 = vpop.f32.mrf.mxu1  ;;  %6313 = vmatpush3.msk.msra.mxu1 %vm74_vm0, %v7125_v59  ;;  %v7415_v17 = vld [vmem:[%s8547_s3] sm:$0x7] }
  0xcb   :  { %v200_v36 = vsel %vm7159_vm4, %v154_v32, -1e+30  ;;  %v348_v37 = vsel %vm7186_vm5, %v294_v34, -1e+30  ;;  %6340 = vmatprep.subr.msk.mxu1 %vm74_vm0, %v7205_v26 }
  0xcc   :  { %v208_v40 = vmax.f32 %v200_v36, -1e+30  ;;  %v5944_v41 = vpop.f32.mrf.mxu0  ;;  %v7235_v42 = vmax.f32 %v206_v23, %v348_v37  ;;  %v5955_v43 = vpop.f32.mrf.mxu1  ;;  %6290 = vmatmul.mubr.msk.f32.gmra.mxu1 %vm49_vm1, %v6535_v7  ;;  %6279 = vmatmul.mubr.msk.f32.gmra.mxu0 %vm49_vm1, %v6561_v13  ;;  %v4124_v23 = vadd.f32 %v7125_v59, %v3974_v58 }
  0xcd   :  { %v203_v46 = vsel %vm7159_vm4, %v5944_v41, -1e+30  ;;  %v351_v47 = vsel %vm7186_vm5, %v5955_v43, -1e+30  ;;  %6292 = vmatprep.mubr.msk.f32.mxu1 %vm49_vm1, %v6545_v10  ;;  %6281 = vmatprep.mubr.msk.f32.mxu0 %vm49_vm1, %v6568_v14 }
  0xce   :  { %v211_v48 = vmax.f32 %v203_v46, -1e+30  ;;  %v164_v49 = vpop.f32.mrf.mxu0  ;;  %v7256_v50 = vmax.f32 %v209_v31, %v351_v47  ;;  %v304_v51 = vpop.f32.mrf.mxu1  ;;  %v4274_v39 = vadd.f32 %v7172_v11, %v4124_v23 }
  0xcf   :  { %v202_v53 = vsel %vm7159_vm4, %v164_v49, -1e+30  ;;  %v350_v54 = vsel %vm7186_vm5, %v304_v51, -1e+30  ;;  %v792_v51 = vsel %vm783_vm10, 1, %v6448_v35  ;;  %vm1833_vm10 = vcmp.gt.s32.totalorder %v7106_v56, 11 }
  0xd0   :  { %v210_v61 = vmax.f32 %v202_v53, -1e+30  ;;  %v5947_v62 = vpop.f32.mrf.mxu0  ;;  %v7267_v63 = vmax.f32 %v208_v40, %v350_v54  ;;  %v5958_v0 = vpop.f32.mrf.mxu1  ;;  %6293 = vmatmul.mubr.msk.f32.gmra.mxu1 %vm49_vm1, %v6561_v13  ;;  %6282 = vmatmul.mubr.msk.f32.gmra.mxu0 %vm49_vm1, %v6584_v18  ;;  %v4424_v52 = vadd.f32 %v7205_v26, %v4274_v39  ;;  %v796_v4 = vrot.slane %v792_v51, %v7131_v60 }
  0xd1   :  { %v205_v6 = vsel %vm7159_vm4, %v5947_v62, -1e+30  ;;  %v353_v8 = vsel %vm7186_vm5, %v5958_v0, -1e+30  ;;  %6295 = vmatprep.mubr.msk.f32.mxu1 %vm49_vm1, %v6568_v14  ;;  %6300 = vmatprep.mubr.msk.f32.mxu0 %vm49_vm1, %v6503_v1 }
  0xd2   :  { %v213_v9 = vmax.f32 %v205_v6, -1e+30  ;;  %v174_v12 = vpop.f32.mrf.mxu0  ;;  %v7287_v15 = vmax.f32 %v211_v48, %v353_v8  ;;  %v314_v16 = vpop.f32.mrf.mxu1  ;;  %v942_v8 = vsel %vm933_vm11, 1, %v6448_v35  ;;  %vm7396_vm12 = vcmp.eq.s32.totalorder %v796_v4, 1 }
  0xd3   :  { %v204_v21 = vsel %vm7159_vm4, %v174_v12, -1e+30  ;;  %v352_v22 = vsel %vm7186_vm5, %v314_v16, -1e+30 }
  0xd4   :  { %v212_v24 = vmax.f32 %v204_v21, -1e+30  ;;  %v360_v25 = vmax.f32 %v210_v61, %v352_v22  ;;  %v5966_v27 = vpop.f32.mrf.mxu0  ;;  %v5961_v28 = vpop.f32.mrf.mxu1  ;;  %6296 = vmatmul.mubr.msk.f32.gmra.mxu1 %vm49_vm1, %v6584_v18  ;;  %6301 = vmatmul.mubr.msk.f32.vlgmr.msra.gmra.mxu0 %vm49_vm1, %v6508_v2 }
  0xd5   :  { %v499_v29 = vsel %vm7289_vm8, %v5966_v27, -1e+30  ;;  %v355_v59 = vsel %vm7186_vm5, %v5961_v28, -1e+30  ;;  %6314 = vmatprep.mubr.msk.f32.mxu1 %vm49_vm1, %v6503_v1  ;;  %6303 = vmatprep.mubr.msk.f32.mxu0 %vm49_vm1, %v6516_v3  ;;  %v946_v28 = vrot.slane %v942_v8, %v7131_v60 }
  0xd6   :  { %v507_v30 = vmax.f32 %v7221_v33, %v499_v29  ;;  %v363_v31 = vmax.f32 %v213_v9, %v355_v59  ;;  %v444_v32 = vpop.f32.mrf.mxu0  ;;  %v324_v34 = vpop.f32.mrf.mxu1  ;;  %6327 = vmatpush3.msk.msra.mxu0 %vm74_vm0, %v7172_v11  ;;  %v7339_v11 = vld [vmem:[%s8544_s0 + $0x7c] sm:$0xf]  ;;  %v4574_v9 = vadd.f32 %v7306_v5, %v4424_v52 }
  0xd7   :  { %v498_v37 = vsel %vm7289_vm8, %v444_v32, -1e+30  ;;  %v354_v38 = vsel %vm7186_vm5, %v324_v34, -1e+30  ;;  %6354 = vmatprep.subr.msk.mxu0 %vm74_vm0, %v7306_v5  ;;  %vm7430_vm14 = vcmp.eq.s32.totalorder %v946_v28, 1  ;;  %v6424_v28 = vld [vmem:[%s8548_s4] sm:$0xff] }
  0xd8   :  { %v506_v33 = vmax.f32 %v7235_v42, %v498_v37  ;;  %v362_v40 = vmax.f32 %v212_v24, %v354_v38  ;;  %v5969_v41 = vpop.f32.mrf.mxu0  ;;  %v5980_v43 = vpop.f32.mrf.mxu1  ;;  %6315 = vmatmul.mubr.msk.f32.vlgmr.msra.gmra.mxu1 %vm49_vm1, %v6508_v2  ;;  %6304 = vmatmul.mubr.msk.f32.gmra.mxu0 %vm49_vm1, %v6535_v7  ;;  %v4724_v59 = vadd.f32 %v7339_v11, %v4574_v9  ;;  %v5609_v37 = vld [vmem:[%s8546_s2] ss:$0 sm:$0xff]  ;;  %vm1383_vm5 = vcmp.gt.s32.totalorder %v7106_v56, 8 }
  0xd9   :  { %v501_v20 = vsel %vm7289_vm8, %v5969_v41, -1e+30  ;;  %v649_v42 = vsel %vm7317_vm9, %v5980_v43, -1e+30  ;;  %6317 = vmatprep.mubr.msk.f32.mxu1 %vm49_vm1, %v6516_v3  ;;  %6306 = vmatprep.mubr.msk.f32.mxu0 %vm49_vm1, %v6545_v10 }
  0xda   :  { %v509_v44 = vmax.f32 %v7256_v50, %v501_v20  ;;  %v454_v45 = vpop.f32.mrf.mxu0  ;;  %v657_v46 = vmax.f32 %v507_v30, %v649_v42  ;;  %v594_v47 = vpop.f32.mrf.mxu1  ;;  %6341 = vmatpush3.msk.msra.mxu1 %vm74_vm0, %v7205_v26 }
  0xdb   :  { %v500_v48 = vsel %vm7289_vm8, %v454_v45, -1e+30  ;;  %v648_v49 = vsel %vm7317_vm9, %v594_v47, -1e+30  ;;  %6368 = vmatprep.subr.msk.mxu1 %vm74_vm0, %v7339_v11  ;;  %v7463_v47 = vld [vmem:[%s8548_s4 + $0x10] sm:$0xff] }
  0xdc   :  { %v508_v50 = vmax.f32 %v7267_v63, %v500_v48  ;;  %v5972_v53 = vpop.f32.mrf.mxu0  ;;  %v656_v54 = vmax.f32 %v506_v33, %v648_v49  ;;  %v5983_v57 = vpop.f32.mrf.mxu1  ;;  %6318 = vmatmul.mubr.msk.f32.gmra.mxu1 %vm49_vm1, %v6535_v7  ;;  %6307 = vmatmul.mubr.msk.f32.gmra.mxu0 %vm49_vm1, %v6561_v13 }
  0xdd   :  { %v503_v58 = vsel %vm7289_vm8, %v5972_v53, -1e+30  ;;  %v651_v26 = vsel %vm7317_vm9, %v5983_v57, -1e+30  ;;  %6320 = vmatprep.mubr.msk.f32.mxu1 %vm49_vm1, %v6545_v10  ;;  %6309 = vmatprep.mubr.msk.f32.mxu0 %vm49_vm1, %v6568_v14  ;;  %v1092_v53 = vsel %vm1083_vm15, 1, %v6448_v35 }
  0xde   :  { %v511_v61 = vmax.f32 %v7287_v15, %v503_v58  ;;  %v464_v62 = vpop.f32.mrf.mxu0  ;;  %v659_v63 = vmax.f32 %v509_v44, %v651_v26  ;;  %v604_v0 = vpop.f32.mrf.mxu1  ;;  %v7491_v26 = vld [vmem:[%s8548_s4 + $0x28] sm:$0xff]  ;;  %v1096_v9 = vrot.slane %v1092_v53, %v7131_v60 }
  0xdf   :  { %v502_v55 = vsel %vm7289_vm8, %v464_v62, -1e+30  ;;  %v650_v6 = vsel %vm7317_vm9, %v604_v0, -1e+30  ;;  %v7509_v0 = vld [vmem:[%s8548_s4 + $0x30] sm:$0xff] }
  0xe0   :  { %v510_v12 = vmax.f32 %v360_v25, %v502_v55  ;;  %v5975_v16 = vpop.f32.mrf.mxu0  ;;  %v658_v19 = vmax.f32 %v508_v50, %v650_v6  ;;  %v5986_v21 = vpop.f32.mrf.mxu1  ;;  %6321 = vmatmul.mubr.msk.f32.gmra.mxu1 %vm49_vm1, %v6561_v13  ;;  %6310 = vmatmul.mubr.msk.f32.gmra.mxu0 %vm49_vm1, %v6584_v18  ;;  %vm7543_vm3 = vcmp.eq.s32.totalorder %v1096_v9, 1 }
  0xe1   :  { %v505_v15 = vsel %vm7289_vm8, %v5975_v16, -1e+30  ;;  %v653_v22 = vsel %vm7317_vm9, %v5986_v21, -1e+30  ;;  %6323 = vmatprep.mubr.msk.f32.mxu1 %vm49_vm1, %v6568_v14  ;;  %6328 = vmatprep.mubr.msk.f32.mxu0 %vm49_vm1, %v6503_v1 }
  0xe2   :  { %v513_v23 = vmax.f32 %v363_v31, %v505_v15  ;;  %v474_v24 = vpop.f32.mrf.mxu0  ;;  %v7394_v25 = vmax.f32 %v511_v61, %v653_v22  ;;  %v614_v13 = vpop.f32.mrf.mxu1 }
  0xe3   :  { %v504_v29 = vsel %vm7289_vm8, %v474_v24, -1e+30  ;;  %v652_v14 = vsel %vm7317_vm9, %v614_v13, -1e+30  ;;  %v7528_v24 = vld [vmem:[%s8548_s4 + $0x38] sm:$0xff] }
  0xe4   :  { %v512_v30 = vmax.f32 %v362_v40, %v504_v29  ;;  %v7406_v31 = vmax.f32 %v510_v12, %v652_v14  ;;  %v5994_v32 = vpop.f32.mrf.mxu0  ;;  %v5989_v34 = vpop.f32.mrf.mxu1  ;;  %6324 = vmatmul.mubr.msk.f32.gmra.mxu1 %vm49_vm1, %v6584_v18  ;;  %6329 = vmatmul.mubr.msk.f32.vlgmr.msra.gmra.mxu0 %vm49_vm1, %v6508_v2 }
  0xe5   :  { %v799_v38 = vsel %vm7396_vm12, %v5994_v32, -1e+30  ;;  %v655_v39 = vsel %vm7317_vm9, %v5989_v34, -1e+30  ;;  %6342 = vmatprep.mubr.msk.f32.mxu1 %vm49_vm1, %v6503_v1  ;;  %6331 = vmatprep.mubr.msk.f32.mxu0 %vm49_vm1, %v6516_v3  ;;  %v7442_v3 = vmul.f32 %v5609_v37, %v4724_v59 }
  0xe6   :  { %v807_v2 = vmax.f32 %v657_v46, %v799_v38  ;;  %v7428_v18 = vmax.f32 %v513_v23, %v655_v39  ;;  %v744_v33 = vpop.f32.mrf.mxu0  ;;  %v624_v40 = vpop.f32.mrf.mxu1  ;;  %6355 = vmatpush3.msk.msra.mxu0 %vm74_vm0, %v7306_v5  ;;  %v7450_v5 = vld [vmem:[%s8548_s4 + $0x8] sm:$0xff] }
  0xe7   :  { %v798_v43 = vsel %vm7396_vm12, %v744_v33, -1e+30  ;;  %v654_v1 = vsel %vm7317_vm9, %v624_v40, -1e+30  ;;  %6382 = vmatprep.subr.msk.mxu0 %vm4922_vm13, %v7415_v17  ;;  %vm1683_vm9 = vcmp.gt.s32.totalorder %v7106_v56, 10 }
  0xe8   :  { %v806_v20 = vmax.f32 %v656_v54, %v798_v43  ;;  %v7444_v42 = vmax.f32 %v512_v30, %v654_v1  ;;  %v5997_v44 = vpop.f32.mrf.mxu0  ;;  %v6008_v45 = vpop.f32.mrf.mxu1  ;;  %6343 = vmatmul.mubr.msk.f32.vlgmr.msra.gmra.mxu1 %vm49_vm1, %v7450_v5  ;;  %6332 = vmatmul.mubr.msk.f32.gmra.mxu0 %vm49_vm1, %v6535_v7 }
  0xe9   :  { %v801_v36 = vsel %vm7396_vm12, %v5997_v44, -1e+30  ;;  %v949_v46 = vsel %vm7430_vm14, %v6008_v45, -1e+30  ;;  %6345 = vmatprep.mubr.msk.f32.mxu1 %vm49_vm1, %v7463_v47  ;;  %6334 = vmatprep.mubr.msk.f32.mxu0 %vm49_vm1, %v6545_v10 }
  0xea   :  { %v809_v48 = vmax.f32 %v659_v63, %v801_v36  ;;  %v754_v49 = vpop.f32.mrf.mxu0  ;;  %v957_v7 = vmax.f32 %v807_v2, %v949_v46  ;;  %v894_v51 = vpop.f32.mrf.mxu1  ;;  %6369 = vmatpush3.msk.msra.mxu1 %vm74_vm0, %v7339_v11  ;;  %v7484_v11 = vld [vmem:[%s8548_s4 + $0x18] sm:$0xff]  ;;  %v7502_v63 = vld [vmem:[%s8548_s4 + $0x20] sm:$0xff] }
  0xeb   :  { %v800_v52 = vsel %vm7396_vm12, %v754_v49, -1e+30  ;;  %v948_v50 = vsel %vm7430_vm14, %v894_v51, -1e+30  ;;  %6396 = vmatprep.subr.msk.mxu1 %vm74_vm0, %v7442_v3 }
  0xec   :  { %v808_v10 = vmax.f32 %v658_v19, %v800_v52  ;;  %v6000_v54 = vpop.f32.mrf.mxu0  ;;  %v956_v57 = vmax.f32 %v806_v20, %v948_v50  ;;  %v6011_v58 = vpop.f32.mrf.mxu1  ;;  %6346 = vmatmul.mubr.msk.f32.gmra.mxu1 %vm49_vm1, %v7484_v11  ;;  %6335 = vmatmul.mubr.msk.f32.gmra.mxu0 %vm49_vm1, %v7491_v26  ;;  %v1242_v19 = vsel %vm1233_vm2, 1, %v6448_v35 }
  0xed   :  { %v803_v61 = vsel %vm7396_vm12, %v6000_v54, -1e+30  ;;  %v951_v62 = vsel %vm7430_vm14, %v6011_v58, -1e+30  ;;  %6348 = vmatprep.mubr.msk.f32.mxu1 %vm49_vm1, %v7502_v63  ;;  %6337 = vmatprep.mubr.msk.f32.mxu0 %vm49_vm1, %v7509_v0  ;;  %v1246_v32 = vrot.slane %v1242_v19, %v7131_v60 }
  0xee   :  { %v811_v4 = vmax.f32 %v7394_v25, %v803_v61  ;;  %v764_v55 = vpop.f32.mrf.mxu0  ;;  %v959_v6 = vmax.f32 %v809_v48, %v951_v62  ;;  %v904_v8 = vpop.f32.mrf.mxu1 }
  0xef   :  { %v802_v12 = vsel %vm7396_vm12, %v764_v55, -1e+30  ;;  %v950_v16 = vsel %vm7430_vm14, %v904_v8, -1e+30  ;;  %vm7564_vm4 = vcmp.eq.s32.totalorder %v1246_v32, 1  ;;  %v4888_v8 = vld [vmem:[%s8550_s6] sm:$0xff] }
  0xf0   :  { %v810_v21 = vmax.f32 %v7406_v31, %v802_v12  ;;  %v6003_v15 = vpop.f32.mrf.mxu0  ;;  %v958_v22 = vmax.f32 %v808_v10, %v950_v16  ;;  %v6014_v23 = vpop.f32.mrf.mxu1  ;;  %6349 = vmatmul.mubr.msk.f32.gmra.mxu1 %vm49_vm1, %v7491_v26  ;;  %6338 = vmatmul.mubr.msk.f32.gmra.mxu0 %vm49_vm1, %v7528_v24  ;;  %v1392_v10 = vsel %vm1383_vm5, 1, %v6448_v35  ;;  %v1542_v12 = vsel %vm1533_vm6, 1, %v6448_v35 }
  0xf1   :  { %v805_v25 = vsel %vm7396_vm12, %v6003_v15, -1e+30  ;;  %v953_v13 = vsel %vm7430_vm14, %v6014_v23, -1e+30  ;;  %6351 = vmatprep.mubr.msk.f32.mxu1 %vm49_vm1, %v7509_v0  ;;  %6356 = vmatprep.mubr.msk.f32.mxu0 %vm49_vm1, %v6424_v28 }
  0xf2   :  { %v813_v29 = vmax.f32 %v7428_v18, %v805_v25  ;;  %v774_v14 = vpop.f32.mrf.mxu0  ;;  %v961_v59 = vmax.f32 %v811_v4, %v953_v13  ;;  %v914_v30 = vpop.f32.mrf.mxu1  ;;  %v4889_v25 = vld [vmem:[%s8550_s6 + $0x8] sm:$0xff] }
  0xf3   :  { %v804_v34 = vsel %vm7396_vm12, %v774_v14, -1e+30  ;;  %v952_v37 = vsel %vm7430_vm14, %v914_v30, -1e+30  ;;  %v4890_v30 = vld [vmem:[%s8550_s6 + $0x10] sm:$0xff] }
  0xf4   :  { %v812_v38 = vmax.f32 %v7444_v42, %v804_v34  ;;  %v960_v39 = vmax.f32 %v810_v21, %v952_v37  ;;  %v6022_v2 = vpop.f32.mrf.mxu0  ;;  %v6017_v18 = vpop.f32.mrf.mxu1  ;;  %6352 = vmatmul.mubr.msk.f32.gmra.mxu1 %vm49_vm1, %v7528_v24  ;;  %6357 = vmatmul.mubr.msk.f32.vlgmr.msra.gmra.mxu0 %vm49_vm1, %v7450_v5  ;;  %v4883_v42 = vld [vmem:[%s8549_s5 + $0x18] sm:$0xff] }
  0xf5   :  { %v1099_v33 = vsel %vm7543_vm3, %v6022_v2, -1e+30  ;;  %v955_v27 = vsel %vm7430_vm14, %v6017_v18, -1e+30  ;;  %6370 = vmatprep.mubr.msk.f32.mxu1 %vm49_vm1, %v6424_v28  ;;  %6359 = vmatprep.mubr.msk.f32.mxu0 %vm49_vm1, %v7463_v47 }
  0xf6   :  { %v1107_v40 = vmax.f32 %v957_v7, %v1099_v33  ;;  %v963_v43 = vmax.f32 %v813_v29, %v955_v27  ;;  %v1044_v1 = vpop.f32.mrf.mxu0  ;;  %v924_v20 = vpop.f32.mrf.mxu1  ;;  %6383 = vmatpush3.msk.msra.mxu0 %vm4922_vm13, %v7415_v17  ;;  %v4881_v33 = vld [vmem:[%s8549_s5 + $0x8] sm:$0xff]  ;;  %vm2133_vm13 = vcmp.gt.s32.totalorder %v7106_v56, 13 }
  0xf7   :  { %v1098_v44 = vsel %vm7543_vm3, %v1044_v1, -1e+30  ;;  %v954_v45 = vsel %vm7430_vm14, %v924_v20, -1e+30 }
  0xf8   :  { %v1106_v36 = vmax.f32 %v956_v57, %v1098_v44  ;;  %v962_v46 = vmax.f32 %v812_v38, %v954_v45  ;;  %v6025_v48 = vpop.f32.mrf.mxu0  ;;  %v6036_v49 = vpop.f32.mrf.mxu1  ;;  %6371 = vmatmul.mubr.msk.f32.vlgmr.msra.gmra.mxu1 %vm49_vm1, %v7450_v5  ;;  %6360 = vmatmul.mubr.msk.f32.gmra.mxu0 %vm49_vm1, %v7484_v11  ;;  %v4882_v44 = vld [vmem:[%s8549_s5 + $0x10] sm:$0xff]  ;;  %v4892_v45 = vld [vmem:[%s8550_s6 + $0x20] sm:$0xff] }
  0xf9   :  { %v1101_v17 = vsel %vm7543_vm3, %v6025_v48, -1e+30  ;;  %v1249_v7 = vsel %vm7564_vm4, %v6036_v49, -1e+30  ;;  %6373 = vmatprep.mubr.msk.f32.mxu1 %vm49_vm1, %v7463_v47  ;;  %6362 = vmatprep.mubr.msk.f32.mxu0 %vm49_vm1, %v7502_v63 }
  0xfa   :  { %v1109_v41 = vmax.f32 %v959_v6, %v1101_v17  ;;  %v1054_v51 = vpop.f32.mrf.mxu0  ;;  %v1257_v52 = vmax.f32 %v1107_v40, %v1249_v7  ;;  %v1194_v50 = vpop.f32.mrf.mxu1  ;;  %6397 = vmatpush3.msk.msra.mxu1 %vm74_vm0, %v7442_v3  ;;  %v1396_v6 = vrot.slane %v1392_v10, %v7131_v60  ;;  %vm4897_vm0 = vcmask 23552  }
  0xfb   :  { %v1100_v5 = vsel %vm7543_vm3, %v1054_v51, -1e+30  ;;  %v1248_v53 = vsel %vm7564_vm4, %v1194_v50, -1e+30 }
  0xfc   :  { %v1108_v54 = vmax.f32 %v958_v22, %v1100_v5  ;;  %v6028_v47 = vpop.f32.mrf.mxu0  ;;  %v1256_v57 = vmax.f32 %v1106_v36, %v1248_v53  ;;  %v6039_v58 = vpop.f32.mrf.mxu1  ;;  %6374 = vmatmul.mubr.msk.f32.gmra.mxu1 %vm49_vm1, %v7484_v11  ;;  %6363 = vmatmul.mubr.msk.f32.gmra.mxu0 %vm49_vm1, %v7491_v26  ;;  %vm7636_vm7 = vcmp.eq.s32.totalorder %v1396_v6, 1 }
  0xfd   :  { %v1103_v3 = vsel %vm7543_vm3, %v6028_v47, -1e+30  ;;  %v1251_v61 = vsel %vm7564_vm4, %v6039_v58, -1e+30  ;;  %6376 = vmatprep.mubr.msk.f32.mxu1 %vm49_vm1, %v7502_v63  ;;  %6365 = vmatprep.mubr.msk.f32.mxu0 %vm49_vm1, %v7509_v0  ;;  %v4894_v47 = vld [vmem:[%s8550_s6 + $0x30] sm:$0xff] }
  0xfe   :  { %v1111_v62 = vmax.f32 %v961_v59, %v1103_v3  ;;  %v1064_v4 = vpop.f32.mrf.mxu0  ;;  %v7607_v55 = vmax.f32 %v1109_v41, %v1251_v61  ;;  %v1204_v11 = vpop.f32.mrf.mxu1  ;;  %v1546_v59 = vrot.slane %v1542_v12, %v7131_v60  ;;  %v1692_v3 = vsel %vm1683_vm9, 1, %v6448_v35 }
  0xff   :  { %v1102_v9 = vsel %vm7543_vm3, %v1064_v4, -1e+30  ;;  %v1250_v63 = vsel %vm7564_vm4, %v1204_v11, -1e+30 }
 0x100   :  { %v1110_v16 = vmax.f32 %v960_v39, %v1102_v9  ;;  %v6031_v19 = vpop.f32.mrf.mxu0  ;;  %v1258_v21 = vmax.f32 %v1108_v54, %v1250_v63  ;;  %v6042_v15 = vpop.f32.mrf.mxu1  ;;  %6377 = vmatmul.mubr.msk.f32.gmra.mxu1 %vm49_vm1, %v7491_v26  ;;  %6366 = vmatmul.mubr.msk.f32.gmra.mxu0 %vm49_vm1, %v7528_v24  ;;  %vm7668_vm8 = vcmp.eq.s32.totalorder %v1546_v59, 1  ;;  %v4884_v54 = vld [vmem:[%s8549_s5 + $0x20] sm:$0xff]  ;;  %v4895_v9 = vld [vmem:[%s8550_s6 + $0x38] sm:$0xff] }
 0x101   :  { %v1105_v22 = vsel %vm7543_vm3, %v6031_v19, -1e+30  ;;  %v1253_v23 = vsel %vm7564_vm4, %v6042_v15, -1e+30  ;;  %6379 = vmatprep.mubr.msk.f32.mxu1 %vm49_vm1, %v7509_v0  ;;  %6384 = vmatprep.mubr.msk.f32.mxu0 %vm4897_vm0, %v4888_v8  ;;  %v4880_v0 = vld [vmem:[%s8549_s5] sm:$0xff]  ;;  %v4885_v8 = vld [vmem:[%s8549_s5 + $0x28] sm:$0xff] }
 0x102   :  { %v1113_v13 = vmax.f32 %v963_v43, %v1105_v22  ;;  %v1074_v26 = vpop.f32.mrf.mxu0  ;;  %v7634_v28 = vmax.f32 %v1111_v62, %v1253_v23  ;;  %v1214_v29 = vpop.f32.mrf.mxu1  ;;  %v4886_v15 = vld [vmem:[%s8549_s5 + $0x30] sm:$0xff] }
 0x103   :  { %v1104_v32 = vsel %vm7543_vm3, %v1074_v26, -1e+30  ;;  %v1252_v34 = vsel %vm7564_vm4, %v1214_v29, -1e+30 }
 0x104   :  { %v1112_v37 = vmax.f32 %v962_v46, %v1104_v32  ;;  %v7651_v38 = vmax.f32 %v1110_v16, %v1252_v34  ;;  %v6050_v39 = vpop.f32.mrf.mxu0  ;;  %v6045_v2 = vpop.f32.mrf.mxu1  ;;  %6380 = vmatmul.mubr.msk.f32.gmra.mxu1 %vm49_vm1, %v7528_v24  ;;  %6385 = vmatmul.mubr.msk.f32.vlgmr.msra.gmra.mxu0 %vm4897_vm0, %v4889_v25  ;;  %v4891_v24 = vld [vmem:[%s8550_s6 + $0x18] sm:$0xff]  ;;  %v1842_v25 = vsel %vm1833_vm10, 1, %v6448_v35 }
 0x105   :  { %v1399_v18 = vsel %vm7636_vm7, %v6050_v39, -1e+30  ;;  %v1255_v31 = vsel %vm7564_vm4, %v6045_v2, -1e+30  ;;  %6398 = vmatprep.mubr.msk.f32.mxu1 %vm49_vm1, %v4880_v0  ;;  %6387 = vmatprep.mubr.msk.f32.mxu0 %vm4897_vm0, %v4890_v30  ;;  %v4887_v30 = vld [vmem:[%s8549_s5 + $0x38] sm:$0xff]  ;;  %v1846_v2 = vrot.slane %v1842_v25, %v7131_v60 }
 0x106   :  { %v1407_v27 = vmax.f32 %v1257_v52, %v1399_v18  ;;  %v1263_v40 = vmax.f32 %v1113_v13, %v1255_v31  ;;  %v1344_v43 = vpop.f32.mrf.mxu0  ;;  %v1224_v1 = vpop.f32.mrf.mxu1  ;;  %v4893_v52 = vld [vmem:[%s8550_s6 + $0x28] sm:$0xff] }
 0x107   :  { %v1398_v36 = vsel %vm7636_vm7, %v1344_v43, -1e+30  ;;  %v1254_v46 = vsel %vm7564_vm4, %v1224_v1, -1e+30  ;;  %vm7763_vm12 = vcmp.eq.s32.totalorder %v1846_v2, 1 }
 0x108   :  { %v1406_v48 = vmax.f32 %v1256_v57, %v1398_v36  ;;  %v1262_v49 = vmax.f32 %v1112_v37, %v1254_v46  ;;  %v6053_v17 = vpop.f32.mrf.mxu0  ;;  %v6064_v7 = vpop.f32.mrf.mxu1  ;;  %6399 = vmatmul.mubr.msk.f32.vlgmr.msra.gmra.mxu1 %vm49_vm1, %v4881_v33  ;;  %6388 = vmatmul.mubr.msk.f32.gmra.mxu0 %vm4897_vm0, %v4891_v24 }
 0x109   :  { %v1401_v41 = vsel %vm7636_vm7, %v6053_v17, -1e+30  ;;  %v1549_v51 = vsel %vm7668_vm8, %v6064_v7, -1e+30  ;;  %6401 = vmatprep.mubr.msk.f32.mxu1 %vm49_vm1, %v4882_v44  ;;  %6390 = vmatprep.mubr.msk.f32.mxu0 %vm4897_vm0, %v4892_v45 }
 0x10a   :  { %v1409_v50 = vmax.f32 %v7607_v55, %v1401_v41  ;;  %v1354_v5 = vpop.f32.mrf.mxu0  ;;  %v1557_v53 = vmax.f32 %v1407_v27, %v1549_v51  ;;  %v1494_v10 = vpop.f32.mrf.mxu1 }
 0x10b   :  { %v1400_v57 = vsel %vm7636_vm7, %v1354_v5, -1e+30  ;;  %v1548_v58 = vsel %vm7668_vm8, %v1494_v10, -1e+30 }
 0x10c   :  { %v1408_v61 = vmax.f32 %v1258_v21, %v1400_v57  ;;  %v6056_v62 = vpop.f32.mrf.mxu0  ;;  %v1556_v4 = vmax.f32 %v1406_v48, %v1548_v58  ;;  %v6067_v55 = vpop.f32.mrf.mxu1  ;;  %6402 = vmatmul.mubr.msk.f32.gmra.mxu1 %vm49_vm1, %v4883_v42  ;;  %6391 = vmatmul.mubr.msk.f32.gmra.mxu0 %vm4897_vm0, %v4893_v52  ;;  %v1696_v21 = vrot.slane %v1692_v3, %v7131_v60 }
 0x10d   :  { %v1403_v11 = vsel %vm7636_vm7, %v6056_v62, -1e+30  ;;  %v1551_v6 = vsel %vm7668_vm8, %v6067_v55, -1e+30  ;;  %6404 = vmatprep.mubr.msk.f32.mxu1 %vm49_vm1, %v4884_v54  ;;  %6393 = vmatprep.mubr.msk.f32.mxu0 %vm4897_vm0, %v4894_v47 }
 0x10e   :  { %v1411_v63 = vmax.f32 %v7634_v28, %v1403_v11  ;;  %v1364_v12 = vpop.f32.mrf.mxu0  ;;  %v1559_v16 = vmax.f32 %v1409_v50, %v1551_v6  ;;  %v1504_v19 = vpop.f32.mrf.mxu1  ;;  %vm7749_vm11 = vcmp.eq.s32.totalorder %v1696_v21, 1 }
 0x10f   :  { %v1402_v22 = vsel %vm7636_vm7, %v1364_v12, -1e+30  ;;  %v1550_v23 = vsel %vm7668_vm8, %v1504_v19, -1e+30 }
 0x110   :  { %v1410_v13 = vmax.f32 %v7651_v38, %v1402_v22  ;;  %v6059_v26 = vpop.f32.mrf.mxu0  ;;  %v1558_v28 = vmax.f32 %v1408_v61, %v1550_v23  ;;  %v6070_v29 = vpop.f32.mrf.mxu1  ;;  %6405 = vmatmul.mubr.msk.f32.gmra.mxu1 %vm49_vm1, %v4885_v8  ;;  %6394 = vmatmul.mubr.msk.f32.gmra.mxu0 %vm4897_vm0, %v4895_v9 }
 0x111   :  { %v1405_v59 = vsel %vm7636_vm7, %v6059_v26, -1e+30  ;;  %v1553_v0 = vsel %vm7668_vm8, %v6070_v29, -1e+30  ;;  %6407 = vmatprep.mubr.msk.f32.mxu1 %vm49_vm1, %v4886_v15 }
 0x112   :  { %v1413_v32 = vmax.f32 %v1263_v40, %v1405_v59  ;;  %v1374_v34 = vpop.f32.mrf.mxu0  ;;  %v1561_v37 = vmax.f32 %v1411_v63, %v1553_v0  ;;  %v1514_v38 = vpop.f32.mrf.mxu1 }
 0x113   :  { %v1404_v18 = vsel %vm7636_vm7, %v1374_v34, -1e+30  ;;  %v1552_v31 = vsel %vm7668_vm8, %v1514_v38, -1e+30 }
 0x114   :  { %v1412_v33 = vmax.f32 %v1262_v49, %v1404_v18  ;;  %v1560_v24 = vmax.f32 %v1410_v13, %v1552_v31  ;;  %v6078_v27 = vpop.f32.mrf.mxu0  ;;  %v6073_v43 = vpop.f32.mrf.mxu1  ;;  %6408 = vmatmul.mubr.msk.f32.gmra.mxu1 %vm49_vm1, %v4887_v30  ;;  %vm1983_vm1 = vcmp.gt.s32.totalorder %v7106_v56, 12  ;;  %v2142_v56 = vsel %vm2133_vm13, 1, %v6448_v35 }
 0x115   :  { %v1699_v40 = vsel %vm7749_vm11, %v6078_v27, -1e+30  ;;  %v1555_v1 = vsel %vm7668_vm8, %v6073_v43, -1e+30  ;;  %v1992_v47 = vsel %vm1983_vm1, 1, %v6448_v35  ;;  %v2146_v59 = vrot.slane %v2142_v56, %v7131_v60 }
 0x116   :  { %v1707_v44 = vmax.f32 %v1557_v53, %v1699_v40  ;;  %v1563_v45 = vmax.f32 %v1413_v32, %v1555_v1  ;;  %v1644_v36 = vpop.f32.mrf.mxu0  ;;  %v1524_v14 = vpop.f32.mrf.mxu1  ;;  %v1996_v9 = vrot.slane %v1992_v47, %v7131_v60 }
 0x117   :  { %v1698_v48 = vsel %vm7749_vm11, %v1644_v36, -1e+30  ;;  %v1554_v49 = vsel %vm7668_vm8, %v1524_v14, -1e+30  ;;  %vm7809_vm15 = vcmp.eq.s32.totalorder %v2146_v59, 1 }
 0x118   :  { %v1706_v17 = vmax.f32 %v1556_v4, %v1698_v48  ;;  %v1562_v7 = vmax.f32 %v1412_v33, %v1554_v49  ;;  %v6081_v41 = vpop.f32.mrf.mxu0  ;;  %v6092_v51 = vpop.f32.mrf.mxu1  ;;  %vm7796_vm14 = vcmp.eq.s32.totalorder %v1996_v9, 1  ;;  %v7820_v14 = vld [vmem:[%s8545_s1] sm:$0x1]  ;;  %s6449_s1 = smov [#allocation2]  }
 0x119   :  { %v1701_v42 = vsel %vm7749_vm11, %v6081_v41, -1e+30  ;;  %v1849_v52 = vsel %vm7763_vm12, %v6092_v51, -1e+30  ;;  %vm2283_vm2 = vcmp.gt.s32.totalorder %v7820_v14, 14  ;;  %vm2433_vm3 = vcmp.gt.s32.totalorder %v7820_v14, 15 }
 0x11a   :  { %v1709_v50 = vmax.f32 %v1559_v16, %v1701_v42  ;;  %v1654_v5 = vpop.f32.mrf.mxu0  ;;  %v1857_v53 = vmax.f32 %v1707_v44, %v1849_v52  ;;  %v1794_v10 = vpop.f32.mrf.mxu1  ;;  %v2292_v52 = vsel %vm2283_vm2, 1, %v6448_v35  ;;  %vm2583_vm6 = vcmp.gt.s32.totalorder %v7820_v14, 16  ;;  %s5279_s12 = sshll.u32 %s6449_s1, 4  ;;  %s5280_s12 = int_to_ptr.vmem [resolvable:$true] %s5279_s12 }
 0x11b   :  { %v1700_v20 = vsel %vm7749_vm11, %v1654_v5, -1e+30  ;;  %v1848_v54 = vsel %vm7763_vm12, %v1794_v10, -1e+30  ;;  %vm2733_vm0 = vcmp.gt.s32.totalorder %v7820_v14, 17  ;;  %vm2883_vm9 = vcmp.gt.s32.totalorder %v7820_v14, 18  ;;  %p6431_p1 = scmp.lt.s32.totalorder %s5280_s12, %s5280_s12 }
 0x11c   :  { %v1708_v57 = vmax.f32 %v1558_v28, %v1700_v20  ;;  %v6084_v58 = vpop.f32.mrf.mxu0  ;;  %v1856_v3 = vmax.f32 %v1706_v17, %v1848_v54  ;;  %v6095_v61 = vpop.f32.mrf.mxu1  ;;  %vm3033_vm10 = vcmp.gt.s32.totalorder %v7820_v14, 19  ;;  %vm3183_vm1 = vcmp.gt.s32.totalorder %v7820_v14, 20  ;;  %s6426_s13 = scalar_lea.vmem %s5280_s12, 1024 }
 0x11d   :  { %v1703_v62 = vsel %vm7749_vm11, %v6084_v58, -1e+30  ;;  %v1851_v4 = vsel %vm7763_vm12, %v6095_v61, -1e+30  ;;  %v2296_v61 = vrot.slane %v2292_v52, %v7131_v60  ;;  %vm3333_vm13 = vcmp.gt.s32.totalorder %v7820_v14, 21  ;;  %p6427_p0 = scmp.ne.s32.totalorder %s5280_s12, %s6426_s13  ;;  %p6432_p2 = scmp.lt.s32.totalorder %s6426_s13, %s6426_s13 }
 0x11e   :  { %v1711_v55 = vmax.f32 %v1561_v37, %v1703_v62  ;;  %v1664_v11 = vpop.f32.mrf.mxu0  ;;  %v1859_v6 = vmax.f32 %v1709_v50, %v1851_v4  ;;  %v1804_v8 = vpop.f32.mrf.mxu1  ;;  %vm3483_vm2 = vcmp.gt.s32.totalorder %v7820_v14, 22 }
 0x11f   :  { %v1702_v63 = vsel %vm7749_vm11, %v1664_v11, -1e+30  ;;  %v1850_v12 = vsel %vm7763_vm12, %v1804_v8, -1e+30  ;;  %vm7847_vm4 = vcmp.eq.s32.totalorder %v2296_v61, 1  ;;  %p6433_p3 = por %p6432_p2, %p6431_p1 }
 0x120   :  { %v1710_v16 = vmax.f32 %v1560_v24, %v1702_v63  ;;  %v6087_v19 = vpop.f32.mrf.mxu0  ;;  %v1858_v21 = vmax.f32 %v1708_v57, %v1850_v12  ;;  %v6098_v15 = vpop.f32.mrf.mxu1 }
 0x121   :  { %v1705_v22 = vsel %vm7749_vm11, %v6087_v19, -1e+30  ;;  %v1853_v23 = vsel %vm7763_vm12, %v6098_v15, -1e+30  ;;  %p6434_p4 = pnand %p6433_p3, %p6427_p0 }
 0x122   :  { %v1713_v25 = vmax.f32 %v1563_v45, %v1705_v22  ;;  %v1674_v13 = vpop.f32.mrf.mxu0  ;;  %v1861_v26 = vmax.f32 %v1711_v55, %v1853_v23  ;;  %v1814_v28 = vpop.f32.mrf.mxu1  ;;  %v2442_v55 = vsel %vm2433_vm3, 1, %v6448_v35  ;;  %vm3633_vm3 = vcmp.gt.s32.totalorder %v7820_v14, 23 }
 0x123   :  { %v1704_v0 = vsel %vm7749_vm11, %v1674_v13, -1e+30  ;;  %v1852_v30 = vsel %vm7763_vm12, %v1814_v28, -1e+30  ;;  %v2446_v22 = vrot.slane %v2442_v55, %v7131_v60 }
 0x124   :  { %v1712_v32 = vmax.f32 %v1562_v7, %v1704_v0  ;;  %v1860_v34 = vmax.f32 %v1710_v16, %v1852_v30  ;;  %v6106_v37 = vpop.f32.mrf.mxu0  ;;  %v6101_v38 = vpop.f32.mrf.mxu1 }
 0x125   :  { %v1999_v2 = vsel %vm7796_vm14, %v6106_v37, -1e+30  ;;  %v1855_v18 = vsel %vm7763_vm12, %v6101_v38, -1e+30  ;;  %vm7860_vm5 = vcmp.eq.s32.totalorder %v2446_v22, 1 }
 0x126   :  { %v2007_v31 = vmax.f32 %v1857_v53, %v1999_v2  ;;  %v1863_v33 = vmax.f32 %v1713_v25, %v1855_v18  ;;  %v1944_v24 = vpop.f32.mrf.mxu0  ;;  %v1824_v27 = vpop.f32.mrf.mxu1 }
 0x127   :  { %v1998_v43 = vsel %vm7796_vm14, %v1944_v24, -1e+30  ;;  %v1854_v40 = vsel %vm7763_vm12, %v1824_v27, -1e+30 }
 0x128   :  { %v2006_v1 = vmax.f32 %v1856_v3, %v1998_v43  ;;  %v1862_v44 = vmax.f32 %v1712_v32, %v1854_v40  ;;  %v6109_v45 = vpop.f32.mrf.mxu0  ;;  %v6120_v36 = vpop.f32.mrf.mxu1 }
 0x129   :  { %v2001_v48 = vsel %vm7796_vm14, %v6109_v45, -1e+30  ;;  %v2149_v49 = vsel %vm7809_vm15, %v6120_v36, -1e+30 }
 0x12a   :  { %v2009_v17 = vmax.f32 %v1859_v6, %v2001_v48  ;;  %v1954_v46 = vpop.f32.mrf.mxu0  ;;  %v2157_v7 = vmax.f32 %v2007_v31, %v2149_v49  ;;  %v2094_v41 = vpop.f32.mrf.mxu1  ;;  %v2592_v49 = vsel %vm2583_vm6, 1, %v6448_v35  ;;  %vm3783_vm6 = vcmp.gt.s32.totalorder %v7820_v14, 24 }
 0x12b   :  { %v2000_v51 = vsel %vm7796_vm14, %v1954_v46, -1e+30  ;;  %v2148_v42 = vsel %vm7809_vm15, %v2094_v41, -1e+30 }
 0x12c   :  { %v2008_v50 = vmax.f32 %v1858_v21, %v2000_v51  ;;  %v6112_v5 = vpop.f32.mrf.mxu0  ;;  %v2156_v53 = vmax.f32 %v2006_v1, %v2148_v42  ;;  %v6123_v10 = vpop.f32.mrf.mxu1 }
 0x12d   :  { %v2003_v20 = vsel %vm7796_vm14, %v6112_v5, -1e+30  ;;  %v2151_v54 = vsel %vm7809_vm15, %v6123_v10, -1e+30  ;;  %v2596_v10 = vrot.slane %v2592_v49, %v7131_v60 }
 0x12e   :  { %v2011_v47 = vmax.f32 %v1861_v26, %v2003_v20  ;;  %v1964_v57 = vpop.f32.mrf.mxu0  ;;  %v2159_v58 = vmax.f32 %v2009_v17, %v2151_v54  ;;  %v2104_v3 = vpop.f32.mrf.mxu1 }
 0x12f   :  { %v2002_v62 = vsel %vm7796_vm14, %v1964_v57, -1e+30  ;;  %v2150_v4 = vsel %vm7809_vm15, %v2104_v3, -1e+30  ;;  %vm7893_vm7 = vcmp.eq.s32.totalorder %v2596_v10, 1 }
 0x130   :  { %v2010_v11 = vmax.f32 %v1860_v34, %v2002_v62  ;;  %v6115_v6 = vpop.f32.mrf.mxu0  ;;  %v2158_v8 = vmax.f32 %v2008_v50, %v2150_v4  ;;  %v6126_v9 = vpop.f32.mrf.mxu1 }
 0x131   :  { %v2005_v63 = vsel %vm7796_vm14, %v6115_v6, -1e+30  ;;  %v2153_v12 = vsel %vm7809_vm15, %v6126_v9, -1e+30 }
 0x132   :  { %v2013_v56 = vmax.f32 %v1863_v33, %v2005_v63  ;;  %v1974_v16 = vpop.f32.mrf.mxu0  ;;  %v2161_v19 = vmax.f32 %v2011_v47, %v2153_v12  ;;  %v2114_v21 = vpop.f32.mrf.mxu1  ;;  %v2742_v47 = vsel %vm2733_vm0, 1, %v6448_v35  ;;  %vm3933_vm0 = vcmp.gt.s32.totalorder %v7820_v14, 25 }
 0x133   :  { %v2004_v23 = vsel %vm7796_vm14, %v1974_v16, -1e+30  ;;  %v2152_v25 = vsel %vm7809_vm15, %v2114_v21, -1e+30  ;;  %v2746_v63 = vrot.slane %v2742_v47, %v7131_v60 }
 0x134   :  { %v2012_v13 = vmax.f32 %v1862_v44, %v2004_v23  ;;  %v2160_v26 = vmax.f32 %v2010_v11, %v2152_v25  ;;  %v6134_v28 = vpop.f32.mrf.mxu0  ;;  %v6129_v59 = vpop.f32.mrf.mxu1 }
 0x135   :  { %v2299_v0 = vsel %vm7847_vm4, %v6134_v28, -1e+30  ;;  %v2155_v30 = vsel %vm7809_vm15, %v6129_v59, -1e+30  ;;  %vm7906_vm8 = vcmp.eq.s32.totalorder %v2746_v63, 1 }
 0x136   :  { %v2307_v32 = vmax.f32 %v2157_v7, %v2299_v0  ;;  %v2163_v34 = vmax.f32 %v2013_v56, %v2155_v30  ;;  %v2244_v37 = vpop.f32.mrf.mxu0  ;;  %v2124_v38 = vpop.f32.mrf.mxu1 }
 0x137   :  { %v2298_v2 = vsel %vm7847_vm4, %v2244_v37, -1e+30  ;;  %v2154_v18 = vsel %vm7809_vm15, %v2124_v38, -1e+30 }
 0x138   :  { %v2306_v31 = vmax.f32 %v2156_v53, %v2298_v2  ;;  %v2162_v33 = vmax.f32 %v2012_v13, %v2154_v18  ;;  %v6137_v24 = vpop.f32.mrf.mxu0  ;;  %v6148_v27 = vpop.f32.mrf.mxu1 }
 0x139   :  { %v2301_v43 = vsel %vm7847_vm4, %v6137_v24, -1e+30  ;;  %v2449_v40 = vsel %vm7860_vm5, %v6148_v27, -1e+30 }
 0x13a   :  { %v2309_v1 = vmax.f32 %v2159_v58, %v2301_v43  ;;  %v2254_v44 = vpop.f32.mrf.mxu0  ;;  %v2457_v45 = vmax.f32 %v2307_v32, %v2449_v40  ;;  %v2394_v36 = vpop.f32.mrf.mxu1  ;;  %v2892_v40 = vsel %vm2883_vm9, 1, %v6448_v35  ;;  %vm4233_vm9 = vcmp.gt.s32.totalorder %v7820_v14, 27 }
 0x13b   :  { %v2300_v39 = vsel %vm7847_vm4, %v2254_v44, -1e+30  ;;  %v2448_v48 = vsel %vm7860_vm5, %v2394_v36, -1e+30 }
 0x13c   :  { %v2308_v17 = vmax.f32 %v2158_v8, %v2300_v39  ;;  %v6140_v46 = vpop.f32.mrf.mxu0  ;;  %v2456_v7 = vmax.f32 %v2306_v31, %v2448_v48  ;;  %v6151_v41 = vpop.f32.mrf.mxu1 }
 0x13d   :  { %v2303_v51 = vsel %vm7847_vm4, %v6140_v46, -1e+30  ;;  %v2451_v42 = vsel %vm7860_vm5, %v6151_v41, -1e+30  ;;  %v2896_v41 = vrot.slane %v2892_v40, %v7131_v60 }
 0x13e   :  { %v2311_v52 = vmax.f32 %v2161_v19, %v2303_v51  ;;  %v2264_v50 = vpop.f32.mrf.mxu0  ;;  %v2459_v5 = vmax.f32 %v2309_v1, %v2451_v42  ;;  %v2404_v53 = vpop.f32.mrf.mxu1 }
 0x13f   :  { %v2302_v20 = vsel %vm7847_vm4, %v2264_v50, -1e+30  ;;  %v2450_v54 = vsel %vm7860_vm5, %v2404_v53, -1e+30  ;;  %vm7939_vm11 = vcmp.eq.s32.totalorder %v2896_v41, 1 }
 0x140   :  { %v2310_v57 = vmax.f32 %v2160_v26, %v2302_v20  ;;  %v6143_v58 = vpop.f32.mrf.mxu0  ;;  %v2458_v3 = vmax.f32 %v2308_v17, %v2450_v54  ;;  %v6154_v61 = vpop.f32.mrf.mxu1 }
 0x141   :  { %v2305_v62 = vsel %vm7847_vm4, %v6143_v58, -1e+30  ;;  %v2453_v4 = vsel %vm7860_vm5, %v6154_v61, -1e+30 }
 0x142   :  { %v2313_v55 = vmax.f32 %v2163_v34, %v2305_v62  ;;  %v2274_v11 = vpop.f32.mrf.mxu0  ;;  %v2461_v6 = vmax.f32 %v2311_v52, %v2453_v4  ;;  %v2414_v8 = vpop.f32.mrf.mxu1  ;;  %v3042_v52 = vsel %vm3033_vm10, 1, %v6448_v35  ;;  %vm4383_vm10 = vcmp.gt.s32.totalorder %v7820_v14, 28 }
 0x143   :  { %v2304_v12 = vsel %vm7847_vm4, %v2274_v11, -1e+30  ;;  %v2452_v56 = vsel %vm7860_vm5, %v2414_v8, -1e+30  ;;  %v3046_v62 = vrot.slane %v3042_v52, %v7131_v60 }
 0x144   :  { %v2312_v16 = vmax.f32 %v2162_v33, %v2304_v12  ;;  %v2460_v19 = vmax.f32 %v2310_v57, %v2452_v56  ;;  %v6162_v21 = vpop.f32.mrf.mxu0  ;;  %v6157_v22 = vpop.f32.mrf.mxu1 }
 0x145   :  { %v2599_v23 = vsel %vm7893_vm7, %v6162_v21, -1e+30  ;;  %v2455_v25 = vsel %vm7860_vm5, %v6157_v22, -1e+30  ;;  %vm7952_vm12 = vcmp.eq.s32.totalorder %v3046_v62, 1 }
 0x146   :  { %v2607_v13 = vmax.f32 %v2457_v45, %v2599_v23  ;;  %v2463_v26 = vmax.f32 %v2313_v55, %v2455_v25  ;;  %v2544_v28 = vpop.f32.mrf.mxu0  ;;  %v2424_v59 = vpop.f32.mrf.mxu1 }
 0x147   :  { %v2598_v0 = vsel %vm7893_vm7, %v2544_v28, -1e+30  ;;  %v2454_v30 = vsel %vm7860_vm5, %v2424_v59, -1e+30 }
 0x148   :  { %v2606_v32 = vmax.f32 %v2456_v7, %v2598_v0  ;;  %v2462_v34 = vmax.f32 %v2312_v16, %v2454_v30  ;;  %v6165_v37 = vpop.f32.mrf.mxu0  ;;  %v6176_v38 = vpop.f32.mrf.mxu1 }
 0x149   :  { %v2601_v2 = vsel %vm7893_vm7, %v6165_v37, -1e+30  ;;  %v2749_v18 = vsel %vm7906_vm8, %v6176_v38, -1e+30 }
 0x14a   :  { %v2609_v31 = vmax.f32 %v2459_v5, %v2601_v2  ;;  %v2554_v33 = vpop.f32.mrf.mxu0  ;;  %v2757_v24 = vmax.f32 %v2607_v13, %v2749_v18  ;;  %v2694_v27 = vpop.f32.mrf.mxu1  ;;  %v3192_v18 = vsel %vm3183_vm1, 1, %v6448_v35  ;;  %vm4683_vm1 = vcmp.gt.s32.totalorder %v7820_v14, 30 }
 0x14b   :  { %v2600_v29 = vsel %vm7893_vm7, %v2554_v33, -1e+30  ;;  %v2748_v43 = vsel %vm7906_vm8, %v2694_v27, -1e+30 }
 0x14c   :  { %v2608_v1 = vmax.f32 %v2458_v3, %v2600_v29  ;;  %v6168_v44 = vpop.f32.mrf.mxu0  ;;  %v2756_v45 = vmax.f32 %v2606_v32, %v2748_v43  ;;  %v6179_v36 = vpop.f32.mrf.mxu1 }
 0x14d   :  { %v2603_v39 = vsel %vm7893_vm7, %v6168_v44, -1e+30  ;;  %v2751_v48 = vsel %vm7906_vm8, %v6179_v36, -1e+30  ;;  %v3196_v36 = vrot.slane %v3192_v18, %v7131_v60 }
 0x14e   :  { %v2611_v49 = vmax.f32 %v2461_v6, %v2603_v39  ;;  %v2564_v17 = vpop.f32.mrf.mxu0  ;;  %v2759_v46 = vmax.f32 %v2609_v31, %v2751_v48  ;;  %v2704_v7 = vpop.f32.mrf.mxu1 }
 0x14f   :  { %v2602_v51 = vsel %vm7893_vm7, %v2564_v17, -1e+30  ;;  %v2750_v42 = vsel %vm7906_vm8, %v2704_v7, -1e+30  ;;  %vm7985_vm14 = vcmp.eq.s32.totalorder %v3196_v36, 1 }
 0x150   :  { %v2610_v50 = vmax.f32 %v2460_v19, %v2602_v51  ;;  %v6171_v5 = vpop.f32.mrf.mxu0  ;;  %v2758_v53 = vmax.f32 %v2608_v1, %v2750_v42  ;;  %v6182_v10 = vpop.f32.mrf.mxu1 }
 0x151   :  { %v2605_v20 = vsel %vm7893_vm7, %v6171_v5, -1e+30  ;;  %v2753_v54 = vsel %vm7906_vm8, %v6182_v10, -1e+30 }
 0x152   :  { %v2613_v47 = vmax.f32 %v2463_v26, %v2605_v20  ;;  %v2574_v57 = vpop.f32.mrf.mxu0  ;;  %v2761_v58 = vmax.f32 %v2611_v49, %v2753_v54  ;;  %v2714_v3 = vpop.f32.mrf.mxu1  ;;  %v3342_v49 = vsel %vm3333_vm13, 1, %v6448_v35  ;;  %vm4833_vm13 = vcmp.gt.s32.totalorder %v7820_v14, 31 }
 0x153   :  { %v2604_v4 = vsel %vm7893_vm7, %v2574_v57, -1e+30  ;;  %v2752_v55 = vsel %vm7906_vm8, %v2714_v3, -1e+30  ;;  %v3346_v20 = vrot.slane %v3342_v49, %v7131_v60  ;;  %vm5219_vm7 = vcmp.lt.s32.totalorder %v7820_v14, 32 }
 0x154   :  { %v2612_v11 = vmax.f32 %v2462_v34, %v2604_v4  ;;  %v2760_v6 = vmax.f32 %v2610_v50, %v2752_v55  ;;  %v6190_v8 = vpop.f32.mrf.mxu0  ;;  %v6185_v63 = vpop.f32.mrf.mxu1 }
 0x155   :  { %v2899_v12 = vsel %vm7939_vm11, %v6190_v8, -1e+30  ;;  %v2755_v56 = vsel %vm7906_vm8, %v6185_v63, -1e+30  ;;  %vm7998_vm15 = vcmp.eq.s32.totalorder %v3346_v20, 1 }
 0x156   :  { %v2907_v16 = vmax.f32 %v2757_v24, %v2899_v12  ;;  %v2763_v19 = vmax.f32 %v2613_v47, %v2755_v56  ;;  %v2844_v21 = vpop.f32.mrf.mxu0  ;;  %v2724_v22 = vpop.f32.mrf.mxu1 }
 0x157   :  { %v2898_v23 = vsel %vm7939_vm11, %v2844_v21, -1e+30  ;;  %v2754_v25 = vsel %vm7906_vm8, %v2724_v22, -1e+30  ;;  %vm4083_vm8 = vcmp.gt.s32.totalorder %v7820_v14, 26 }
 0x158   :  { %v2906_v13 = vmax.f32 %v2756_v45, %v2898_v23  ;;  %v2762_v26 = vmax.f32 %v2612_v11, %v2754_v25  ;;  %v6193_v28 = vpop.f32.mrf.mxu0  ;;  %v6204_v59 = vpop.f32.mrf.mxu1 }
 0x159   :  { %v2901_v0 = vsel %vm7939_vm11, %v6193_v28, -1e+30  ;;  %v3049_v30 = vsel %vm7952_vm12, %v6204_v59, -1e+30 }
 0x15a   :  { %v2909_v32 = vmax.f32 %v2759_v46, %v2901_v0  ;;  %v2854_v34 = vpop.f32.mrf.mxu0  ;;  %v3057_v37 = vmax.f32 %v2907_v16, %v3049_v30  ;;  %v2994_v38 = vpop.f32.mrf.mxu1  ;;  %v3492_v30 = vsel %vm3483_vm2, 1, %v6448_v35 }
 0x15b   :  { %v2900_v15 = vsel %vm7939_vm11, %v2854_v34, -1e+30  ;;  %v3048_v2 = vsel %vm7952_vm12, %v2994_v38, -1e+30 }
 0x15c   :  { %v2908_v31 = vmax.f32 %v2758_v53, %v2900_v15  ;;  %v6196_v33 = vpop.f32.mrf.mxu0  ;;  %v3056_v24 = vmax.f32 %v2906_v13, %v3048_v2  ;;  %v6207_v27 = vpop.f32.mrf.mxu1 }
 0x15d   :  { %v2903_v29 = vsel %vm7939_vm11, %v6196_v33, -1e+30  ;;  %v3051_v43 = vsel %vm7952_vm12, %v6207_v27, -1e+30  ;;  %v3496_v27 = vrot.slane %v3492_v30, %v7131_v60 }
 0x15e   :  { %v2911_v40 = vmax.f32 %v2761_v58, %v2903_v29  ;;  %v2864_v1 = vpop.f32.mrf.mxu0  ;;  %v3059_v44 = vmax.f32 %v2909_v32, %v3051_v43  ;;  %v3004_v45 = vpop.f32.mrf.mxu1 }
 0x15f   :  { %v2902_v39 = vsel %vm7939_vm11, %v2864_v1, -1e+30  ;;  %v3050_v48 = vsel %vm7952_vm12, %v3004_v45, -1e+30  ;;  %vm8031_vm4 = vcmp.eq.s32.totalorder %v3496_v27, 1 }
 0x160   :  { %v2910_v17 = vmax.f32 %v2760_v6, %v2902_v39  ;;  %v6199_v46 = vpop.f32.mrf.mxu0  ;;  %v3058_v7 = vmax.f32 %v2908_v31, %v3050_v48  ;;  %v6210_v41 = vpop.f32.mrf.mxu1 }
 0x161   :  { %v2905_v51 = vsel %vm7939_vm11, %v6199_v46, -1e+30  ;;  %v3053_v42 = vsel %vm7952_vm12, %v6210_v41, -1e+30 }
 0x162   :  { %v2913_v52 = vmax.f32 %v2763_v19, %v2905_v51  ;;  %v2874_v50 = vpop.f32.mrf.mxu0  ;;  %v3061_v5 = vmax.f32 %v2911_v40, %v3053_v42  ;;  %v3014_v53 = vpop.f32.mrf.mxu1  ;;  %v3642_v40 = vsel %vm3633_vm3, 1, %v6448_v35 }
 0x163   :  { %v2904_v54 = vsel %vm7939_vm11, %v2874_v50, -1e+30  ;;  %v3052_v47 = vsel %vm7952_vm12, %v3014_v53, -1e+30  ;;  %v3646_v51 = vrot.slane %v3642_v40, %v7131_v60 }
 0x164   :  { %v2912_v57 = vmax.f32 %v2762_v26, %v2904_v54  ;;  %v3060_v58 = vmax.f32 %v2910_v17, %v3052_v47  ;;  %v6218_v3 = vpop.f32.mrf.mxu0  ;;  %v6213_v62 = vpop.f32.mrf.mxu1 }
 0x165   :  { %v3199_v4 = vsel %vm7985_vm14, %v6218_v3, -1e+30  ;;  %v3055_v55 = vsel %vm7952_vm12, %v6213_v62, -1e+30  ;;  %vm8044_vm5 = vcmp.eq.s32.totalorder %v3646_v51, 1 }
 0x166   :  { %v3207_v11 = vmax.f32 %v3057_v37, %v3199_v4  ;;  %v3063_v6 = vmax.f32 %v2913_v52, %v3055_v55  ;;  %v3144_v8 = vpop.f32.mrf.mxu0  ;;  %v3024_v63 = vpop.f32.mrf.mxu1 }
 0x167   :  { %v3198_v12 = vsel %vm7985_vm14, %v3144_v8, -1e+30  ;;  %v3054_v56 = vsel %vm7952_vm12, %v3024_v63, -1e+30  ;;  %vm4533_vm12 = vcmp.gt.s32.totalorder %v7820_v14, 29 }
 0x168   :  { %v3206_v16 = vmax.f32 %v3056_v24, %v3198_v12  ;;  %v3062_v19 = vmax.f32 %v2912_v57, %v3054_v56  ;;  %v6221_v21 = vpop.f32.mrf.mxu0  ;;  %v6232_v22 = vpop.f32.mrf.mxu1  ;;  %v4542_v14 = vsel %vm4533_vm12, 1, %v6448_v35 }
 0x169   :  { %v3201_v23 = vsel %vm7985_vm14, %v6221_v21, -1e+30  ;;  %v3349_v25 = vsel %vm7998_vm15, %v6232_v22, -1e+30 }
 0x16a   :  { %v3209_v13 = vmax.f32 %v3059_v44, %v3201_v23  ;;  %v3154_v26 = vpop.f32.mrf.mxu0  ;;  %v3357_v28 = vmax.f32 %v3207_v11, %v3349_v25  ;;  %v3294_v59 = vpop.f32.mrf.mxu1 }
 0x16b   :  { %v3200_v9 = vsel %vm7985_vm14, %v3154_v26, -1e+30  ;;  %v3348_v0 = vsel %vm7998_vm15, %v3294_v59, -1e+30 }
 0x16c   :  { %v3208_v32 = vmax.f32 %v3058_v7, %v3200_v9  ;;  %v6224_v34 = vpop.f32.mrf.mxu0  ;;  %v3356_v37 = vmax.f32 %v3206_v16, %v3348_v0  ;;  %v6235_v38 = vpop.f32.mrf.mxu1 }
 0x16d   :  { %v3203_v15 = vsel %vm7985_vm14, %v6224_v34, -1e+30  ;;  %v3351_v2 = vsel %vm7998_vm15, %v6235_v38, -1e+30 }
 0x16e   :  { %v3211_v18 = vmax.f32 %v3061_v5, %v3203_v15  ;;  %v3164_v31 = vpop.f32.mrf.mxu0  ;;  %v3359_v33 = vmax.f32 %v3209_v13, %v3351_v2  ;;  %v3304_v24 = vpop.f32.mrf.mxu1 }
 0x16f   :  { %v3202_v29 = vsel %vm7985_vm14, %v3164_v31, -1e+30  ;;  %v3350_v43 = vsel %vm7998_vm15, %v3304_v24, -1e+30 }
 0x170   :  { %v3210_v1 = vmax.f32 %v3060_v58, %v3202_v29  ;;  %v6227_v44 = vpop.f32.mrf.mxu0  ;;  %v3358_v45 = vmax.f32 %v3208_v32, %v3350_v43  ;;  %v6238_v36 = vpop.f32.mrf.mxu1 }
 0x171   :  { %v3205_v39 = vsel %vm7985_vm14, %v6227_v44, -1e+30  ;;  %v3353_v48 = vsel %vm7998_vm15, %v6238_v36, -1e+30 }
 0x172   :  { %v3213_v49 = vmax.f32 %v3063_v6, %v3205_v39  ;;  %v3174_v17 = vpop.f32.mrf.mxu0  ;;  %v3361_v46 = vmax.f32 %v3211_v18, %v3353_v48  ;;  %v3314_v7 = vpop.f32.mrf.mxu1 }
 0x173   :  { %v3204_v42 = vsel %vm7985_vm14, %v3174_v17, -1e+30  ;;  %v3352_v52 = vsel %vm7998_vm15, %v3314_v7, -1e+30 }
 0x174   :  { %v3212_v50 = vmax.f32 %v3062_v19, %v3204_v42  ;;  %v3360_v5 = vmax.f32 %v3210_v1, %v3352_v52  ;;  %v6246_v53 = vpop.f32.mrf.mxu0  ;;  %v6241_v20 = vpop.f32.mrf.mxu1 }
 0x175   :  { %v3499_v54 = vsel %vm8031_vm4, %v6246_v53, -1e+30  ;;  %v3355_v47 = vsel %vm7998_vm15, %v6241_v20, -1e+30 }
 0x176   :  { %v3507_v57 = vmax.f32 %v3357_v28, %v3499_v54  ;;  %v3363_v58 = vmax.f32 %v3213_v49, %v3355_v47  ;;  %v3444_v3 = vpop.f32.mrf.mxu0  ;;  %v3324_v62 = vpop.f32.mrf.mxu1 }
 0x177   :  { %v3498_v4 = vsel %vm8031_vm4, %v3444_v3, -1e+30  ;;  %v3354_v55 = vsel %vm7998_vm15, %v3324_v62, -1e+30 }
 0x178   :  { %v3506_v11 = vmax.f32 %v3356_v37, %v3498_v4  ;;  %v3362_v6 = vmax.f32 %v3212_v50, %v3354_v55  ;;  %v6249_v8 = vpop.f32.mrf.mxu0  ;;  %v6260_v63 = vpop.f32.mrf.mxu1 }
 0x179   :  { %v3501_v12 = vsel %vm8031_vm4, %v6249_v8, -1e+30  ;;  %v3649_v56 = vsel %vm8044_vm5, %v6260_v63, -1e+30 }
 0x17a   :  { %v3509_v16 = vmax.f32 %v3359_v33, %v3501_v12  ;;  %v3454_v19 = vpop.f32.mrf.mxu0  ;;  %v8056_v21 = vmax.f32 %v3507_v57, %v3649_v56  ;;  %v3594_v22 = vpop.f32.mrf.mxu1 }
 0x17b   :  { %v3500_v23 = vsel %vm8031_vm4, %v3454_v19, -1e+30  ;;  %v3648_v61 = vsel %vm8044_vm5, %v3594_v22, -1e+30 }
 0x17c   :  { %v3508_v25 = vmax.f32 %v3358_v45, %v3500_v23  ;;  %v6252_v13 = vpop.f32.mrf.mxu0  ;;  %v8062_v26 = vmax.f32 %v3506_v11, %v3648_v61  ;;  %v6263_v28 = vpop.f32.mrf.mxu1 }
 0x17d   :  { %v3503_v59 = vsel %vm8031_vm4, %v6252_v13, -1e+30  ;;  %v3651_v9 = vsel %vm8044_vm5, %v6263_v28, -1e+30 }
 0x17e   :  { %v3511_v0 = vmax.f32 %v3361_v46, %v3503_v59  ;;  %v3464_v30 = vpop.f32.mrf.mxu0  ;;  %v8068_v32 = vmax.f32 %v3509_v16, %v3651_v9  ;;  %v3604_v34 = vpop.f32.mrf.mxu1 }
 0x17f   :  { %v3502_v37 = vsel %vm8031_vm4, %v3464_v30, -1e+30  ;;  %v3650_v38 = vsel %vm8044_vm5, %v3604_v34, -1e+30  ;;  %v3942_v30 = vsel %vm3933_vm0, 1, %v6448_v35 }
 0x180   :  { %v3510_v15 = vmax.f32 %v3360_v5, %v3502_v37  ;;  %v6255_v2 = vpop.f32.mrf.mxu0  ;;  %v8074_v18 = vmax.f32 %v3508_v25, %v3650_v38  ;;  %v6266_v31 = vpop.f32.mrf.mxu1  ;;  %v3792_v25 = vsel %vm3783_vm6, 1, %v6448_v35  ;;  %v5220_v38 = vsel %vm5219_vm7, 1, %v6448_v35 }
 0x181   :  { %v3505_v33 = vsel %vm8031_vm4, %v6255_v2, -1e+30  ;;  %v3653_v24 = vsel %vm8044_vm5, %v6266_v31, -1e+30 }
 0x182   :  { %v3513_v27 = vmax.f32 %v3363_v58, %v3505_v33  ;;  %v3474_v29 = vpop.f32.mrf.mxu0  ;;  %v8080_v43 = vmax.f32 %v3511_v0, %v3653_v24  ;;  %v3614_v40 = vpop.f32.mrf.mxu1  ;;  %v3796_v0 = vrot.slane %v3792_v25, %v7131_v60  ;;  %v3946_v24 = vrot.slane %v3942_v30, %v7131_v60 }
 0x183   :  { %v3504_v1 = vsel %vm8031_vm4, %v3474_v29, -1e+30  ;;  %v3652_v44 = vsel %vm8044_vm5, %v3614_v40, -1e+30  ;;  %v4692_v30 = vsel %vm4683_vm1, 1, %v6448_v35 }
 0x184   :  { %v3512_v45 = vmax.f32 %v3362_v6, %v3504_v1  ;;  %v8086_v36 = vmax.f32 %v3510_v15, %v3652_v44  ;;  %v6269_v39 = vpop.f32.mrf.mxu1  ;;  %v8088_v48 = vpop.f32.mrf.mxu0  ;;  %v4092_v15 = vsel %vm4083_vm8, 1, %v6448_v35  ;;  %vm8179_vm11 = vcmp.eq.s32.totalorder %v3796_v0, 1 }
 0x185   :  { %v3655_v49 = vsel %vm8044_vm5, %v6269_v39, -1e+30  ;;  %v5224_v1 = vrot.slane %v5220_v38, %v7131_v60  ;;  %v4096_v44 = vrot.slane %v4092_v15, %v7131_v60  ;;  %v8195_v39 = vpop.permute.xlu1 %5183  ;;  %v8210_v38 = vsel %vm4833_vm13, 1, %v6448_v35 }
 0x186   :  { %v8092_v17 = vmax.f32 %v3513_v27, %v3655_v49  ;;  %v3624_v46 = vpop.f32.mrf.mxu1  ;;  %v8094_v7 = vpop.f32.mrf.mxu0  ;;  %v4242_v27 = vsel %vm4233_vm9, 1, %v6448_v35  ;;  %8609 = vst [vmem:[#allocation7_spill] sm:$0xff] %v8195_v39  ;;  %vm8215_vm14 = vcmp.eq.s32.totalorder %v3946_v24, 1 }
 0x187   :  { %v3654_v41 = vsel %vm8044_vm5, %v3624_v46, -1e+30  ;;  %v8197_v49 = vpop.permute.xlu0 %5173  ;;  %v3799_v46 = vsel %vm8179_vm11, %v8088_v48, -1e+30  ;;  %v3798_v15 = vsel %vm8179_vm11, %v8094_v7, -1e+30 }
 0x188   :  { %v8098_v51 = vmax.f32 %v3512_v45, %v3654_v41  ;;  %v8100_v42 = vpop.f32.mrf.mxu1  ;;  %v8102_v52 = vpop.f32.mrf.mxu0  ;;  %v4392_v45 = vsel %vm4383_vm10, 1, %v6448_v35  ;;  %8610 = vst [vmem:[#allocation8_spill] sm:$0xff] %v8197_v49  ;;  %v4246_v41 = vrot.slane %v4242_v27, %v7131_v60  ;;  %vm8224_vm15 = vcmp.eq.s32.totalorder %v5224_v1, 1 }
 0x189   :  { %v4396_v48 = vrot.slane %v4392_v45, %v7131_v60  ;;  %v3807_v35 = vmax.f32 %v8056_v21, %v3799_v46  ;;  %v3801_v7 = vsel %vm8179_vm11, %v8102_v52, -1e+30  ;;  %vm8235_vm2 = vcmp.eq.s32.totalorder %v4096_v44, 1 }
 0x18a   :  { %v8104_v50 = vpop.f32.mrf.mxu1  ;;  %v8106_v5 = vpop.f32.mrf.mxu0  ;;  %vm8239_vm3 = vcmp.eq.s32.totalorder %v4246_v41, 1  ;;  %v4546_v1 = vrot.slane %v4542_v14, %v7131_v60  ;;  %v4696_v52 = vrot.slane %v4692_v30, %v7131_v60 }
 0x18b   :  { %v3800_v24 = vsel %vm8179_vm11, %v8106_v5, -1e+30  ;;  %v3806_v5 = vmax.f32 %v8062_v26, %v3798_v15  ;;  %v8263_v30 = vpop.permute.xlu0 %5178  ;;  %v3949_v26 = vsel %vm8215_vm14, %v8100_v42, -1e+30  ;;  %v3809_v15 = vmax.f32 %v8068_v32, %v3801_v7 }
 0x18c   :  { %v8108_v53 = vpop.f32.mrf.mxu1  ;;  %v8110_v20 = vpop.f32.mrf.mxu0  ;;  %vm8273_vm4 = vcmp.eq.s32.totalorder %v4396_v48, 1  ;;  %v3957_v49 = vmax.f32 %v3807_v35, %v3949_v26  ;;  %v3948_v42 = vsel %vm8215_vm14, %v8104_v50, -1e+30  ;;  %vm8335_vm5 = vcmp.eq.s32.totalorder %v4546_v1, 1 }
 0x18d   :  { %v3803_v44 = vsel %vm8179_vm11, %v8110_v20, -1e+30  ;;  %v3808_v20 = vmax.f32 %v8074_v18, %v3800_v24  ;;  %v3956_v33 = vmax.f32 %v3806_v5, %v3948_v42  ;;  %vm8339_vm6 = vcmp.eq.s32.totalorder %v4696_v52, 1 }
 0x18e   :  { %v8112_v54 = vpop.f32.mrf.mxu1  ;;  %v8114_v47 = vpop.f32.mrf.mxu0  ;;  %v3811_v48 = vmax.f32 %v8080_v43, %v3803_v44 }
 0x18f   :  { %v3802_v41 = vsel %vm8179_vm11, %v8114_v47, -1e+30  ;;  %v3951_v47 = vsel %vm8215_vm14, %v8108_v53, -1e+30  ;;  %v3950_v26 = vsel %vm8215_vm14, %v8112_v54, -1e+30 }
 0x190   :  { %v8116_v57 = vpop.f32.mrf.mxu1  ;;  %v8118_v58 = vpop.f32.mrf.mxu0  ;;  %v3810_v53 = vmax.f32 %v8086_v36, %v3802_v41  ;;  %v3958_v44 = vmax.f32 %v3808_v20, %v3950_v26 }
 0x191   :  { %v3805_v35 = vsel %vm8179_vm11, %v8118_v58, -1e+30  ;;  %v3953_v32 = vsel %vm8215_vm14, %v8116_v57, -1e+30 }
 0x192   :  { %v8120_v3 = vpop.f32.mrf.mxu1  ;;  %v8122_v62 = vpop.f32.mrf.mxu0  ;;  %v3813_v36 = vmax.f32 %v8092_v17, %v3805_v35 }
 0x193   :  { %v3804_v50 = vsel %vm8179_vm11, %v8122_v62, -1e+30  ;;  %v3959_v62 = vmax.f32 %v3809_v15, %v3951_v47 }
 0x194   :  { %v8124_v10 = vpop.f32.mrf.mxu1  ;;  %v8126_v4 = vpop.f32.mrf.mxu0  ;;  %v3812_v41 = vmax.f32 %v8098_v51, %v3804_v50 }
 0x195   :  { %v4099_v43 = vsel %vm8235_vm2, %v8126_v4, -1e+30  ;;  %v3952_v4 = vsel %vm8215_vm14, %v8120_v3, -1e+30 }
 0x196   :  { %v8128_v55 = vpop.f32.mrf.mxu1  ;;  %v8130_v11 = vpop.f32.mrf.mxu0  ;;  %v4107_v5 = vmax.f32 %v3957_v49, %v4099_v43  ;;  %v3961_v49 = vmax.f32 %v3811_v48, %v3953_v32  ;;  %v3960_v42 = vmax.f32 %v3810_v53, %v3952_v4 }
 0x197   :  { %v4098_v58 = vsel %vm8235_vm2, %v8130_v11, -1e+30 }
 0x198   :  { %v8132_v6 = vpop.f32.mrf.mxu1  ;;  %v8134_v8 = vpop.f32.mrf.mxu0  ;;  %v4106_v15 = vmax.f32 %v3956_v33, %v4098_v58 }
 0x199   :  { %v4101_v11 = vsel %vm8235_vm2, %v8134_v8, -1e+30  ;;  %v4249_v1 = vsel %vm8239_vm3, %v8132_v6, -1e+30 }
 0x19a   :  { %v8136_v63 = vpop.f32.mrf.mxu1  ;;  %v8138_v12 = vpop.f32.mrf.mxu0  ;;  %v4109_v47 = vmax.f32 %v3959_v62, %v4101_v11  ;;  %v4257_v26 = vmax.f32 %v4107_v5, %v4249_v1 }
 0x19b   :  { %v4100_v57 = vsel %vm8235_vm2, %v8138_v12, -1e+30  ;;  %v3955_v12 = vsel %vm8215_vm14, %v8124_v10, -1e+30  ;;  %v4248_v52 = vsel %vm8239_vm3, %v8136_v63, -1e+30 }
 0x19c   :  { %v8140_v56 = vpop.f32.mrf.mxu1  ;;  %v8142_v16 = vpop.f32.mrf.mxu0  ;;  %v4108_v35 = vmax.f32 %v3958_v44, %v4100_v57  ;;  %v3963_v63 = vmax.f32 %v3813_v36, %v3955_v12  ;;  %v4256_v53 = vmax.f32 %v4106_v15, %v4248_v52 }
 0x19d   :  { %v4103_v17 = vsel %vm8235_vm2, %v8142_v16, -1e+30  ;;  %v3954_v16 = vsel %vm8215_vm14, %v8128_v55, -1e+30  ;;  %v4251_v58 = vsel %vm8239_vm3, %v8140_v56, -1e+30  ;;  %v8629_v56 = vrot.slane %v8210_v38, %v7131_v60 }
 0x19e   :  { %v8144_v19 = vpop.f32.mrf.mxu1  ;;  %v8146_v22 = vpop.f32.mrf.mxu0  ;;  %v3962_v50 = vmax.f32 %v3812_v41, %v3954_v16  ;;  %v4259_v41 = vmax.f32 %v4109_v47, %v4251_v58 }
 0x19f   :  { %v4102_v32 = vsel %vm8235_vm2, %v8146_v22, -1e+30  ;;  %vm8394_vm0 = vcmp.eq.s32.totalorder %v8629_v56, 1 }
 0x1a0   :  { %v8149_v23 = vpop.f32.mrf.mxu1  ;;  %v8151_v61 = vpop.f32.mrf.mxu0  ;;  %v4110_v33 = vmax.f32 %v3960_v42, %v4102_v32 }
 0x1a1   :  { %v4105_v55 = vsel %vm8235_vm2, %v8151_v61, -1e+30  ;;  %v4250_v61 = vsel %vm8239_vm3, %v8144_v19, -1e+30  ;;  %v4253_v45 = vsel %vm8239_vm3, %v8149_v23, -1e+30 }
 0x1a2   :  { %v8154_v13 = vpop.f32.mrf.mxu1  ;;  %v8156_v28 = vpop.f32.mrf.mxu0  ;;  %v4113_v62 = vmax.f32 %v3963_v63, %v4105_v55  ;;  %v4258_v11 = vmax.f32 %v4108_v35, %v4250_v61 }
 0x1a3   :  { %v4104_v6 = vsel %vm8235_vm2, %v8156_v28, -1e+30 }
 0x1a4   :  { %v8159_v59 = vpop.f32.mrf.mxu1  ;;  %v8161_v9 = vpop.f32.mrf.mxu0  ;;  %v4112_v44 = vmax.f32 %v3962_v50, %v4104_v6 }
 0x1a5   :  { %v4399_v28 = vsel %vm8273_vm4, %v8161_v9, -1e+30  ;;  %v4255_v60 = vsel %vm8239_vm3, %v8159_v59, -1e+30 }
 0x1a6   :  { %v8168_v34 = vpop.f32.mrf.mxu1  ;;  %v8170_v37 = vpop.f32.mrf.mxu0  ;;  %v4407_v38 = vmax.f32 %v4257_v26, %v4399_v28  ;;  %v4263_v16 = vmax.f32 %v4113_v62, %v4255_v60 }
 0x1a7   :  { %v4398_v36 = vsel %vm8273_vm4, %v8170_v37, -1e+30  ;;  %v4252_v37 = vsel %vm8239_vm3, %v8154_v13, -1e+30 }
 0x1a8   :  { %v8175_v2 = vpop.f32.mrf.mxu1  ;;  %v8177_v31 = vpop.f32.mrf.mxu0  ;;  %v4260_v12 = vmax.f32 %v4110_v33, %v4252_v37 }
 0x1a9   :  { %8605 = vst [vmem:[#allocation5_spill] sm:$0xff] %v8175_v2  ;;  %v4401_v5 = vsel %vm8273_vm4, %v8177_v31, -1e+30  ;;  %v4254_v31 = vsel %vm8239_vm3, %v8168_v34, -1e+30 }
 0x1aa   :  { %v8186_v29 = vpop.f32.mrf.mxu1  ;;  %v8188_v40 = vpop.f32.mrf.mxu0  ;;  %v4409_v1 = vmax.f32 %v4259_v41, %v4401_v5 }
 0x1ab   :  { %8608 = vst [vmem:[#allocation6_spill] sm:$0xff] %v8186_v29  ;;  %v4111_v29 = vmax.f32 %v3961_v49, %v4103_v17  ;;  %v4400_v15 = vsel %vm8273_vm4, %v8188_v40, -1e+30  ;;  %v4406_v49 = vmax.f32 %v4256_v53, %v4398_v36  ;;  %v4262_v40 = vmax.f32 %v4112_v44, %v4254_v31 }
 0x1ac   :  { %v8203_v25 = vpop.f32.mrf.mxu1  ;;  %v8205_v0 = vpop.f32.mrf.mxu0 }
 0x1ad   :  { %8611 = vst [vmem:[#allocation9_spill] sm:$0xff] %v8203_v25  ;;  %v4261_v23 = vmax.f32 %v4111_v29, %v4253_v45  ;;  %v4403_v13 = vsel %vm8273_vm4, %v8205_v0, -1e+30 }
 0x1ae   :  { %v8220_v27 = vpop.f32.mrf.mxu1  ;;  %v8222_v25 = vpop.f32.mrf.mxu0 }
 0x1af   :  { %8614 = vst [vmem:[#allocation10_spill] sm:$0xff] %v8220_v27  ;;  %8615 = vst [vmem:[#allocation11_spill] sm:$0xff] %v8222_v25  ;;  %v4408_v27 = vmax.f32 %v4258_v11, %v4400_v15  ;;  %v4411_v63 = vmax.f32 %v4261_v23, %v4403_v13 }
 0x1b0   :  { %v8244_v25 = vpop.f32.mrf.mxu1  ;;  %v8246_v21 = vpop.f32.mrf.mxu0  ;;  %v8633_v32 = vld [vmem:[#allocation5_spill] sm:$0xff] }
 0x1b1   :  { %8622 = vst [vmem:[#allocation12_spill] sm:$0xff] %v8244_v25  ;;  %v8261_v25 = vpop.permute.xlu1 %5188  ;;  %v4549_v34 = vsel %vm8335_vm5, %v8633_v32, -1e+30  ;;  %v4405_v0 = vsel %vm8273_vm4, %v8246_v21, -1e+30 }
 0x1b2   :  { %v8277_v14 = vpop.f32.mrf.mxu1  ;;  %v8279_v39 = vpop.f32.mrf.mxu0  ;;  %v4557_v29 = vmax.f32 %v4407_v38, %v4549_v34  ;;  %v8634_v55 = vld [vmem:[#allocation6_spill] sm:$0xff]  ;;  %v4413_v44 = vmax.f32 %v4263_v16, %v4405_v0 }
 0x1b3   :  { %v4548_v6 = vsel %vm8335_vm5, %v8634_v55, -1e+30  ;;  %v4404_v21 = vsel %vm8273_vm4, %v8279_v39, -1e+30  ;;  %v4552_v39 = vsel %vm8335_vm5, %v8277_v14, -1e+30 }
 0x1b4   :  { %v8300_v7 = vpop.f32.mrf.mxu1  ;;  %v8302_v24 = vpop.f32.mrf.mxu0  ;;  %v4556_v58 = vmax.f32 %v4406_v49, %v4548_v6  ;;  %v8635_v61 = vld [vmem:[#allocation9_spill] sm:$0xff]  ;;  %v4412_v60 = vmax.f32 %v4262_v40, %v4404_v21 }
 0x1b5   :  { %v4699_v35 = vsel %vm8339_vm6, %v8302_v24, -1e+30  ;;  %v4551_v33 = vsel %vm8335_vm5, %v8635_v61, -1e+30  ;;  %v4555_v49 = vsel %vm8335_vm5, %v8300_v7, -1e+30 }
 0x1b6   :  { %v8317_v18 = vpop.f32.mrf.mxu1  ;;  %v8319_v54 = vpop.f32.mrf.mxu0  ;;  %v8632_v42 = vld [vmem:[#allocation11_spill] sm:$0xff]  ;;  %v4559_v28 = vmax.f32 %v4409_v1, %v4551_v33  ;;  %v8636_v45 = vld [vmem:[#allocation10_spill] sm:$0xff]  ;;  %v4707_v36 = vmax.f32 %v4557_v29, %v4699_v35  ;;  %v8638_v29 = vld [vmem:[#allocation8_spill] sm:$0xff] }
 0x1b7   :  { %v4402_v59 = vsel %vm8273_vm4, %v8632_v42, -1e+30  ;;  %v4698_v24 = vsel %vm8339_vm6, %v8319_v54, -1e+30  ;;  %v4550_v62 = vsel %vm8335_vm5, %v8636_v45, -1e+30  ;;  %v5199_v45 = vpop.permute.xlu1 %5198 }
 0x1b8   :  { %v8343_v3 = vpop.f32.mrf.mxu1  ;;  %v8345_v8 = vpop.f32.mrf.mxu0  ;;  %v4410_v50 = vmax.f32 %v4260_v12, %v4402_v59  ;;  %v4558_v11 = vmax.f32 %v4408_v27, %v4550_v62  ;;  %v8637_v23 = vld [vmem:[#allocation12_spill] sm:$0xff]  ;;  %v4706_v38 = vmax.f32 %v4556_v58, %v4698_v24  ;;  %v4554_v59 = vsel %vm8335_vm5, %v8317_v18, -1e+30 }
 0x1b9   :  { %v4553_v46 = vsel %vm8335_vm5, %v8637_v23, -1e+30  ;;  %v4701_v54 = vsel %vm8339_vm6, %v8345_v8, -1e+30  ;;  %v4849_v13 = vsel %vm8394_vm0, %v8343_v3, -1e+30  ;;  %v4563_v8 = vmax.f32 %v4413_v44, %v4555_v49 }
 0x1ba   :  { %v8362_v48 = vpop.f32.mrf.mxu1  ;;  %v8364_v10 = vpop.f32.mrf.mxu0  ;;  %v4561_v5 = vmax.f32 %v4411_v63, %v4553_v46  ;;  %v4560_v37 = vmax.f32 %v4410_v50, %v4552_v39  ;;  %v4857_v12 = vmax.f32 %v4707_v36, %v4849_v13  ;;  %v4709_v16 = vmax.f32 %v4559_v28, %v4701_v54 }
 0x1bb   :  { %v4700_v14 = vsel %vm8339_vm6, %v8364_v10, -1e+30  ;;  %v4848_v7 = vsel %vm8394_vm0, %v8362_v48, -1e+30  ;;  %v4562_v34 = vmax.f32 %v4412_v60, %v4554_v59  ;;  %v8639_v24 = vsel %vm8224_vm15, %v8263_v30, -1e+30 }
 0x1bc   :  { %v8372_v43 = vpop.f32.mrf.mxu1  ;;  %v8374_v22 = vpop.f32.mrf.mxu0  ;;  %v4856_v27 = vmax.f32 %v4706_v38, %v4848_v7  ;;  %v4708_v20 = vmax.f32 %v4558_v11, %v4700_v14  ;;  %v8640_v11 = vsel %vm8224_vm15, %v8638_v29, -1e+30 }
 0x1bd   :  { %v4703_v3 = vsel %vm8339_vm6, %v8374_v22, -1e+30  ;;  %v4851_v18 = vsel %vm8394_vm0, %v8372_v43, -1e+30 }
 0x1be   :  { %v8398_v4 = vpop.f32.mrf.mxu1  ;;  %v8400_v9 = vpop.f32.mrf.mxu0  ;;  %v4859_v63 = vmax.f32 %v4709_v16, %v4851_v18 }
 0x1bf   :  { %v4702_v48 = vsel %vm8339_vm6, %v8400_v9, -1e+30  ;;  %v4850_v50 = vsel %vm8394_vm0, %v8398_v4, -1e+30 }
 0x1c0   :  { %v8414_v57 = vpop.f32.mrf.mxu1  ;;  %v8416_v17 = vpop.f32.mrf.mxu0  ;;  %v4858_v62 = vmax.f32 %v4708_v20, %v4850_v50  ;;  %v4710_v44 = vmax.f32 %v4560_v37, %v4702_v48 }
 0x1c1   :  { %v4705_v43 = vsel %vm8339_vm6, %v8416_v17, -1e+30  ;;  %v4853_v4 = vsel %vm8394_vm0, %v8414_v57, -1e+30 }
 0x1c2   :  { %v8427_v52 = vpop.f32.mrf.mxu1  ;;  %v8429_v47 = vpop.f32.mrf.mxu0  ;;  %v4713_v37 = vmax.f32 %v4563_v8, %v4705_v43 }
 0x1c3   :  { %v4704_v17 = vsel %vm8339_vm6, %v8429_v47, -1e+30  ;;  %v4852_v57 = vsel %vm8394_vm0, %v8427_v52, -1e+30  ;;  %v5194_v47 = vpop.permute.xlu0 %5193 }
 0x1c4   :  { %v8443_v26 = vpop.f32.mrf.mxu1  ;;  %v6386_v53 = vpop.f32.mrf.mxu0  ;;  %v4860_v14 = vmax.f32 %v4710_v44, %v4852_v57  ;;  %v4712_v59 = vmax.f32 %v4562_v34, %v4704_v17 }
 0x1c6   :  { %v8457_v56 = vpop.f32.mrf.mxu1  ;;  %v4992_v41 = vpop.f32.mrf.mxu0 }
 0x1c8   :  { %v6400_v15 = vpop.f32.mrf.mxu1  ;;  %v6389_v31 = vpop.f32.mrf.mxu0 }
 0x1c9   :  { %v5130_v42 = vadd.f32 %v6400_v15, %v6386_v53  ;;  %v4711_v53 = vmax.f32 %v4561_v5, %v4703_v3 }
 0x1ca   :  { %v5124_v40 = vpop.f32.mrf.mxu1  ;;  %v5002_v1 = vpop.f32.mrf.mxu0 }
 0x1cb   :  { %v5125_v32 = vadd.f32 %v5124_v40, %v4992_v41  ;;  %v5212_v10 = vadd.f32 %v8263_v30, %v5130_v42  ;;  %v8641_v30 = vld [vmem:[#allocation7_spill] sm:$0xff]  ;;  %v4861_v5 = vmax.f32 %v4711_v53, %v4853_v4  ;;  %v4855_v42 = vsel %vm8394_vm0, %v8443_v26, -1e+30  ;;  %v5209_v26 = vpop.permute.xlu1 %5208 }
 0x1cc   :  { %v6403_v0 = vpop.f32.mrf.mxu1  ;;  %v6392_v35 = vpop.f32.mrf.mxu0  ;;  %v8643_v16 = vsel %vm8224_vm15, %v8641_v30, -1e+30  ;;  %v4863_v3 = vmax.f32 %v4713_v37, %v4855_v42  ;;  %v5233_v43 = vsel %vm8224_vm15, %v5209_v26, -1e+30 }
 0x1cd   :  { %v5211_v55 = vadd.f32 %v8638_v29, %v5125_v32  ;;  %v5140_v6 = vadd.f32 %v6403_v0, %v6389_v31  ;;  %v5243_v22 = vadd.f32 %v5212_v10, %v4857_v12  ;;  %v8642_v31 = vsel %vm8224_vm15, %v8261_v25, -1e+30 }
 0x1ce   :  { %v5134_v58 = vpop.f32.mrf.mxu1  ;;  %v5012_v61 = vpop.f32.mrf.mxu0  ;;  %v5231_v32 = vsel %vm8224_vm15, %v5199_v45, -1e+30  ;;  %v5230_v29 = vsel %vm8224_vm15, %v5194_v47, -1e+30 }
 0x1cf   :  { %v5242_v33 = vadd.f32 %v5211_v55, %v4856_v27  ;;  %v5135_v21 = vadd.f32 %v5134_v58, %v5002_v1  ;;  %v5214_v9 = vadd.f32 %v8261_v25, %v5140_v6  ;;  %v5251_v28 = vmax.f32 %v5243_v22, %v8639_v24  ;;  %v5204_v55 = vpop.permute.xlu0 %5203 }
 0x1d0   :  { %v6406_v36 = vpop.f32.mrf.mxu1  ;;  %v6395_v41 = vpop.f32.mrf.mxu0  ;;  %v5232_v19 = vsel %vm8224_vm15, %v5204_v55, -1e+30 }
 0x1d1   :  { %v5250_v23 = vmax.f32 %v5242_v33, %v8640_v11  ;;  %v5213_v46 = vadd.f32 %v8641_v30, %v5135_v21  ;;  %v5245_v39 = vadd.f32 %v5214_v9, %v4859_v63  ;;  %v5259_v54 = vmax.f32 %v5251_v28, 0.0 }
 0x1d2   :  { %v5150_v60 = vadd.f32 %v6406_v36, %v6392_v35  ;;  %v5144_v51 = vpop.f32.mrf.mxu1  ;;  %v5022_v12 = vpop.f32.mrf.mxu0  ;;  %v4854_v35 = vsel %vm8394_vm0, %v8457_v56, -1e+30 }
 0x1d3   :  { %v5258_v38 = vmax.f32 %v5250_v23, 0.0  ;;  %v5244_v15 = vadd.f32 %v5213_v46, %v4858_v62  ;;  %v5253_v49 = vmax.f32 %v5245_v39, %v8642_v31  ;;  %5267 = vst [vmem:[#allocation2 + $0x8] sm:$0xff] %v5259_v54  ;;  %v5145_v13 = vadd.f32 %v5144_v51, %v5012_v61 }
 0x1d4   :  { %v5216_v52 = vadd.f32 %v5199_v45, %v5150_v60  ;;  %v6409_v8 = vpop.f32.mrf.mxu1  ;;  %v4862_v6 = vmax.f32 %v4712_v59, %v4854_v35 }
 0x1d5   :  { %5266 = vst [vmem:[#allocation2] sm:$0xff] %v5258_v38  ;;  %v5252_v40 = vmax.f32 %v5244_v15, %v8643_v16  ;;  %v5261_v1 = vmax.f32 %v5253_v49, 0.0  ;;  %v5215_v25 = vadd.f32 %v5194_v47, %v5145_v13  ;;  %v5160_v7 = vadd.f32 %v6409_v8, %v6395_v41 }
 0x1d6   :  { %v5247_v10 = vadd.f32 %v5216_v52, %v4861_v5  ;;  %v5154_v27 = vpop.f32.mrf.mxu1 }
 0x1d7   :  { %v5260_v34 = vmax.f32 %v5252_v40, 0.0  ;;  %5269 = vst [vmem:[#allocation2 + $0x18] sm:$0xff] %v5261_v1  ;;  %v5246_v18 = vadd.f32 %v5215_v25, %v4860_v14  ;;  %v5155_v20 = vadd.f32 %v5154_v27, %v5022_v12  ;;  %v5218_v0 = vadd.f32 %v5209_v26, %v5160_v7 }
 0x1d8   :  { %v5255_v48 = vmax.f32 %v5247_v10, %v5231_v32 }
 0x1d9   :  { %5268 = vst [vmem:[#allocation2 + $0x10] sm:$0xff] %v5260_v34  ;;  %v5254_v22 = vmax.f32 %v5246_v18, %v5230_v29  ;;  %v5249_v63 = vadd.f32 %v5218_v0, %v4863_v3  ;;  %v5217_v50 = vadd.f32 %v5204_v55, %v5155_v20 }
 0x1da   :  { %v5263_v53 = vmax.f32 %v5255_v48, 0.0 }
 0x1db   :  { %v5262_v58 = vmax.f32 %v5254_v22, 0.0  ;;  %v5257_v61 = vmax.f32 %v5249_v63, %v5233_v43  ;;  %v5248_v33 = vadd.f32 %v5217_v50, %v4862_v6 }
 0x1dc   :  { %5271 = vst [vmem:[#allocation2 + $0x28] sm:$0xff] %v5263_v53 }
 0x1dd   :  { %5270 = vst [vmem:[#allocation2 + $0x20] sm:$0xff] %v5262_v58  ;;  %v5265_v56 = vmax.f32 %v5257_v61, 0.0  ;;  %v5256_v21 = vmax.f32 %v5248_v33, %v5232_v19 }
 0x1df   :  { %5273 = vst [vmem:[#allocation2 + $0x38] sm:$0xff] %v5265_v56  ;;  %v5264_v9 = vmax.f32 %v5256_v21, 0.0 }
 0x1e1   :  { %5272 = vst [vmem:[#allocation2 + $0x30] sm:$0xff] %v5264_v9 }
 0x1e2   :  { %6437 = shalt.err (!%p6434_p4)
}
 0x1e3   :  { %s6450_s0 = smov 128   ;;  %s6451_s14 = smov 8  }
 0x1e4   :  { %5285 = dma.vmem_to_hbm [thread:$0]  %s5280_s12, 1024, %s8552_s8, [#allocation3], %s6450_s0, %s6450_s0, %s6451_s14  }
 0x1e5   :  { %6446 = dma.done.wait [#allocation3], 1024  }
 0x1e6   :  { %6447 = vsyncadd [#allocation3], 4294966272 }
 0x1e7   :  { %5289 = vsyncpa [#allocation3], 1 }

</bundles_post_ra>
